<compile_context>
chip_gen: v5e
topology: v5e:2x2
jax: 0.10.0
libtpu: 0.0.40
codegen_flags: <defaults>
</compile_context>

<pallas_src>
import functools

import jax
import jax.numpy as jnp
import numpy as np
from jax.experimental import pallas as pl
from jax.experimental.pallas import tpu as pltpu

LN_EPS = 1e-5
DEPTH = 2


# --------------------- dense ortho-DFT operators (host side) ---------------------

def _build_dft_mats(H, W):
    """Dense real operators for rfft2 / irfft2 (norm='ortho'), channel-major form.

    Returns:
      dft_pack : (2*H*W, H*Wr)  rows [0:HW]  = DreT  (act @ DreT -> Re(rfft2))
                                rows [HW: ]  = DimT  (act @ DimT -> Im(rfft2))
      ginv_pack: (2*H*Wr, H*W)  rows [0:HWr] = GrT   (re  @ GrT  part of irfft2)
                                rows [HWr:]  = GiT   (im  @ GiT  part of irfft2)
    ginv includes the Hermitian doubling factors so `re@GrT + im@GiT` reproduces
    irfft2(norm='ortho') exactly (including the implicit drop of Im(DC)/Im(Nyq)).
    """
    Wr = W // 2 + 1
    k = np.arange(H)[:, None]
    h = np.arange(H)[None, :]
    m = np.arange(Wr)[:, None]
    w = np.arange(W)[None, :]
    kh = (k * h) / H                                    # (H, H)
    mw = (m * w) / W                                    # (Wr, W)
    theta = 2.0 * np.pi * (kh[:, None, :, None] + mw[None, :, None, :])  # (H,Wr,H,W)
    theta = theta.reshape(H * Wr, H * W)                # row q = k*Wr+m, col p = h*W+w
    scale = 1.0 / np.sqrt(H * W)
    dr = np.cos(theta) * scale                          # (HWr, HW)
    di = -np.sin(theta) * scale
    cm = np.full((Wr,), 2.0)
    cm[0] = 1.0
    if W % 2 == 0:
        cm[-1] = 1.0
    cq = np.tile(cm, H)                                 # per flat-frequency multiplier
    gr = dr * cq[:, None]                               # (HWr, HW)
    gi = di * cq[:, None]
    dft_pack = np.concatenate([dr.T, di.T], axis=0)     # (2*HW, HWr)
    ginv_pack = np.concatenate([gr, gi], axis=0)        # (2*HWr, HW)
    return (jnp.asarray(dft_pack, jnp.float32), jnp.asarray(ginv_pack, jnp.float32))


# ------------------------------- Pallas kernel -----------------------------------

def _decoder_kernel(x_ref, dft_ref, ginv_ref, vecs_ref, wpw_ref, wfu_ref, out_ref,
                    *, C, HW, HWR, depth):
    f32, bf16 = jnp.float32, jnp.bfloat16

    dft = dft_ref[...]                    # (2*HW, HWR) bf16
    dre_t, dim_t = dft[:HW], dft[HW:]     # sublane slices (free)
    ginv = ginv_ref[...]                  # (2*HWR, HW) bf16
    gr_t, gi_t = ginv[:HWR], ginv[HWR:]

    x = x_ref[0]                          # (C, HW) f32, channel-major tokens

    for l in range(depth):                # depth fused: activation stays in VMEM
        v = vecs_ref[l]                   # (2C, 4) f32
        gamma, beta, bout = v[:C, 0:1], v[:C, 1:2], v[:C, 2:3]
        bconv = v[:, 3:4]                 # (2C, 1)
        wpw = wpw_ref[l]                  # (2C, C) bf16: [Wproj^T ; Wout^T]
        wp_t, wout_t = wpw[:C], wpw[C:]
        wfu = wfu_ref[l]                  # (4C, C) bf16: [Wconv[:C]^T ; Wconv[C:]^T]
        wc_re, wc_im = wfu[:2 * C], wfu[2 * C:]

        # ---------------- LayerNorm over channels (sublane reduction) ------------
        mu = jnp.mean(x, axis=0, keepdims=True)
        var = jnp.mean((x - mu) ** 2, axis=0, keepdims=True)
        xn = (x - mu) * jax.lax.rsqrt(var + LN_EPS) * gamma + beta

        # TODO(synk): LCPMamba (SpectralMamba.attn) is undefined in the provided
        # spec; it is treated as identity on the normalized input.
        spa = xn

        # ---------------- spectral branch -----------------------------------------
        # proj (Linear C->C, no bias)
        fre = jnp.dot(wp_t, xn.astype(bf16), preferred_element_type=f32)    # (C, HW)
        fre_b = fre.astype(bf16)

        # rfft2 (ortho): real / imag via two lane-dense matmuls
        spec_re = jnp.dot(fre_b, dre_t, preferred_element_type=f32)         # (C, HWR)
        spec_im = jnp.dot(fre_b, dim_t, preferred_element_type=f32)

        # 1x1 conv over the 2C (re|im) channels (K split on host) + SiLU
        so = (jnp.dot(wc_re, spec_re.astype(bf16), preferred_element_type=f32)
              + jnp.dot(wc_im, spec_im.astype(bf16), preferred_element_type=f32)
              + bconv)                                                       # (2C, HWR)
        so = so * jax.nn.sigmoid(so)
        so_b = so.astype(bf16)

        # irfft2 (ortho): re/im halves are free sublane slices of so
        rec = (jnp.dot(so_b[:C], gr_t, preferred_element_type=f32)
               + jnp.dot(so_b[C:], gi_t, preferred_element_type=f32))        # (C, HW)

        # SpectralTransform.out_conv (1x1) + bias
        fre_out = jnp.dot(wout_t, rec.astype(bf16), preferred_element_type=f32) + bout

        # out = fre * spa + x  (residual on the raw layer input)
        x = fre_out * spa + x

    out_ref[0] = x.astype(out_ref.dtype)


# ---------------------------------- wrapper ---------------------------------------

def _decoder_call(x_tok, packed, C, HW, HWR, depth):
    B = x_tok.shape[0]
    kernel = functools.partial(_decoder_kernel, C=C, HW=HW, HWR=HWR, depth=depth)
    c2 = lambda b: (0, 0)
    c3 = lambda b: (0, 0, 0)
    return pl.pallas_call(
        kernel,
        out_shape=jax.ShapeDtypeStruct((B, C, HW), jnp.float32),
        grid=(B,),
        in_specs=[
            pl.BlockSpec((1, C, HW), lambda b: (b, 0, 0)),       # activations (per batch)
            pl.BlockSpec((2 * HW, HWR), c2),                     # packed fwd DFT (re;im)
            pl.BlockSpec((2 * HWR, HW), c2),                     # packed inv DFT (re;im)
            pl.BlockSpec((depth, 2 * C, 4), c3),                 # gamma/beta/bout/bconv
            pl.BlockSpec((depth, 2 * C, C), c3),                 # [Wproj^T ; Wout^T]
            pl.BlockSpec((depth, 4 * C, C), c3),                 # split Wconv^T
        ],
        out_specs=pl.BlockSpec((1, C, HW), lambda b: (b, 0, 0)),
        compiler_params=pltpu.CompilerParams(
            dimension_semantics=("parallel",),     # v7x: batch sharded over 2 TCs
            vmem_limit_bytes=32 * 1024 * 1024),
    )(x_tok, packed["dft"], packed["ginv"], packed["vecs"],
      packed["wpw"], packed["wfu"])


@functools.partial(jax.jit, static_argnames=("depth",))
def decoder_forward(x, packed, depth=DEPTH):
    B, C, H, W = x.shape
    HW, HWR = H * W, H * (W // 2 + 1)
    xt = x.reshape(B, C, HW).astype(jnp.float32)   # channel-major: no transpose needed
    out = _decoder_call(xt, packed, C, HW, HWR, depth)
    return out.reshape(B, C, H, W)


# --------------------------------- parameters -------------------------------------

def init_params(key, C, depth=DEPTH):
    params = []
    for i in range(depth):
        keys = jax.random.split(jax.random.fold_in(key, i), 7)
        gamma = 1.0 + 0.1 * jax.random.normal(keys[0], (C,), jnp.float32)
        beta = 0.1 * jax.random.normal(keys[1], (C,), jnp.float32)
        wp = jax.random.normal(keys[2], (C, C), jnp.float32) / np.sqrt(C)
        wc = jax.random.normal(keys[3], (2 * C, 2 * C), jnp.float32) / np.sqrt(2 * C)
        bc = 0.1 * jax.random.normal(keys[4], (2 * C,), jnp.float32)
        wout = jax.random.normal(keys[5], (C, C), jnp.float32) / np.sqrt(C)
        bout = 0.1 * jax.random.normal(keys[6], (C,), jnp.float32)
        params.append(dict(gamma=gamma, beta=beta, wp=wp, wc=wc, bc=bc,
                           wout=wout, bout=bout))
    return params


def pack_params(params_list, H, W):
    """Pack per-layer tensors into the depth-stacked slabs the kernel consumes."""
    C = params_list[0]["gamma"].shape[0]
    dft_pack, ginv_pack = _build_dft_mats(H, W)

    vecs, wpw, wfu = [], [], []
    for p in params_list:
        v = jnp.zeros((2 * C, 4), jnp.float32)
        v = v.at[:C, 0].set(p["gamma"]).at[:C, 1].set(p["beta"])
        v = v.at[:C, 2].set(p["bout"]).at[:, 3].set(p["bc"])
        vecs.append(v)
        wpw.append(jnp.concatenate([p["wp"].T, p["wout"].T], axis=0))          # (2C, C)
        wfu.append(jnp.concatenate([p["wc"][:C, :].T, p["wc"][C:, :].T], axis=0))  # (4C, C)

    return dict(
        dft=dft_pack.astype(jnp.bfloat16),
        ginv=ginv_pack.astype(jnp.bfloat16),
        vecs=jnp.stack(vecs, axis=0),
        wpw=jnp.stack(wpw, axis=0).astype(jnp.bfloat16),
        wfu=jnp.stack(wfu, axis=0).astype(jnp.bfloat16),
    )


# ----------------------------- pure-JAX reference ----------------------------------

def reference_forward(x, params_list):
    B, C, H, W = x.shape
    hp = jax.lax.Precision.HIGHEST
    out = x.astype(jnp.float32)
    for p in params_list:
        xn = jnp.transpose(out, (0, 2, 3, 1))                       # b h w c
        mu = jnp.mean(xn, -1, keepdims=True)
        var = jnp.mean((xn - mu) ** 2, -1, keepdims=True)
        xn = (xn - mu) * jax.lax.rsqrt(var + LN_EPS) * p["gamma"] + p["beta"]

        spa = jnp.transpose(xn, (0, 3, 1, 2))                       # LCPMamba ~ identity

        fre = jnp.einsum("bhwc,cd->bhwd", xn, p["wp"], precision=hp)
        fre = jnp.transpose(fre, (0, 3, 1, 2))                      # b c h w

        # FourierUnit ([all-real | all-imag] channel convention; see header comment)
        ff = jnp.fft.rfftn(fre, s=(H, W), axes=(-2, -1), norm="ortho")
        stacked = jnp.concatenate([jnp.real(ff), jnp.imag(ff)], axis=1)      # (B,2C,H,Wr)
        conv = jnp.einsum("bihw,io->bohw", stacked, p["wc"], precision=hp)
        conv = conv + p["bc"][None, :, None, None]
        conv = conv * jax.nn.sigmoid(conv)                                    # SiLU
        comp = conv[:, :C] + 1j * conv[:, C:]
        rec = jnp.fft.irfftn(comp, s=(H, W), axes=(-2, -1), norm="ortho")     # (B,C,H,W)

        # SpectralTransform.out_conv
        rec = jnp.einsum("bihw,io->bohw", rec, p["wout"], precision=hp)
        rec = rec + p["bout"][None, :, None, None]

        out = rec * spa + out
    return out


# -------------------------------------- main ---------------------------------------

if __name__ == "__main__":
    key = jax.random.PRNGKey(0)
    B, C, H, W = 2, 32, 16, 16
    kx, kp = jax.random.split(key)
    x = jax.random.normal(kx, (B, C, H, W), jnp.float32)
    params = init_params(kp, C, DEPTH)
    packed = pack_params(params, H, W)

    out = jax.block_until_ready(decoder_forward(x, packed, depth=DEPTH))
    assert out.shape == (B, C, H, W)

    ref = jax.block_until_ready(reference_forward(x, params))
    # bf16 MXU operands (f32 accumulation) -> norm-based tolerance check.
    rel_err = float(jnp.linalg.norm(out - ref) / jnp.linalg.norm(ref))
    assert rel_err < 5e-2, f"relative error too large: {rel_err}"
    print("KERNEL_OK")
</pallas_src>

<mosaic_0001>
module attributes {stable_mosaic.version = 11 : i64} {
  func.func @_decoder_kernel(%arg0: i32, %arg1: memref<1x32x256xf32, #tpu.memory_space<vmem>>, %arg2: memref<512x144xbf16, #tpu.memory_space<vmem>>, %arg3: memref<288x256xbf16, #tpu.memory_space<vmem>>, %arg4: memref<2x64x4xf32, #tpu.memory_space<vmem>>, %arg5: memref<2x64x32xbf16, #tpu.memory_space<vmem>>, %arg6: memref<2x128x32xbf16, #tpu.memory_space<vmem>>, %arg7: memref<1x32x256xf32, #tpu.memory_space<vmem>>) attributes {dimension_semantics = [#tpu.dimension_semantics<parallel>], iteration_bounds = array<i64: 2>, scalar_prefetch = 0 : i64, scratch_operands = 0 : i64, tpu.core_type = #tpu.core_type<tc>, window_params = [{transform_indices = @transform_0, window_bounds = array<i64: 1, 32, 256>}, {pipeline_mode = #tpu.pipeline_mode<synchronous>, transform_indices = @transform_1, window_bounds = array<i64: 512, 144>}, {pipeline_mode = #tpu.pipeline_mode<synchronous>, transform_indices = @transform_2, window_bounds = array<i64: 288, 256>}, {pipeline_mode = #tpu.pipeline_mode<synchronous>, transform_indices = @transform_3, window_bounds = array<i64: 2, 64, 4>}, {pipeline_mode = #tpu.pipeline_mode<synchronous>, transform_indices = @transform_4, window_bounds = array<i64: 2, 64, 32>}, {pipeline_mode = #tpu.pipeline_mode<synchronous>, transform_indices = @transform_5, window_bounds = array<i64: 2, 128, 32>}, {transform_indices = @transform_6, window_bounds = array<i64: 1, 32, 256>}]} {
    %c0 = arith.constant 0 : index
    %c0_0 = arith.constant 0 : index
    %0 = vector.load %arg2[%c0, %c0_0] : memref<512x144xbf16, #tpu.memory_space<vmem>>, vector<512x144xbf16>
    %1 = vector.extract_strided_slice %0 {offsets = [0, 0], sizes = [256, 144], strides = [1, 1]} : vector<512x144xbf16> to vector<256x144xbf16>
    %2 = vector.extract_strided_slice %0 {offsets = [256, 0], sizes = [256, 144], strides = [1, 1]} : vector<512x144xbf16> to vector<256x144xbf16>
    %c0_1 = arith.constant 0 : index
    %c0_2 = arith.constant 0 : index
    %3 = vector.load %arg3[%c0_1, %c0_2] : memref<288x256xbf16, #tpu.memory_space<vmem>>, vector<288x256xbf16>
    %4 = vector.extract_strided_slice %3 {offsets = [0, 0], sizes = [144, 256], strides = [1, 1]} : vector<288x256xbf16> to vector<144x256xbf16>
    %5 = vector.extract_strided_slice %3 {offsets = [144, 0], sizes = [144, 256], strides = [1, 1]} : vector<288x256xbf16> to vector<144x256xbf16>
    %c0_3 = arith.constant 0 : index
    %c0_4 = arith.constant 0 : index
    %c0_5 = arith.constant 0 : index
    %6 = vector.load %arg1[%c0_3, %c0_4, %c0_5] : memref<1x32x256xf32, #tpu.memory_space<vmem>>, vector<1x32x256xf32>
    %7 = vector.shape_cast %6 : vector<1x32x256xf32> to vector<32x256xf32>
    %c0_6 = arith.constant 0 : index
    %c0_7 = arith.constant 0 : index
    %c0_8 = arith.constant 0 : index
    %8 = vector.load %arg4[%c0_6, %c0_7, %c0_8] : memref<2x64x4xf32, #tpu.memory_space<vmem>>, vector<1x64x4xf32>
    %9 = vector.shape_cast %8 : vector<1x64x4xf32> to vector<64x4xf32>
    %10 = vector.extract_strided_slice %9 {offsets = [0, 0], sizes = [32, 1], strides = [1, 1]} : vector<64x4xf32> to vector<32x1xf32>
    %11 = vector.extract_strided_slice %9 {offsets = [0, 1], sizes = [32, 1], strides = [1, 1]} : vector<64x4xf32> to vector<32x1xf32>
    %12 = vector.extract_strided_slice %9 {offsets = [0, 2], sizes = [32, 1], strides = [1, 1]} : vector<64x4xf32> to vector<32x1xf32>
    %13 = vector.extract_strided_slice %9 {offsets = [0, 3], sizes = [64, 1], strides = [1, 1]} : vector<64x4xf32> to vector<64x1xf32>
    %c0_9 = arith.constant 0 : index
    %c0_10 = arith.constant 0 : index
    %c0_11 = arith.constant 0 : index
    %14 = vector.load %arg5[%c0_9, %c0_10, %c0_11] : memref<2x64x32xbf16, #tpu.memory_space<vmem>>, vector<1x64x32xbf16>
    %15 = vector.shape_cast %14 : vector<1x64x32xbf16> to vector<64x32xbf16>
    %16 = vector.extract_strided_slice %15 {offsets = [0, 0], sizes = [32, 32], strides = [1, 1]} : vector<64x32xbf16> to vector<32x32xbf16>
    %17 = vector.extract_strided_slice %15 {offsets = [32, 0], sizes = [32, 32], strides = [1, 1]} : vector<64x32xbf16> to vector<32x32xbf16>
    %c0_12 = arith.constant 0 : index
    %c0_13 = arith.constant 0 : index
    %c0_14 = arith.constant 0 : index
    %18 = vector.load %arg6[%c0_12, %c0_13, %c0_14] : memref<2x128x32xbf16, #tpu.memory_space<vmem>>, vector<1x128x32xbf16>
    %19 = vector.shape_cast %18 : vector<1x128x32xbf16> to vector<128x32xbf16>
    %20 = vector.extract_strided_slice %19 {offsets = [0, 0], sizes = [64, 32], strides = [1, 1]} : vector<128x32xbf16> to vector<64x32xbf16>
    %21 = vector.extract_strided_slice %19 {offsets = [64, 0], sizes = [64, 32], strides = [1, 1]} : vector<128x32xbf16> to vector<64x32xbf16>
    %cst = arith.constant dense<0.000000e+00> : vector<256xf32>
    %22 = vector.multi_reduction <add>, %7, %cst [0] : vector<32x256xf32> to vector<256xf32>
    %23 = vector.shape_cast %22 : vector<256xf32> to vector<1x256xf32>
    %cst_15 = arith.constant 3.200000e+01 : f32
    %24 = vector.broadcast %cst_15 : f32 to vector<1x256xf32>
    %25 = arith.divf %23, %24 : vector<1x256xf32>
    %26 = vector.broadcast %25 : vector<1x256xf32> to vector<32x256xf32>
    %27 = arith.subf %7, %26 : vector<32x256xf32>
    %28 = arith.mulf %27, %27 : vector<32x256xf32>
    %cst_16 = arith.constant dense<0.000000e+00> : vector<256xf32>
    %29 = vector.multi_reduction <add>, %28, %cst_16 [0] : vector<32x256xf32> to vector<256xf32>
    %30 = vector.shape_cast %29 : vector<256xf32> to vector<1x256xf32>
    %cst_17 = arith.constant 3.200000e+01 : f32
    %31 = vector.broadcast %cst_17 : f32 to vector<1x256xf32>
    %32 = arith.divf %30, %31 : vector<1x256xf32>
    %33 = vector.broadcast %25 : vector<1x256xf32> to vector<32x256xf32>
    %34 = arith.subf %7, %33 : vector<32x256xf32>
    %cst_18 = arith.constant 9.99999974E-6 : f32
    %35 = vector.broadcast %cst_18 : f32 to vector<1x256xf32>
    %36 = arith.addf %32, %35 : vector<1x256xf32>
    %37 = math.rsqrt %36 : vector<1x256xf32>
    %38 = vector.broadcast %37 : vector<1x256xf32> to vector<32x256xf32>
    %39 = arith.mulf %34, %38 : vector<32x256xf32>
    %40 = vector.broadcast %10 : vector<32x1xf32> to vector<32x256xf32>
    %41 = arith.mulf %39, %40 : vector<32x256xf32>
    %42 = vector.broadcast %11 : vector<32x1xf32> to vector<32x256xf32>
    %43 = arith.addf %41, %42 : vector<32x256xf32>
    %44 = arith.truncf %43 : vector<32x256xf32> to vector<32x256xbf16>
    %cst_19 = arith.constant dense<0.000000e+00> : vector<32x256xf32>
    %45 = tpu.matmul %16, %44, %cst_19 {dimension_numbers = #tpu.dot_dimension_numbers<[1], [0], [0], [1], [0, 0, 1, 1], [], []>} : vector<32x32xbf16>, vector<32x256xbf16>, vector<32x256xf32> -> vector<32x256xf32>
    %46 = arith.truncf %45 : vector<32x256xf32> to vector<32x256xbf16>
    %cst_20 = arith.constant dense<0.000000e+00> : vector<32x144xf32>
    %47 = tpu.matmul %46, %1, %cst_20 {dimension_numbers = #tpu.dot_dimension_numbers<[1], [0], [0], [1], [0, 0, 1, 1], [], []>} : vector<32x256xbf16>, vector<256x144xbf16>, vector<32x144xf32> -> vector<32x144xf32>
    %cst_21 = arith.constant dense<0.000000e+00> : vector<32x144xf32>
    %48 = tpu.matmul %46, %2, %cst_21 {dimension_numbers = #tpu.dot_dimension_numbers<[1], [0], [0], [1], [0, 0, 1, 1], [], []>} : vector<32x256xbf16>, vector<256x144xbf16>, vector<32x144xf32> -> vector<32x144xf32>
    %49 = arith.truncf %47 : vector<32x144xf32> to vector<32x144xbf16>
    %cst_22 = arith.constant dense<0.000000e+00> : vector<64x144xf32>
    %50 = tpu.matmul %20, %49, %cst_22 {dimension_numbers = #tpu.dot_dimension_numbers<[1], [0], [0], [1], [0, 0, 1, 1], [], []>} : vector<64x32xbf16>, vector<32x144xbf16>, vector<64x144xf32> -> vector<64x144xf32>
    %51 = arith.truncf %48 : vector<32x144xf32> to vector<32x144xbf16>
    %cst_23 = arith.constant dense<0.000000e+00> : vector<64x144xf32>
    %52 = tpu.matmul %21, %51, %cst_23 {dimension_numbers = #tpu.dot_dimension_numbers<[1], [0], [0], [1], [0, 0, 1, 1], [], []>} : vector<64x32xbf16>, vector<32x144xbf16>, vector<64x144xf32> -> vector<64x144xf32>
    %53 = arith.addf %50, %52 : vector<64x144xf32>
    %54 = vector.broadcast %13 : vector<64x1xf32> to vector<64x144xf32>
    %55 = arith.addf %53, %54 : vector<64x144xf32>
    %56 = arith.negf %55 : vector<64x144xf32>
    %57 = math.exp %56 : vector<64x144xf32>
    %cst_24 = arith.constant 1.000000e+00 : f32
    %58 = vector.broadcast %cst_24 : f32 to vector<64x144xf32>
    %59 = arith.addf %58, %57 : vector<64x144xf32>
    %60 = arith.divf %58, %59 : vector<64x144xf32>
    %61 = arith.mulf %55, %60 : vector<64x144xf32>
    %62 = arith.truncf %61 : vector<64x144xf32> to vector<64x144xbf16>
    %63 = vector.extract_strided_slice %62 {offsets = [0, 0], sizes = [32, 144], strides = [1, 1]} : vector<64x144xbf16> to vector<32x144xbf16>
    %cst_25 = arith.constant dense<0.000000e+00> : vector<32x256xf32>
    %64 = tpu.matmul %63, %4, %cst_25 {dimension_numbers = #tpu.dot_dimension_numbers<[1], [0], [0], [1], [0, 0, 1, 1], [], []>} : vector<32x144xbf16>, vector<144x256xbf16>, vector<32x256xf32> -> vector<32x256xf32>
    %65 = vector.extract_strided_slice %62 {offsets = [32, 0], sizes = [32, 144], strides = [1, 1]} : vector<64x144xbf16> to vector<32x144xbf16>
    %cst_26 = arith.constant dense<0.000000e+00> : vector<32x256xf32>
    %66 = tpu.matmul %65, %5, %cst_26 {dimension_numbers = #tpu.dot_dimension_numbers<[1], [0], [0], [1], [0, 0, 1, 1], [], []>} : vector<32x144xbf16>, vector<144x256xbf16>, vector<32x256xf32> -> vector<32x256xf32>
    %67 = arith.addf %64, %66 : vector<32x256xf32>
    %68 = arith.truncf %67 : vector<32x256xf32> to vector<32x256xbf16>
    %cst_27 = arith.constant dense<0.000000e+00> : vector<32x256xf32>
    %69 = tpu.matmul %17, %68, %cst_27 {dimension_numbers = #tpu.dot_dimension_numbers<[1], [0], [0], [1], [0, 0, 1, 1], [], []>} : vector<32x32xbf16>, vector<32x256xbf16>, vector<32x256xf32> -> vector<32x256xf32>
    %70 = vector.broadcast %12 : vector<32x1xf32> to vector<32x256xf32>
    %71 = arith.addf %69, %70 : vector<32x256xf32>
    %72 = arith.mulf %71, %43 : vector<32x256xf32>
    %73 = arith.addf %72, %7 : vector<32x256xf32>
    %c1 = arith.constant 1 : index
    %c0_28 = arith.constant 0 : index
    %c0_29 = arith.constant 0 : index
    %74 = vector.load %arg4[%c1, %c0_28, %c0_29] : memref<2x64x4xf32, #tpu.memory_space<vmem>>, vector<1x64x4xf32>
    %75 = vector.shape_cast %74 : vector<1x64x4xf32> to vector<64x4xf32>
    %76 = vector.extract_strided_slice %75 {offsets = [0, 0], sizes = [32, 1], strides = [1, 1]} : vector<64x4xf32> to vector<32x1xf32>
    %77 = vector.extract_strided_slice %75 {offsets = [0, 1], sizes = [32, 1], strides = [1, 1]} : vector<64x4xf32> to vector<32x1xf32>
    %78 = vector.extract_strided_slice %75 {offsets = [0, 2], sizes = [32, 1], strides = [1, 1]} : vector<64x4xf32> to vector<32x1xf32>
    %79 = vector.extract_strided_slice %75 {offsets = [0, 3], sizes = [64, 1], strides = [1, 1]} : vector<64x4xf32> to vector<64x1xf32>
    %c1_30 = arith.constant 1 : index
    %c0_31 = arith.constant 0 : index
    %c0_32 = arith.constant 0 : index
    %80 = vector.load %arg5[%c1_30, %c0_31, %c0_32] : memref<2x64x32xbf16, #tpu.memory_space<vmem>>, vector<1x64x32xbf16>
    %81 = vector.shape_cast %80 : vector<1x64x32xbf16> to vector<64x32xbf16>
    %82 = vector.extract_strided_slice %81 {offsets = [0, 0], sizes = [32, 32], strides = [1, 1]} : vector<64x32xbf16> to vector<32x32xbf16>
    %83 = vector.extract_strided_slice %81 {offsets = [32, 0], sizes = [32, 32], strides = [1, 1]} : vector<64x32xbf16> to vector<32x32xbf16>
    %c1_33 = arith.constant 1 : index
    %c0_34 = arith.constant 0 : index
    %c0_35 = arith.constant 0 : index
    %84 = vector.load %arg6[%c1_33, %c0_34, %c0_35] : memref<2x128x32xbf16, #tpu.memory_space<vmem>>, vector<1x128x32xbf16>
    %85 = vector.shape_cast %84 : vector<1x128x32xbf16> to vector<128x32xbf16>
    %86 = vector.extract_strided_slice %85 {offsets = [0, 0], sizes = [64, 32], strides = [1, 1]} : vector<128x32xbf16> to vector<64x32xbf16>
    %87 = vector.extract_strided_slice %85 {offsets = [64, 0], sizes = [64, 32], strides = [1, 1]} : vector<128x32xbf16> to vector<64x32xbf16>
    %cst_36 = arith.constant dense<0.000000e+00> : vector<256xf32>
    %88 = vector.multi_reduction <add>, %73, %cst_36 [0] : vector<32x256xf32> to vector<256xf32>
    %89 = vector.shape_cast %88 : vector<256xf32> to vector<1x256xf32>
    %cst_37 = arith.constant 3.200000e+01 : f32
    %90 = vector.broadcast %cst_37 : f32 to vector<1x256xf32>
    %91 = arith.divf %89, %90 : vector<1x256xf32>
    %92 = vector.broadcast %91 : vector<1x256xf32> to vector<32x256xf32>
    %93 = arith.subf %73, %92 : vector<32x256xf32>
    %94 = arith.mulf %93, %93 : vector<32x256xf32>
    %cst_38 = arith.constant dense<0.000000e+00> : vector<256xf32>
    %95 = vector.multi_reduction <add>, %94, %cst_38 [0] : vector<32x256xf32> to vector<256xf32>
    %96 = vector.shape_cast %95 : vector<256xf32> to vector<1x256xf32>
    %cst_39 = arith.constant 3.200000e+01 : f32
    %97 = vector.broadcast %cst_39 : f32 to vector<1x256xf32>
    %98 = arith.divf %96, %97 : vector<1x256xf32>
    %99 = vector.broadcast %91 : vector<1x256xf32> to vector<32x256xf32>
    %100 = arith.subf %73, %99 : vector<32x256xf32>
    %cst_40 = arith.constant 9.99999974E-6 : f32
    %101 = vector.broadcast %cst_40 : f32 to vector<1x256xf32>
    %102 = arith.addf %98, %101 : vector<1x256xf32>
    %103 = math.rsqrt %102 : vector<1x256xf32>
    %104 = vector.broadcast %103 : vector<1x256xf32> to vector<32x256xf32>
    %105 = arith.mulf %100, %104 : vector<32x256xf32>
    %106 = vector.broadcast %76 : vector<32x1xf32> to vector<32x256xf32>
    %107 = arith.mulf %105, %106 : vector<32x256xf32>
    %108 = vector.broadcast %77 : vector<32x1xf32> to vector<32x256xf32>
    %109 = arith.addf %107, %108 : vector<32x256xf32>
    %110 = arith.truncf %109 : vector<32x256xf32> to vector<32x256xbf16>
    %cst_41 = arith.constant dense<0.000000e+00> : vector<32x256xf32>
    %111 = tpu.matmul %82, %110, %cst_41 {dimension_numbers = #tpu.dot_dimension_numbers<[1], [0], [0], [1], [0, 0, 1, 1], [], []>} : vector<32x32xbf16>, vector<32x256xbf16>, vector<32x256xf32> -> vector<32x256xf32>
    %112 = arith.truncf %111 : vector<32x256xf32> to vector<32x256xbf16>
    %cst_42 = arith.constant dense<0.000000e+00> : vector<32x144xf32>
    %113 = tpu.matmul %112, %1, %cst_42 {dimension_numbers = #tpu.dot_dimension_numbers<[1], [0], [0], [1], [0, 0, 1, 1], [], []>} : vector<32x256xbf16>, vector<256x144xbf16>, vector<32x144xf32> -> vector<32x144xf32>
    %cst_43 = arith.constant dense<0.000000e+00> : vector<32x144xf32>
    %114 = tpu.matmul %112, %2, %cst_43 {dimension_numbers = #tpu.dot_dimension_numbers<[1], [0], [0], [1], [0, 0, 1, 1], [], []>} : vector<32x256xbf16>, vector<256x144xbf16>, vector<32x144xf32> -> vector<32x144xf32>
    %115 = arith.truncf %113 : vector<32x144xf32> to vector<32x144xbf16>
    %cst_44 = arith.constant dense<0.000000e+00> : vector<64x144xf32>
    %116 = tpu.matmul %86, %115, %cst_44 {dimension_numbers = #tpu.dot_dimension_numbers<[1], [0], [0], [1], [0, 0, 1, 1], [], []>} : vector<64x32xbf16>, vector<32x144xbf16>, vector<64x144xf32> -> vector<64x144xf32>
    %117 = arith.truncf %114 : vector<32x144xf32> to vector<32x144xbf16>
    %cst_45 = arith.constant dense<0.000000e+00> : vector<64x144xf32>
    %118 = tpu.matmul %87, %117, %cst_45 {dimension_numbers = #tpu.dot_dimension_numbers<[1], [0], [0], [1], [0, 0, 1, 1], [], []>} : vector<64x32xbf16>, vector<32x144xbf16>, vector<64x144xf32> -> vector<64x144xf32>
    %119 = arith.addf %116, %118 : vector<64x144xf32>
    %120 = vector.broadcast %79 : vector<64x1xf32> to vector<64x144xf32>
    %121 = arith.addf %119, %120 : vector<64x144xf32>
    %122 = arith.negf %121 : vector<64x144xf32>
    %123 = math.exp %122 : vector<64x144xf32>
    %cst_46 = arith.constant 1.000000e+00 : f32
    %124 = vector.broadcast %cst_46 : f32 to vector<64x144xf32>
    %125 = arith.addf %124, %123 : vector<64x144xf32>
    %126 = arith.divf %124, %125 : vector<64x144xf32>
    %127 = arith.mulf %121, %126 : vector<64x144xf32>
    %128 = arith.truncf %127 : vector<64x144xf32> to vector<64x144xbf16>
    %129 = vector.extract_strided_slice %128 {offsets = [0, 0], sizes = [32, 144], strides = [1, 1]} : vector<64x144xbf16> to vector<32x144xbf16>
    %cst_47 = arith.constant dense<0.000000e+00> : vector<32x256xf32>
    %130 = tpu.matmul %129, %4, %cst_47 {dimension_numbers = #tpu.dot_dimension_numbers<[1], [0], [0], [1], [0, 0, 1, 1], [], []>} : vector<32x144xbf16>, vector<144x256xbf16>, vector<32x256xf32> -> vector<32x256xf32>
    %131 = vector.extract_strided_slice %128 {offsets = [32, 0], sizes = [32, 144], strides = [1, 1]} : vector<64x144xbf16> to vector<32x144xbf16>
    %cst_48 = arith.constant dense<0.000000e+00> : vector<32x256xf32>
    %132 = tpu.matmul %131, %5, %cst_48 {dimension_numbers = #tpu.dot_dimension_numbers<[1], [0], [0], [1], [0, 0, 1, 1], [], []>} : vector<32x144xbf16>, vector<144x256xbf16>, vector<32x256xf32> -> vector<32x256xf32>
    %133 = arith.addf %130, %132 : vector<32x256xf32>
    %134 = arith.truncf %133 : vector<32x256xf32> to vector<32x256xbf16>
    %cst_49 = arith.constant dense<0.000000e+00> : vector<32x256xf32>
    %135 = tpu.matmul %83, %134, %cst_49 {dimension_numbers = #tpu.dot_dimension_numbers<[1], [0], [0], [1], [0, 0, 1, 1], [], []>} : vector<32x32xbf16>, vector<32x256xbf16>, vector<32x256xf32> -> vector<32x256xf32>
    %136 = vector.broadcast %78 : vector<32x1xf32> to vector<32x256xf32>
    %137 = arith.addf %135, %136 : vector<32x256xf32>
    %138 = arith.mulf %137, %109 : vector<32x256xf32>
    %139 = arith.addf %138, %73 : vector<32x256xf32>
    %c0_50 = arith.constant 0 : index
    %c0_51 = arith.constant 0 : index
    %c0_52 = arith.constant 0 : index
    %140 = vector.load %arg7[%c0_50, %c0_51, %c0_52] : memref<1x32x256xf32, #tpu.memory_space<vmem>>, vector<1x32x256xf32>
    %141 = vector.shape_cast %140 : vector<1x32x256xf32> to vector<32x256xf32>
    %142 = vector.shape_cast %139 : vector<32x256xf32> to vector<1x32x256xf32>
    tpu.vector_store %arg7[%c0_50, %c0_51, %c0_52], %142 {strides = array<i32>} : memref<1x32x256xf32, #tpu.memory_space<vmem>>, vector<1x32x256xf32>,
    return
  }
  func.func @transform_0(%arg0: i32) -> (i32, i32, i32) {
    %c0_i32 = arith.constant 0 : i32
    %c0_i32_0 = arith.constant 0 : i32
    %c0_i32_1 = arith.constant 0 : i32
    return %arg0, %c0_i32, %c0_i32_0 : i32, i32, i32
  }
  func.func @transform_1(%arg0: i32) -> (i32, i32) {
    %c0_i32 = arith.constant 0 : i32
    %c0_i32_0 = arith.constant 0 : i32
    %c0_i32_1 = arith.constant 0 : i32
    return %c0_i32, %c0_i32_0 : i32, i32
  }
  func.func @transform_2(%arg0: i32) -> (i32, i32) {
    %c0_i32 = arith.constant 0 : i32
    %c0_i32_0 = arith.constant 0 : i32
    %c0_i32_1 = arith.constant 0 : i32
    return %c0_i32, %c0_i32_0 : i32, i32
  }
  func.func @transform_3(%arg0: i32) -> (i32, i32, i32) {
    %c0_i32 = arith.constant 0 : i32
    %c0_i32_0 = arith.constant 0 : i32
    %c0_i32_1 = arith.constant 0 : i32
    %c0_i32_2 = arith.constant 0 : i32
    return %c0_i32, %c0_i32_0, %c0_i32_1 : i32, i32, i32
  }
  func.func @transform_4(%arg0: i32) -> (i32, i32, i32) {
    %c0_i32 = arith.constant 0 : i32
    %c0_i32_0 = arith.constant 0 : i32
    %c0_i32_1 = arith.constant 0 : i32
    %c0_i32_2 = arith.constant 0 : i32
    return %c0_i32, %c0_i32_0, %c0_i32_1 : i32, i32, i32
  }
  func.func @transform_5(%arg0: i32) -> (i32, i32, i32) {
    %c0_i32 = arith.constant 0 : i32
    %c0_i32_0 = arith.constant 0 : i32
    %c0_i32_1 = arith.constant 0 : i32
    %c0_i32_2 = arith.constant 0 : i32
    return %c0_i32, %c0_i32_0, %c0_i32_1 : i32, i32, i32
  }
  func.func @transform_6(%arg0: i32) -> (i32, i32, i32) {
    %c0_i32 = arith.constant 0 : i32
    %c0_i32_0 = arith.constant 0 : i32
    %c0_i32_1 = arith.constant 0 : i32
    return %arg0, %c0_i32, %c0_i32_0 : i32, i32, i32
  }
}

</mosaic_0001>

<bundles_post_ra>
// kernel: decoder_forward.1
= control target key start
LH: loop header
LB: loop body
LE: loop exit
PB: predicated region body
PF: predicated region fallthrough
CT: control target
= control target key end

     0   :  { %s4421_s21 = smov 0   ;;  %s6685_s0 = inlined_call_operand.vmem [shape: f32[2,32,256], index: 0, kind: input, shape index: {}]   ;;  %s6686_s1 = inlined_call_operand.vmem [shape: bf16[512,144], index: 1, kind: input, shape index: {}]   ;;  %s6687_s2 = inlined_call_operand.vmem [shape: bf16[288,256], index: 2, kind: input, shape index: {}]   ;;  %s6688_s3 = inlined_call_operand.vmem [shape: f32[2,64,4], index: 3, kind: input, shape index: {}]   ;;  %s6689_s4 = inlined_call_operand.vmem [shape: bf16[2,64,32], index: 4, kind: input, shape index: {}]   ;;  %s6690_s5 = inlined_call_operand.vmem [shape: bf16[2,128,32], index: 5, kind: input, shape index: {}]   ;;  %s6691_s6 = inlined_call_operand.vmem [shape: f32[2,32,256], index: 6, kind: output, shape index: {}]  }
   0x1 LB: > { %s3420_s22 = sadd.s32 4294967295, %s4379_s21   ;;  %p3424_p0 = scmp.ge.s32.totalorder %s4379_s21, 1  ;;  %s4379_s21 = sphi %s4421_s21, %s16_s21  }
   0x2   : > { %p212_p1 = scmp.lt.s32.totalorder %s4379_s21, 3 }
   0x4   : > { %p213_p2 = pnand %p3424_p0, %p212_p1 }
   0x6   : > { %216 = sbr.rel (%p213_p2) target bundleno = 2072 (0x818), region = 44 }
   0xb   : > { %v4432_v0 = vld [vmem:[%s6688_s3 + $0x10] sm:$0xff]  ;;  %v6692_v1 = vmov 1   ;;  %v6694_v2 = vmov 0   ;;  %v4441_v3 = vld [vmem:[%s6688_s3] sm:$0xff]  ;;  %p242_p3 = scmp.lt.s32.totalorder %s3420_s22, 1  ;;  %v364_v4 = vld [vmem:[%s6688_s3 + $0x18] sm:$0xff] }
   0xc   : > { %4198 = vset.pattern.permute.xlu1 %v6692_v1  ;;  %4197 = vset.pattern.permute.xlu0 %v6694_v2  ;;  %v4383_v5 = vmov 32.0   ;;  %v362_v6 = vld [vmem:[%s6688_s3 + $0x8] sm:$0xff]  ;;  %vm552_vm7 = vcmask 261120  }
   0xd   : > { %523 = vperm.xlu1 %4198, %v4432_v0   ;;  %498 = vperm.xlu0 %4197, %v4432_v0   ;;  %s7059_s22 = smov (!%p242_p3, %s3420_s22), 1  ;;  %4221 = vrcp.f32 %v4383_v5 }
   0xe   : > { %4199 = vset.pattern.permute.xlu2 %v6694_v2  ;;  %s4055_s7 = sshll.u32 %s7059_s22, 6 }
   0xf   : > { %488 = vperm.xlu2 %4199, %v4441_v3   ;;  %s4459_s10 = scalar_lea.vmem %s6685_s0, %s4055_s7  ;;  %s6657_s15 = scalar_lea.vmem %s6691_s6, %s4055_s7 }
  0x10   : > { %v353_v9 = vld [vmem:[%s4459_s10] sm:$0xff]  ;;  %v354_v10 = vld [vmem:[%s4459_s10 + $0x8] sm:$0xff]  ;;  %v355_v11 = vld [vmem:[%s4459_s10 + $0x10] sm:$0xff] }
  0x11   : > { %v356_v12 = vld [vmem:[%s4459_s10 + $0x18] sm:$0xff]  ;;  %v393_v13 = vadd.f32 %v355_v11, %v353_v9  ;;  %v357_v14 = vld [vmem:[%s4459_s10 + $0x20] sm:$0xff]  ;;  %v358_v15 = vld [vmem:[%s4459_s10 + $0x28] sm:$0xff] }
  0x12   : > { %v402_v16 = vadd.f32 %v356_v12, %v354_v10  ;;  %v359_v19 = vld [vmem:[%s4459_s10 + $0x30] sm:$0xff]  ;;  %v360_v20 = vld [vmem:[%s4459_s10 + $0x38] sm:$0xff] }
  0x13   : > { %v4222_v7 = vpop.eup %4221  ;;  %v394_v17 = vadd.f32 %v393_v13, %v357_v14 }
  0x14   : > { %v412_v8 = vmul.f32 32.0, %v4222_v7  ;;  %v403_v21 = vadd.f32 %v402_v16, %v358_v15  ;;  %vm416_vm0 = vweird.f32 %v4222_v7 }
  0x15   : > { %527 = vperm.xlu1 %4198, %v364_v4   ;;  %503 = vperm.xlu0 %4197, %v364_v4   ;;  %v395_v22 = vadd.f32 %v394_v17, %v359_v19 }
  0x16   : > { %v413_v18 = vsub.f32 1.0, %v412_v8  ;;  %v404_v23 = vadd.f32 %v403_v21, %v360_v20 }
  0x17   : > { %493 = vperm.xlu2 %4199, %v362_v6   ;;  %v396_v24 = vrot.slane %v395_v22, 4 }
  0x18   : > { %v414_v25 = vmul.f32 %v4222_v7, %v413_v18  ;;  %v405_v26 = vrot.slane %v404_v23, 4 }
  0x19   : > { %v397_v27 = vadd.f32 %v396_v24, %v395_v22 }
  0x1a   : > { %v406_v28 = vadd.f32 %v405_v26, %v404_v23  ;;  %v415_v30 = vadd.f32 %v4222_v7, %v414_v25 }
  0x1b   : > { %v398_v29 = vrot.slane %v397_v27, 2 }
  0x1c   : > { %v407_v31 = vrot.slane %v406_v28, 2  ;;  %v4471_v35 = vsel %vm416_vm0, %v4222_v7, %v415_v30 }
  0x1d   : > { %4200 = vset.pattern.permute.xlu0 %v6692_v1  ;;  %519 = vperm.xlu1 %4198, %v362_v6   ;;  %v399_v32 = vadd.f32 %v398_v29, %v397_v27  ;;  %6796 = vst [vmem:[#allocation2_spill] sm:$0xff] %v4471_v35 }
  0x1e   : > { %515 = vperm.xlu0 %4200, %v4441_v3   ;;  %v408_v33 = vadd.f32 %v407_v31, %v406_v28 }
  0x1f   : > { %v400_v34 = vrot.slane %v399_v32, 1 }
  0x20   : > { %v409_v36 = vrot.slane %v408_v33, 1 }
  0x21   : > { %v401_v37 = vadd.f32 %v400_v34, %v399_v32 }
  0x22   : > { %v410_v38 = vadd.f32 %v409_v36, %v408_v33 }
  0x23   : > { %v418_v39 = vmul.f32 %v4471_v35, %v401_v37 }
  0x24   : > { %v419_v40 = vmul.f32 %v4471_v35, %v410_v38 }
  0x25   : > { %v4475_v41 = vsub.f32 %v353_v9, %v418_v39  ;;  %v4477_v42 = vsub.f32 %v355_v11, %v418_v39  ;;  %v424_v45 = vsub.f32 %v357_v14, %v418_v39  ;;  %v426_v51 = vsub.f32 %v359_v19, %v418_v39 }
  0x26   : > { %v4479_v43 = vsub.f32 %v354_v10, %v419_v40  ;;  %v4481_v44 = vsub.f32 %v356_v12, %v419_v40  ;;  %v425_v46 = vsub.f32 %v358_v15, %v419_v40  ;;  %v427_v52 = vsub.f32 %v360_v20, %v419_v40 }
  0x27   : > { %v428_v47 = vmul.f32 %v4475_v41, %v4475_v41  ;;  %v430_v48 = vmul.f32 %v4477_v42, %v4477_v42  ;;  %v432_v53 = vmul.f32 %v424_v45, %v424_v45  ;;  %v434_v57 = vmul.f32 %v426_v51, %v426_v51 }
  0x28   : > { %v429_v49 = vmul.f32 %v4479_v43, %v4479_v43  ;;  %v431_v50 = vmul.f32 %v4481_v44, %v4481_v44  ;;  %v433_v54 = vmul.f32 %v425_v46, %v425_v46  ;;  %v435_v59 = vmul.f32 %v427_v52, %v427_v52 }
  0x29   : > { %v436_v55 = vadd.f32 %v430_v48, %v428_v47 }
  0x2a   : > { %v445_v56 = vadd.f32 %v431_v50, %v429_v49 }
  0x2b   : > { %v437_v58 = vadd.f32 %v436_v55, %v432_v53  ;;  %v3499_v55 = vld [vmem:[%s6686_s1 + $0x70] sm:$0xf] }
  0x2c   : > { %v446_v60 = vadd.f32 %v445_v56, %v433_v54  ;;  %v4072_v56 = vld [vmem:[%s6686_s1 + $0x74] sm:$0xf0] }
  0x2d   : > { %v438_v61 = vadd.f32 %v437_v58, %v434_v57  ;;  %v4506_v57 = vor.u32 %v4072_v56, %v3499_v55  ;;  %v4088_v58 = vld [vmem:[%s6686_s1 + $0xf4] sm:$0xf0] }
  0x2e   : > { %v447_v62 = vadd.f32 %v446_v60, %v435_v59 }
  0x2f   : > { %v439_v63 = vrot.slane %v438_v61, 4  ;;  %6798 = vst [vmem:[#allocation4_spill] sm:$0xff] %v4506_v57  ;;  %761 = vmatpush.bf16.msra.mxu2 %v4506_v57 }
  0x30   : > { %v448_v4 = vrot.slane %v447_v62, 4 }
  0x31   : > { %v440_v5 = vadd.f32 %v439_v63, %v438_v61 }
  0x32   : > { %v449_v6 = vadd.f32 %v448_v4, %v447_v62 }
  0x33   : > { %v441_v7 = vrot.slane %v440_v5, 2 }
  0x34   : > { %v450_v8 = vrot.slane %v449_v6, 2 }
  0x35   : > { %v442_v9 = vadd.f32 %v441_v7, %v440_v5  ;;  %v4070_v5 = vld [vmem:[%s6686_s1 + $0x64] sm:$0xf0] }
  0x36   : > { %v451_v10 = vadd.f32 %v450_v8, %v449_v6  ;;  %v3555_v6 = vld [vmem:[%s6686_s1 + $0xe0] sm:$0xf]  ;;  %v4086_v7 = vld [vmem:[%s6686_s1 + $0xe4] sm:$0xf0] }
  0x37   : > { %v443_v11 = vrot.slane %v442_v9, 1 }
  0x38   : > { %v452_v12 = vrot.slane %v451_v10, 1 }
  0x39   : > { %v444_v13 = vadd.f32 %v443_v11, %v442_v9  ;;  %v4541_v9 = vor.u32 %v4086_v7, %v3555_v6  ;;  %v4068_v11 = vld [vmem:[%s6686_s1 + $0x54] sm:$0xf0] }
  0x3a   : > { %v453_v14 = vadd.f32 %v452_v12, %v451_v10  ;;  %v3483_v10 = vld [vmem:[%s6686_s1 + $0x50] sm:$0xf] }
  0x3b   : > { %v454_v15 = vmul.f32 %v444_v13, %v4471_v35  ;;  %6804 = vst [vmem:[#allocation10_spill] sm:$0xff] %v4541_v9 }
  0x3c   : > { %v455_v16 = vmul.f32 %v453_v14, %v4471_v35  ;;  %v4071_v14 = vld [vmem:[%s6686_s1 + $0x74] sm:$0xf] }
  0x3d   : > { %v456_v17 = vadd.f32 1e-05, %v454_v15  ;;  %v3547_v15 = vld [vmem:[%s6686_s1 + $0xd0] sm:$0xf] }
  0x3e   : > { %v457_v18 = vadd.f32 1e-05, %v455_v16  ;;  %v4084_v16 = vld [vmem:[%s6686_s1 + $0xd4] sm:$0xf0] }
  0x3f   : > { %4223 = vrsqrt.f32 %v456_v17  ;;  %vm464_vm1 = vweird.f32 %v456_v17 }
  0x40   : > { %4225 = vrsqrt.f32 %v457_v18  ;;  %vm474_vm3 = vweird.f32 %v457_v18 }
  0x45   : > { %v4224_v19 = vpop.eup %4223 }
  0x46   : > { %v4226_v20 = vpop.eup %4225  ;;  %v459_v21 = vmul.f32 %v4224_v19, %v456_v17  ;;  %vm465_vm2 = vweird.f32 %v4224_v19 }
  0x47   : > { %v469_v22 = vmul.f32 %v4226_v20, %v457_v18  ;;  %vm475_vm4 = vweird.f32 %v4226_v20  ;;  %vm466_vm5 = vmor %vm464_vm1, %vm465_vm2 }
  0x48   : > { %v460_v23 = vmul.f32 %v4224_v19, %v459_v21  ;;  %vm476_vm6 = vmor %vm474_vm3, %vm475_vm4  ;;  %v4087_v21 = vld [vmem:[%s6686_s1 + $0xf4] sm:$0xf] }
  0x49   : > { %v470_v24 = vmul.f32 %v4226_v20, %v469_v22  ;;  %v3565_v22 = vld [vmem:[%s6686_s1 + $0xf8] sm:$0xf0] }
  0x4a   : > { %v461_v25 = vmul.f32 0.5, %v460_v23  ;;  %v4568_v23 = vor.u32 %v4068_v11, %v3483_v10  ;;  %v4081_v10 = vld [vmem:[%s6686_s1 + $0xc4] sm:$0xf]  ;;  %v3541_v11 = vld [vmem:[%s6686_s1 + $0xc8] sm:$0xf0] }
  0x4b   : > { %v471_v26 = vmul.f32 0.5, %v470_v24 }
  0x4c   : > { %v462_v27 = vsub.f32 1.5, %v461_v25  ;;  %6805 = vst [vmem:[#allocation11_spill] sm:$0xff] %v4568_v23 }
  0x4d   : > { %v472_v28 = vsub.f32 1.5, %v471_v26 }
  0x4e   : > { %v463_v29 = vmul.f32 %v4224_v19, %v462_v27  ;;  %v4575_v27 = vor.u32 %v4084_v16, %v3547_v15  ;;  %v3469_v15 = vld [vmem:[%s6686_s1 + $0x38] sm:$0xf0]  ;;  %v4079_v16 = vld [vmem:[%s6686_s1 + $0xb4] sm:$0xf] }
  0x4f   : > { %v473_v30 = vmul.f32 %v4226_v20, %v472_v28  ;;  %v3475_v28 = vld [vmem:[%s6686_s1 + $0x40] sm:$0xf] }
  0x50   : > { %v467_v31 = vsel %vm466_vm5, %v4224_v19, %v463_v29  ;;  %6808 = vst [vmem:[#allocation14_spill] sm:$0xff] %v4575_v27  ;;  %v4066_v29 = vld [vmem:[%s6686_s1 + $0x44] sm:$0xf0] }
  0x51   : > { %v477_v32 = vsel %vm476_vm6, %v4226_v20, %v473_v30  ;;  %v482_v37 = vmul.f32 %v467_v31, %v424_v45  ;;  %v484_v39 = vmul.f32 %v467_v31, %v426_v51  ;;  %v3563_v45 = vld [vmem:[%s6686_s1 + $0xf0] sm:$0xf]  ;;  %v3501_v20 = vld [vmem:[%s6686_s1 + $0x78] sm:$0xf0] }
  0x52   : > { %v483_v38 = vmul.f32 %v477_v32, %v425_v46  ;;  %v485_v40 = vmul.f32 %v477_v32, %v427_v52  ;;  %v480_v46 = vmul.f32 %v467_v31, %v4477_v42  ;;  %v481_v51 = vmul.f32 %v477_v32, %v4481_v44  ;;  %v3491_v42 = vld [vmem:[%s6686_s1 + $0x60] sm:$0xf] }
  0x53   : > { %v4517_v62 = vor.u32 %v4088_v58, %v3563_v45  ;;  %v478_v44 = vmul.f32 %v467_v31, %v4475_v41  ;;  %v479_v63 = vmul.f32 %v477_v32, %v4479_v43  ;;  %v4539_v8 = vor.u32 %v4070_v5, %v3491_v42  ;;  %v4080_v58 = vld [vmem:[%s6686_s1 + $0xb4] sm:$0xf0]  ;;  %v3485_v42 = vld [vmem:[%s6686_s1 + $0x58] sm:$0xf0] }
  0x54   : > { %v4587_v32 = vor.u32 %v4071_v14, %v3501_v20  ;;  %v4063_v14 = vld [vmem:[%s6686_s1 + $0x34] sm:$0xf]  ;;  %v4158_v20 = vld [vmem:[%s6689_s4 + $0x8] sm:$0xff] }
  0x55   : > { %6802 = vst [vmem:[#allocation8_spill] sm:$0xff] %v4517_v62  ;;  %780 = vmatpush.bf16.msra.mxu3 %v4517_v62  ;;  %762 = vmatpush.bf16.msra.mxu2 %v4539_v8 }
  0x56   : > { %6803 = vst [vmem:[#allocation9_spill] sm:$0xff] %v4539_v8 }
  0x57   : > { %6811 = vst [vmem:[#allocation17_spill] sm:$0xff] %v4587_v32 }
  0x59   : > { %781 = vmatpush.bf16.msra.mxu3 %v4541_v9  ;;  %763 = vmatpush.bf16.msra.mxu2 %v4568_v23 }
  0x5d   : > { %782 = vmatpush.bf16.msra.mxu3 %v4575_v27 }
  0x69   : > { %v489_v36 = vpop.permute.xlu2 %488 }
  0x6a   : > { %v506_v17 = vmul.f32 %v489_v36, %v478_v44  ;;  %v507_v18 = vmul.f32 %v489_v36, %v479_v63  ;;  %v3539_v36 = vld [vmem:[%s6686_s1 + $0xc0] sm:$0xf]  ;;  %v4083_v44 = vld [vmem:[%s6686_s1 + $0xd4] sm:$0xf]  ;;  %v3549_v63 = vld [vmem:[%s6686_s1 + $0xd8] sm:$0xf0] }
  0x6b   : > { %v4664_v7 = vor.u32 %v4083_v44, %v3549_v63  ;;  %v4075_v63 = vld [vmem:[%s6686_s1 + $0x94] sm:$0xf] }
  0x6d   : > { %6820 = vst [vmem:[#allocation26_spill] sm:$0xff] %v4664_v7 }
  0x71   : > { %v494_v4 = vpop.permute.xlu2 %493 }
  0x72   : > { %v508_v12 = vmul.f32 %v494_v4, %v480_v46  ;;  %v509_v13 = vmul.f32 %v494_v4, %v481_v51  ;;  %v4067_v46 = vld [vmem:[%s6686_s1 + $0x54] sm:$0xf]  ;;  %v3531_v51 = vld [vmem:[%s6686_s1 + $0xb0] sm:$0xf] }
  0x73   : > { %v4658_v5 = vor.u32 %v4080_v58, %v3531_v51  ;;  %v4662_v6 = vor.u32 %v4067_v46, %v3485_v42  ;;  %v4076_v46 = vld [vmem:[%s6686_s1 + $0x94] sm:$0xf0]  ;;  %v4059_v51 = vld [vmem:[%s6686_s1 + $0x14] sm:$0xf]  ;;  %v3453_v58 = vld [vmem:[%s6686_s1 + $0x18] sm:$0xf0] }
  0x74   : > { %v4769_v44 = vor.u32 %v4059_v51, %v3453_v58 }
  0x75   : > { %6818 = vst [vmem:[#allocation24_spill] sm:$0xff] %v4658_v5 }
  0x76   : > { %6819 = vst [vmem:[#allocation25_spill] sm:$0xff] %v4662_v6 }
  0x77   : > { %6831 = vst [vmem:[#allocation37_spill] sm:$0xff] %v4769_v44 }
  0x7f   : > { %v524_v33 = vpop.permute.xlu1 %523  ;;  %v499_v34 = vpop.permute.xlu0 %498 }
  0x80   : > { %v510_v47 = vmul.f32 %v499_v34, %v482_v37  ;;  %v511_v48 = vmul.f32 %v499_v34, %v483_v38  ;;  %v4069_v34 = vld [vmem:[%s6686_s1 + $0x64] sm:$0xf]  ;;  %v4082_v37 = vld [vmem:[%s6686_s1 + $0xc4] sm:$0xf0] }
  0x81   : > { %v4626_v55 = vor.u32 %v4082_v37, %v3539_v36  ;;  %v3461_v36 = vld [vmem:[%s6686_s1 + $0x28] sm:$0xf0] }
  0x82   : > { %v4504_v52 = vadd.f32 %v524_v33, %v510_v47  ;;  %v4513_v60 = vadd.f32 %v524_v33, %v511_v48  ;;  %v4589_v33 = vor.u32 %v4087_v21, %v3565_v22  ;;  %v4085_v47 = vld [vmem:[%s6686_s1 + $0xe4] sm:$0xf]  ;;  %v3557_v48 = vld [vmem:[%s6686_s1 + $0xe8] sm:$0xf0]  ;;  %v3459_v21 = vld [vmem:[%s6686_s1 + $0x20] sm:$0xf] }
  0x83   : > { %6814 = vst [vmem:[#allocation20_spill] sm:$0xff] %v4626_v55  ;;  %v4632_v45 = vor.u32 %v4085_v47, %v3557_v48  ;;  %783 = vmatpush.bf16.msra.mxu3 %v4626_v55  ;;  %v4062_v22 = vld [vmem:[%s6686_s1 + $0x24] sm:$0xf0]  ;;  %v3451_v48 = vld [vmem:[%s6686_s1 + $0x10] sm:$0xf] }
  0x84   : > { %6797 = vst [vmem:[#allocation3_spill] sm:$0xff] %v4504_v52  ;;  %v4148_v55 = vld [vmem:[%s6687_s2 + $0xd4] sm:$0xf0] }
  0x85   : > { %6800 = vst [vmem:[#allocation6_spill] sm:$0xff] %v4513_v60 }
  0x86   : > { %6812 = vst [vmem:[#allocation18_spill] sm:$0xff] %v4589_v33 }
  0x87   : > { %v528_v49 = vpop.permute.xlu1 %527  ;;  %v504_v50 = vpop.permute.xlu0 %503  ;;  %6816 = vst [vmem:[#allocation22_spill] sm:$0xff] %v4632_v45  ;;  %784 = vmatpush.bf16.msra.mxu3 %v4658_v5 }
  0x88   : > { %v512_v53 = vmul.f32 %v504_v50, %v484_v39  ;;  %v513_v54 = vmul.f32 %v504_v50, %v485_v40  ;;  %v3493_v40 = vld [vmem:[%s6686_s1 + $0x68] sm:$0xf0]  ;;  %v4157_v50 = vld [vmem:[%s6689_s4] sm:$0xff] }
  0x89   : > { %v4630_v56 = vor.u32 %v4069_v34, %v3493_v40  ;;  %v4061_v34 = vld [vmem:[%s6686_s1 + $0x24] sm:$0xf]  ;;  %v3525_v40 = vld [vmem:[%s6686_s1 + $0xa8] sm:$0xf0] }
  0x8a   : > { %v4511_v59 = vadd.f32 %v528_v49, %v512_v53  ;;  %v4515_v61 = vadd.f32 %v528_v49, %v513_v54  ;;  %v4614_v49 = vor.u32 %v4066_v29, %v3475_v28  ;;  %v3467_v53 = vld [vmem:[%s6686_s1 + $0x30] sm:$0xf]  ;;  %v4064_v54 = vld [vmem:[%s6686_s1 + $0x34] sm:$0xf0]  ;;  %v4720_v28 = vor.u32 %v4062_v22, %v3459_v21  ;;  %v4078_v29 = vld [vmem:[%s6686_s1 + $0xa4] sm:$0xf0] }
  0x8b   : > { %6815 = vst [vmem:[#allocation21_spill] sm:$0xff] %v4630_v56  ;;  %v4653_v4 = vor.u32 %v4064_v54, %v3467_v53  ;;  %v3515_v53 = vld [vmem:[%s6686_s1 + $0x90] sm:$0xf] }
  0x8c   : > { %6799 = vst [vmem:[#allocation5_spill] sm:$0xff] %v4511_v59  ;;  %v540_v41 = vpack.c.bf16 %v4511_v59, %v4504_v52  ;;  %v541_v43 = vpack.c.bf16 %v4515_v61, %v4513_v60  ;;  %764 = vmatpush.bf16.msra.mxu2 %v4614_v49  ;;  %v4767_v42 = vor.u32 %v4076_v46, %v3515_v53  ;;  %v4103_v53 = vld [vmem:[%s6686_s1 + $0x174] sm:$0xf]  ;;  %v3629_v46 = vld [vmem:[%s6686_s1 + $0x178] sm:$0xf0] }
  0x8d   : > { %6801 = vst [vmem:[#allocation7_spill] sm:$0xff] %v4515_v61  ;;  %v4841_v58 = vor.u32 %v4103_v53, %v3629_v46  ;;  %v3611_v53 = vld [vmem:[%s6686_s1 + $0x150] sm:$0xf] }
  0x8e   : > { %565 = vmatpush.bf16.msra.mxu0 %v540_v41  ;;  %584 = vmatpush.bf16.msra.mxu1 %v541_v43  ;;  %6813 = vst [vmem:[#allocation19_spill] sm:$0xff] %v4614_v49  ;;  %v4065_v41 = vld [vmem:[%s6686_s1 + $0x44] sm:$0xf]  ;;  %v3477_v43 = vld [vmem:[%s6686_s1 + $0x48] sm:$0xf0] }
  0x8f   : > { %v520_v19 = vpop.permute.xlu1 %519  ;;  %6817 = vst [vmem:[#allocation23_spill] sm:$0xff] %v4653_v4  ;;  %v3795_v49 = vld [vmem:[%s6687_s2 + $0xd0] sm:$0xf] }
  0x90   : > { %v4570_v24 = vadd.f32 %v520_v19, %v508_v12  ;;  %v4572_v25 = vadd.f32 %v520_v19, %v509_v13  ;;  %v516_v26 = vpop.permute.xlu0 %515  ;;  %765 = vmatpush.bf16.msra.mxu2 %v4653_v4  ;;  %v4682_v12 = vor.u32 %v4065_v41, %v3477_v43  ;;  %v4684_v13 = vor.u32 %v4081_v10, %v3541_v11  ;;  %v3517_v41 = vld [vmem:[%s6686_s1 + $0x98] sm:$0xf0]  ;;  %v3443_v10 = vld [vmem:[%s6686_s1] sm:$0xf]  ;;  %v4058_v11 = vld [vmem:[%s6686_s1 + $0x4] sm:$0xf0] }
  0x91   : > { %v4583_v30 = vadd.f32 %v516_v26, %v506_v17  ;;  %v4585_v31 = vadd.f32 %v516_v26, %v507_v18  ;;  %v3533_v17 = vld [vmem:[%s6686_s1 + $0xb8] sm:$0xf0]  ;;  %v4700_v18 = vor.u32 %v4063_v14, %v3469_v15  ;;  %v3523_v26 = vld [vmem:[%s6686_s1 + $0xa0] sm:$0xf]  ;;  %6825 = vst [vmem:[#allocation31_spill] sm:$0xff] %v4720_v28  ;;  %v4777_v43 = vor.u32 %v4075_v63, %v3517_v41 }
  0x92   : > { %6806 = vst [vmem:[#allocation12_spill] sm:$0xff] %v4570_v24  ;;  %v4702_v19 = vor.u32 %v4079_v16, %v3533_v17  ;;  %v4731_v37 = vor.u32 %v4078_v29, %v3523_v26  ;;  %v3507_v14 = vld [vmem:[%s6686_s1 + $0x80] sm:$0xf]  ;;  %v4792_v15 = vor.u32 %v4058_v11, %v3443_v10  ;;  %v4074_v16 = vld [vmem:[%s6686_s1 + $0x84] sm:$0xf0] }
  0x93   : > { %6807 = vst [vmem:[#allocation13_spill] sm:$0xff] %v4572_v25  ;;  %v538_v38 = vpack.c.bf16 %v4570_v24, %v4583_v30  ;;  %v539_v39 = vpack.c.bf16 %v4572_v25, %v4585_v31  ;;  %v4057_v17 = vld [vmem:[%s6686_s1 + $0x4] sm:$0xf]  ;;  %v4803_v21 = vor.u32 %v4074_v16, %v3507_v14  ;;  %v3509_v29 = vld [vmem:[%s6686_s1 + $0x88] sm:$0xf0] }
  0x94   : > { %6809 = vst [vmem:[#allocation15_spill] sm:$0xff] %v4583_v30  ;;  %766 = vmatpush.bf16.msra.mxu2 %v4720_v28  ;;  %785 = vmatpush.bf16.msra.mxu3 %v4731_v37  ;;  %v4073_v26 = vld [vmem:[%s6686_s1 + $0x84] sm:$0xf]  ;;  %v4119_v63 = vld [vmem:[%s6686_s1 + $0x1f4] sm:$0xf] }
  0x95   : > { %6810 = vst [vmem:[#allocation16_spill] sm:$0xff] %v4585_v31  ;;  %566 = vmatpush.bf16.msra.mxu0 %v538_v38  ;;  %585 = vmatpush.bf16.msra.mxu1 %v539_v39  ;;  %v4733_v38 = vor.u32 %v4061_v34, %v3461_v36  ;;  %v4077_v39 = vld [vmem:[%s6686_s1 + $0xa4] sm:$0xf]  ;;  %v4814_v34 = vor.u32 %v4073_v26, %v3509_v29  ;;  %v3627_v36 = vld [vmem:[%s6686_s1 + $0x170] sm:$0xf] }
  0x96   : > { %6821 = vst [vmem:[#allocation27_spill] sm:$0xff] %v4682_v12  ;;  %v4742_v47 = vor.u32 %v4077_v39, %v3525_v40  ;;  %v4104_v39 = vld [vmem:[%s6686_s1 + $0x174] sm:$0xf0]  ;;  %v3691_v40 = vld [vmem:[%s6686_s1 + $0x1f0] sm:$0xf] }
  0x97   : > { %6822 = vst [vmem:[#allocation28_spill] sm:$0xff] %v4684_v13  ;;  %v3693_v41 = vld [vmem:[%s6686_s1 + $0x1f8] sm:$0xf0]  ;;  %v3619_v11 = vld [vmem:[%s6686_s1 + $0x160] sm:$0xf] }
  0x98   : > { %3437 = vmatmul.msk.bf16.vlgmr.msra.gmra.mxu0 %vm552_vm7, %v4157_v50  ;;  %3439 = vmatmul.msk.bf16.vlgmr.msra.gmra.mxu1 %vm552_vm7, %v4157_v50  ;;  %6823 = vst [vmem:[#allocation29_spill] sm:$0xff] %v4700_v18  ;;  %v4060_v50 = vld [vmem:[%s6686_s1 + $0x14] sm:$0xf0]  ;;  %v4850_v10 = vor.u32 %v4119_v63, %v3693_v41  ;;  %v4102_v14 = vld [vmem:[%s6686_s1 + $0x164] sm:$0xf0] }
  0x99   : > { %799 = vmatpush.bf16.msrb.mxu0 %v4587_v32  ;;  %818 = vmatpush.bf16.msrb.mxu1 %v4589_v33  ;;  %6824 = vst [vmem:[#allocation30_spill] sm:$0xff] %v4702_v19  ;;  %v4755_v54 = vor.u32 %v4060_v50, %v3451_v48  ;;  %v4828_v48 = vor.u32 %v4104_v39, %v3627_v36  ;;  %v4120_v50 = vld [vmem:[%s6686_s1 + $0x1f4] sm:$0xf0]  ;;  %v3683_v16 = vld [vmem:[%s6686_s1 + $0x1e0] sm:$0xf] }
  0x9a   : > { %6826 = vst [vmem:[#allocation32_spill] sm:$0xff] %v4731_v37  ;;  %786 = vmatpush.bf16.msra.mxu3 %v4767_v42  ;;  %v4839_v51 = vor.u32 %v4120_v50, %v3691_v40  ;;  %v4101_v26 = vld [vmem:[%s6686_s1 + $0x164] sm:$0xf]  ;;  %v3621_v29 = vld [vmem:[%s6686_s1 + $0x168] sm:$0xf0] }
  0x9b   : > { %6827 = vst [vmem:[#allocation33_spill] sm:$0xff] %v4733_v38  ;;  %767 = vmatpush.bf16.msra.mxu2 %v4755_v54  ;;  %v4877_v39 = vor.u32 %v4101_v26, %v3621_v29  ;;  %v4117_v40 = vld [vmem:[%s6686_s1 + $0x1e4] sm:$0xf]  ;;  %v3685_v50 = vld [vmem:[%s6686_s1 + $0x1e8] sm:$0xf0] }
  0x9c   : > { %6828 = vst [vmem:[#allocation34_spill] sm:$0xff] %v4742_v47  ;;  %v4889_v46 = vor.u32 %v4117_v40, %v3685_v50  ;;  %v4100_v63 = vld [vmem:[%s6686_s1 + $0x154] sm:$0xf0]  ;;  %v3675_v41 = vld [vmem:[%s6686_s1 + $0x1d0] sm:$0xf] }
  0x9d   : > { %800 = vmatpush.bf16.msrb.mxu0 %v4630_v56  ;;  %819 = vmatpush.bf16.msrb.mxu1 %v4632_v45  ;;  %6829 = vst [vmem:[#allocation35_spill] sm:$0xff] %v4755_v54  ;;  %v3613_v26 = vld [vmem:[%s6686_s1 + $0x158] sm:$0xf0]  ;;  %v4115_v29 = vld [vmem:[%s6686_s1 + $0x1d4] sm:$0xf] }
  0x9e   : > { %6830 = vst [vmem:[#allocation36_spill] sm:$0xff] %v4767_v42  ;;  %787 = vmatpush.bf16.msra.mxu3 %v4803_v21  ;;  %v3677_v50 = vld [vmem:[%s6686_s1 + $0x1d8] sm:$0xf0]  ;;  %v4149_v28 = vld [vmem:[%s6687_s2 + $0xe4] sm:$0xf] }
  0x9f   : > { %6832 = vst [vmem:[#allocation38_spill] sm:$0xff] %v4777_v43  ;;  %768 = vmatpush.bf16.msra.mxu2 %v4792_v15 }
  0xa0   : > { %6833 = vst [vmem:[#allocation39_spill] sm:$0xff] %v4792_v15 }
  0xa1   : > { %801 = vmatpush.bf16.msrb.mxu0 %v4662_v6  ;;  %820 = vmatpush.bf16.msrb.mxu1 %v4664_v7  ;;  %6834 = vst [vmem:[#allocation40_spill] sm:$0xff] %v4803_v21 }
  0xa2   : > { %6836 = vst [vmem:[#allocation42_spill] sm:$0xff] %v4814_v34  ;;  %1016 = vmatpush.bf16.msrb.mxu3 %v4839_v51 }
  0xa3   : > { %6837 = vst [vmem:[#allocation43_spill] sm:$0xff] %v4828_v48  ;;  %997 = vmatpush.bf16.msrb.mxu2 %v4828_v48 }
  0xa4   : > { %6838 = vst [vmem:[#allocation44_spill] sm:$0xff] %v4839_v51 }
  0xa5   : > { %802 = vmatpush.bf16.msrb.mxu0 %v4682_v12  ;;  %821 = vmatpush.bf16.msrb.mxu1 %v4684_v13  ;;  %6839 = vst [vmem:[#allocation45_spill] sm:$0xff] %v4841_v58 }
  0xa6   : > { %6840 = vst [vmem:[#allocation46_spill] sm:$0xff] %v4850_v10 }
  0xa7   : > { %6843 = vst [vmem:[#allocation49_spill] sm:$0xff] %v4877_v39 }
  0xa8   : > { %3438 = vmatmul.msk.bf16.gmra.mxu0 %vm552_vm7, %v4158_v20  ;;  %3440 = vmatmul.msk.bf16.gmra.mxu1 %vm552_vm7, %v4158_v20  ;;  %v3445_v20 = vld [vmem:[%s6686_s1 + $0x8] sm:$0xf0]  ;;  %6844 = vst [vmem:[#allocation50_spill] sm:$0xff] %v4889_v46 }
  0xa9   : > { %803 = vmatpush.bf16.msrb.mxu0 %v4700_v18  ;;  %822 = vmatpush.bf16.msrb.mxu1 %v4702_v19  ;;  %v4805_v22 = vor.u32 %v4057_v17, %v3445_v20  ;;  %v4864_v17 = vor.u32 %v4102_v14, %v3619_v11  ;;  %v4118_v20 = vld [vmem:[%s6686_s1 + $0x1e4] sm:$0xf0]  ;;  %v4116_v11 = vld [vmem:[%s6686_s1 + $0x1d4] sm:$0xf0]  ;;  %v4902_v14 = vor.u32 %v4100_v63, %v3611_v53  ;;  %v3603_v63 = vld [vmem:[%s6686_s1 + $0x140] sm:$0xf] }
  0xaa   : > { %v4875_v36 = vor.u32 %v4118_v20, %v3683_v16  ;;  %v4904_v16 = vor.u32 %v4116_v11, %v3675_v41  ;;  %v4099_v20 = vld [vmem:[%s6686_s1 + $0x154] sm:$0xf]  ;;  %v4921_v53 = vor.u32 %v4115_v29, %v3677_v50  ;;  %v4098_v41 = vld [vmem:[%s6686_s1 + $0x144] sm:$0xf0]  ;;  %v3667_v11 = vld [vmem:[%s6686_s1 + $0x1c0] sm:$0xf] }
  0xab   : > { %6835 = vst [vmem:[#allocation41_spill] sm:$0xff] %v4805_v22  ;;  %998 = vmatpush.bf16.msrb.mxu2 %v4864_v17  ;;  %v4916_v40 = vor.u32 %v4099_v20, %v3613_v26  ;;  %v4936_v20 = vor.u32 %v4098_v41, %v3603_v63  ;;  %v4114_v26 = vld [vmem:[%s6686_s1 + $0x1c4] sm:$0xf0]  ;;  %v4097_v29 = vld [vmem:[%s6686_s1 + $0x144] sm:$0xf] }
  0xac   : > { %6841 = vst [vmem:[#allocation47_spill] sm:$0xff] %v4864_v17  ;;  %1017 = vmatpush.bf16.msrb.mxu3 %v4875_v36  ;;  %v3605_v50 = vld [vmem:[%s6686_s1 + $0x148] sm:$0xf0]  ;;  %v4947_v1 = vor.u32 %v4114_v26, %v3667_v11  ;;  %v4113_v63 = vld [vmem:[%s6686_s1 + $0x1c4] sm:$0xf] }
  0xad   : > { %804 = vmatpush.bf16.msrb.mxu0 %v4733_v38  ;;  %823 = vmatpush.bf16.msrb.mxu1 %v4742_v47  ;;  %6842 = vst [vmem:[#allocation48_spill] sm:$0xff] %v4875_v36  ;;  %v4949_v2 = vor.u32 %v4097_v29, %v3605_v50  ;;  %v3669_v41 = vld [vmem:[%s6686_s1 + $0x1c8] sm:$0xf0]  ;;  %v3595_v11 = vld [vmem:[%s6686_s1 + $0x130] sm:$0xf] }
  0xae   : > { %6845 = vst [vmem:[#allocation51_spill] sm:$0xff] %v4902_v14  ;;  %v4096_v26 = vld [vmem:[%s6686_s1 + $0x134] sm:$0xf0]  ;;  %v3659_v29 = vld [vmem:[%s6686_s1 + $0x1b0] sm:$0xf] }
  0xaf   : > { %6846 = vst [vmem:[#allocation52_spill] sm:$0xff] %v4904_v16  ;;  %999 = vmatpush.bf16.msrb.mxu2 %v4902_v14  ;;  %v4972_v50 = vor.u32 %v4096_v26, %v3595_v11  ;;  %v4111_v11 = vld [vmem:[%s6686_s1 + $0x1b4] sm:$0xf]  ;;  %v3661_v26 = vld [vmem:[%s6686_s1 + $0x1b8] sm:$0xf0] }
  0xb0   : > { %6847 = vst [vmem:[#allocation53_spill] sm:$0xff] %v4916_v40  ;;  %1018 = vmatpush.bf16.msrb.mxu3 %v4904_v16  ;;  %v4090_v38 = vld [vmem:[%s6686_s1 + $0x104] sm:$0xf0]  ;;  %v3635_v19 = vld [vmem:[%s6686_s1 + $0x180] sm:$0xf] }
  0xb1   : > { %805 = vmatpush.bf16.msrb.mxu0 %v4769_v44  ;;  %824 = vmatpush.bf16.msrb.mxu1 %v4777_v43  ;;  %6848 = vst [vmem:[#allocation54_spill] sm:$0xff] %v4921_v53  ;;  %v3645_v44 = vld [vmem:[%s6686_s1 + $0x198] sm:$0xf0] }
  0xb2   : > { %6849 = vst [vmem:[#allocation55_spill] sm:$0xff] %v4936_v20 }
  0xb3   : > { %6850 = vst [vmem:[#allocation56_spill] sm:$0xff] %v4947_v1  ;;  %1000 = vmatpush.bf16.msrb.mxu2 %v4936_v20 }
  0xb4   : > { %6851 = vst [vmem:[#allocation57_spill] sm:$0xff] %v4949_v2  ;;  %1019 = vmatpush.bf16.msrb.mxu3 %v4947_v1 }
  0xb5   : > { %806 = vmatpush.bf16.msrb.mxu0 %v4805_v22  ;;  %825 = vmatpush.bf16.msrb.mxu1 %v4814_v34  ;;  %6853 = vst [vmem:[#allocation59_spill] sm:$0xff] %v4972_v50  ;;  %v4109_v34 = vld [vmem:[%s6686_s1 + $0x1a4] sm:$0xf] }
  0xb7   : > { %1001 = vmatpush.bf16.msrb.mxu2 %v4972_v50 }
  0xb9   : > { %1035 = vmatpush.bf16.msra.mxu0 %v4841_v58  ;;  %1054 = vmatpush.bf16.msra.mxu1 %v4850_v10  ;;  %v3589_v10 = vld [vmem:[%s6686_s1 + $0x128] sm:$0xf0] }
  0xbd   : > { %1036 = vmatpush.bf16.msra.mxu0 %v4877_v39  ;;  %1055 = vmatpush.bf16.msra.mxu1 %v4889_v46  ;;  %v4997_v39 = vor.u32 %v4111_v11, %v3661_v26  ;;  %v4093_v26 = vld [vmem:[%s6686_s1 + $0x124] sm:$0xf] }
  0xbe   : > { %v5024_v58 = vor.u32 %v4093_v26, %v3589_v10  ;;  %v3643_v10 = vld [vmem:[%s6686_s1 + $0x190] sm:$0xf]  ;;  %v4108_v26 = vld [vmem:[%s6686_s1 + $0x194] sm:$0xf0] }
  0xbf   : > { %6856 = vst [vmem:[#allocation62_spill] sm:$0xff] %v4997_v39  ;;  %v5060_v47 = vor.u32 %v4108_v26, %v3643_v10  ;;  %v4089_v10 = vld [vmem:[%s6686_s1 + $0x104] sm:$0xf]  ;;  %v3573_v26 = vld [vmem:[%s6686_s1 + $0x108] sm:$0xf0] }
  0xc0   : > { %6859 = vst [vmem:[#allocation65_spill] sm:$0xff] %v5024_v58 }
  0xc1   : > { %1037 = vmatpush.bf16.msra.mxu0 %v4916_v40  ;;  %1056 = vmatpush.bf16.msra.mxu1 %v4921_v53  ;;  %v4958_v53 = vor.u32 %v4113_v63, %v3669_v41  ;;  %v4112_v63 = vld [vmem:[%s6686_s1 + $0x1b4] sm:$0xf0]  ;;  %v4095_v41 = vld [vmem:[%s6686_s1 + $0x134] sm:$0xf]  ;;  %6862 = vst [vmem:[#allocation68_spill] sm:$0xff] %v5060_v47 }
  0xc2   : > { %v4983_v40 = vor.u32 %v4112_v63, %v3659_v29  ;;  %v3651_v29 = vld [vmem:[%s6686_s1 + $0x1a0] sm:$0xf]  ;;  %v4110_v63 = vld [vmem:[%s6686_s1 + $0x1a4] sm:$0xf0] }
  0xc3   : > { %6852 = vst [vmem:[#allocation58_spill] sm:$0xff] %v4958_v53  ;;  %v5012_v11 = vor.u32 %v4110_v63, %v3651_v29  ;;  %v4092_v29 = vld [vmem:[%s6686_s1 + $0x114] sm:$0xf0] }
  0xc4   : > { %6854 = vst [vmem:[#allocation60_spill] sm:$0xff] %v4983_v40  ;;  %1020 = vmatpush.bf16.msrb.mxu3 %v4983_v40 }
  0xc5   : > { %1038 = vmatpush.bf16.msra.mxu0 %v4949_v2  ;;  %1057 = vmatpush.bf16.msra.mxu1 %v4958_v53  ;;  %v3597_v2 = vld [vmem:[%s6686_s1 + $0x138] sm:$0xf0]  ;;  %v3587_v53 = vld [vmem:[%s6686_s1 + $0x120] sm:$0xf]  ;;  %6858 = vst [vmem:[#allocation64_spill] sm:$0xff] %v5012_v11 }
  0xc6   : > { %v4985_v46 = vor.u32 %v4095_v41, %v3597_v2  ;;  %v4094_v2 = vld [vmem:[%s6686_s1 + $0x124] sm:$0xf0] }
  0xc7   : > { %v5010_v41 = vor.u32 %v4094_v2, %v3587_v53  ;;  %v3653_v53 = vld [vmem:[%s6686_s1 + $0x1a8] sm:$0xf0]  ;;  %v3579_v2 = vld [vmem:[%s6686_s1 + $0x110] sm:$0xf] }
  0xc8   : > { %6855 = vst [vmem:[#allocation61_spill] sm:$0xff] %v4985_v46  ;;  %v5035_v22 = vor.u32 %v4109_v34, %v3653_v53  ;;  %v5047_v43 = vor.u32 %v4092_v29, %v3579_v2  ;;  %v3581_v34 = vld [vmem:[%s6686_s1 + $0x118] sm:$0xf0]  ;;  %v4107_v53 = vld [vmem:[%s6686_s1 + $0x194] sm:$0xf]  ;;  %1021 = vmatpush.bf16.msrb.mxu3 %v5012_v11 }
  0xc9   : > { %1039 = vmatpush.bf16.msra.mxu0 %v4985_v46  ;;  %6857 = vst [vmem:[#allocation63_spill] sm:$0xff] %v5010_v41  ;;  %1058 = vmatpush.bf16.msra.mxu1 %v4997_v39  ;;  %v4091_v39 = vld [vmem:[%s6686_s1 + $0x114] sm:$0xf]  ;;  %v3571_v29 = vld [vmem:[%s6686_s1 + $0x100] sm:$0xf]  ;;  %v5074_v18 = vor.u32 %v4107_v53, %v3645_v44  ;;  %v5092_v53 = vor.u32 %v4089_v10, %v3573_v26 }
  0xca   : > { %6860 = vst [vmem:[#allocation66_spill] sm:$0xff] %v5035_v22  ;;  %1002 = vmatpush.bf16.msrb.mxu2 %v5010_v41  ;;  %v5062_v2 = vor.u32 %v4091_v39, %v3581_v34  ;;  %v4106_v39 = vld [vmem:[%s6686_s1 + $0x184] sm:$0xf0]  ;;  %v5086_v34 = vor.u32 %v4090_v38, %v3571_v29 }
  0xcb   : > { %6861 = vst [vmem:[#allocation67_spill] sm:$0xff] %v5047_v43  ;;  %v5090_v44 = vor.u32 %v4106_v39, %v3635_v19 }
  0xcc   : > { %6863 = vst [vmem:[#allocation69_spill] sm:$0xff] %v5062_v2  ;;  %1022 = vmatpush.bf16.msrb.mxu3 %v5060_v47 }
  0xcd   : > { %1040 = vmatpush.bf16.msra.mxu0 %v5024_v58  ;;  %1059 = vmatpush.bf16.msra.mxu1 %v5035_v22  ;;  %6864 = vst [vmem:[#allocation70_spill] sm:$0xff] %v5074_v18  ;;  %v4105_v22 = vld [vmem:[%s6686_s1 + $0x184] sm:$0xf]  ;;  %v3637_v58 = vld [vmem:[%s6686_s1 + $0x188] sm:$0xf0] }
  0xce   : > { %1003 = vmatpush.bf16.msrb.mxu2 %v5047_v43  ;;  %6865 = vst [vmem:[#allocation71_spill] sm:$0xff] %v5086_v34  ;;  %v5102_v19 = vor.u32 %v4105_v22, %v3637_v58 }
  0xcf   : > { %6866 = vst [vmem:[#allocation72_spill] sm:$0xff] %v5090_v44 }
  0xd0   : > { %6867 = vst [vmem:[#allocation73_spill] sm:$0xff] %v5092_v53  ;;  %1023 = vmatpush.bf16.msrb.mxu3 %v5090_v44 }
  0xd1   : > { %1041 = vmatpush.bf16.msra.mxu0 %v5062_v2  ;;  %1060 = vmatpush.bf16.msra.mxu1 %v5074_v18  ;;  %6868 = vst [vmem:[#allocation74_spill] sm:$0xff] %v5102_v19 }
  0xd2   : > { %1004 = vmatpush.bf16.msrb.mxu2 %v5086_v34 }
  0xd5   : > { %1042 = vmatpush.bf16.msra.mxu0 %v5092_v53  ;;  %1061 = vmatpush.bf16.msra.mxu1 %v5102_v19 }
 0x115   : > { %v568_v63 = vpop.f32.mrf.mxu0  ;;  %v587_v46 = vpop.f32.mrf.mxu1 }
 0x11d   : > { %v570_v38 = vpop.f32.mrf.mxu0  ;;  %v589_v29 = vpop.f32.mrf.mxu1 }
 0x11e   : > { %v597_v13 = vpack.c.bf16 %v570_v38, %v568_v63  ;;  %v598_v12 = vpack.c.bf16 %v589_v29, %v587_v46 }
 0x120   : > { %769 = vmatmul.bf16.vlgmr.msra.gmra.mxu2 %v597_v13  ;;  %788 = vmatmul.bf16.vlgmr.msra.gmra.mxu3 %v598_v12 }
 0x121   : > { %807 = vmatmul.bf16.vlgmr.msrb.gmra.mxu0 %v597_v13  ;;  %826 = vmatmul.bf16.vlgmr.msrb.gmra.mxu1 %v598_v12 }
 0x125   : > { %v573_v39 = vpop.f32.mrf.mxu0  ;;  %v592_v10 = vpop.f32.mrf.mxu1 }
 0x12d   : > { %v575_v26 = vpop.f32.mrf.mxu0  ;;  %v594_v18 = vpop.f32.mrf.mxu1 }
 0x12e   : > { %v599_v63 = vpack.c.bf16 %v575_v26, %v573_v39  ;;  %v600_v46 = vpack.c.bf16 %v594_v18, %v592_v10 }
 0x130   : > { %774 = vmatmul.bf16.gmra.mxu2 %v599_v63  ;;  %793 = vmatmul.bf16.gmra.mxu3 %v600_v46 }
 0x131   : > { %812 = vmatmul.bf16.gmra.mxu0 %v599_v63  ;;  %831 = vmatmul.bf16.gmra.mxu1 %v600_v46 }
 0x140   : > { %1005 = vmatmul.bf16.vlgmr.msrb.gmra.mxu2 %v597_v13  ;;  %1024 = vmatmul.bf16.vlgmr.msrb.gmra.mxu3 %v598_v12 }
 0x141   : > { %1043 = vmatmul.bf16.vlgmr.msra.gmra.mxu0 %v597_v13  ;;  %1062 = vmatmul.bf16.vlgmr.msra.gmra.mxu1 %v598_v12 }
 0x150   : > { %1010 = vmatmul.bf16.gmra.mxu2 %v599_v63  ;;  %1029 = vmatmul.bf16.gmra.mxu3 %v600_v46 }
 0x151   : > { %1048 = vmatmul.bf16.gmra.mxu0 %v599_v63  ;;  %1067 = vmatmul.bf16.gmra.mxu1 %v600_v46 }
 0x19e   : > { %v808_v22 = vpop.f32.mrf.mxu0  ;;  %v827_v58 = vpop.f32.mrf.mxu1 }
 0x19f   : > { %v828_v63 = vadd.f32 %v827_v58, %v808_v22 }
 0x1a3   : > { %v770_v38 = vpop.f32.mrf.mxu2  ;;  %v789_v29 = vpop.f32.mrf.mxu3 }
 0x1a4   : > { %v790_v25 = vadd.f32 %v789_v29, %v770_v38 }
 0x1a6   : > { %v810_v19 = vpop.f32.mrf.mxu0  ;;  %v829_v53 = vpop.f32.mrf.mxu1 }
 0x1a7   : > { %v830_v56 = vadd.f32 %v829_v53, %v810_v19 }
 0x1a9   : > { %v1074_v59 = vpack.c.bf16 %v830_v56, %v828_v63  ;;  %v4165_v63 = vld [vmem:[%s6690_s5 + $0x20] sm:$0xff] }
 0x1ab   : > { %v772_v39 = vpop.f32.mrf.mxu2  ;;  %v791_v18 = vpop.f32.mrf.mxu3 }
 0x1ac   : > { %v792_v60 = vadd.f32 %v791_v18, %v772_v39 }
 0x1ae   : > { %v813_v10 = vpop.f32.mrf.mxu0  ;;  %v832_v26 = vpop.f32.mrf.mxu1  ;;  %v1073_v24 = vpack.c.bf16 %v792_v60, %v790_v25 }
 0x1af   : > { %v833_v13 = vadd.f32 %v832_v26, %v813_v10 }
 0x1b3   : > { %v775_v2 = vpop.f32.mrf.mxu2  ;;  %v794_v7 = vpop.f32.mrf.mxu3 }
 0x1b4   : > { %v795_v35 = vadd.f32 %v794_v7, %v775_v2 }
 0x1b6   : > { %v815_v6 = vpop.f32.mrf.mxu0  ;;  %v834_v45 = vpop.f32.mrf.mxu1 }
 0x1b7   : > { %v835_v12 = vadd.f32 %v834_v45, %v815_v6 }
 0x1b9   : > { %v1076_v33 = vpack.c.bf16 %v835_v12, %v833_v13 }
 0x1bb   : > { %1238 = vmatpush.bf16.msrb.mxu1 %v1076_v33  ;;  %v777_v46 = vpop.f32.mrf.mxu2  ;;  %v796_v32 = vpop.f32.mrf.mxu3  ;;  %v4161_v33 = vld [vmem:[%s6690_s5] sm:$0xff] }
 0x1bc   : > { %v797_v61 = vadd.f32 %v796_v32, %v777_v46 }
 0x1be   : > { %v1075_v31 = vpack.c.bf16 %v797_v61, %v795_v35  ;;  %v1044_v52 = vpop.f32.mrf.mxu0  ;;  %v1063_v30 = vpop.f32.mrf.mxu1  ;;  %v366_v35 = vld [vmem:[%s6688_s3 + $0x28] sm:$0xff] }
 0x1bf   : > { %1239 = vmatpush.bf16.msrb.mxu1 %v1074_v59  ;;  %v6739_v59 = vmov 3   ;;  %v1064_v38 = vadd.f32 %v1063_v30, %v1044_v52  ;;  %v4163_v52 = vld [vmem:[%s6690_s5 + $0x10] sm:$0xff] }
 0x1c0   : > { %1209 = vmatpush.bf16.msrb.mxu0 %v1075_v31  ;;  %4202 = vset.pattern.permute.xlu1 %v6739_v59  ;;  %v4162_v31 = vld [vmem:[%s6690_s5 + $0x8] sm:$0xff]  ;;  %v367_v30 = vld [vmem:[%s6688_s3 + $0x30] sm:$0xff] }
 0x1c1   : > { %4201 = vset.pattern.permute.xlu2 %v6739_v59  ;;  %1284 = vperm.xlu1 %4202, %v366_v35   ;;  %v4360_v35 = vld [vmem:[%s6688_s3 + $0x18] sm:$0xff] }
 0x1c2   : > { %3741 = vmatmul.msk.bf16.vlgmr.msrb.gmra.mxu1 %vm552_vm7, %v4161_v33  ;;  %4203 = vset.pattern.permute.xlu0 %v6739_v59 }
 0x1c3   : > { %v1006_v34 = vpop.f32.mrf.mxu2  ;;  %v1025_v10 = vpop.f32.mrf.mxu3 }
 0x1c4   : > { %1210 = vmatpush.bf16.msrb.mxu0 %v1073_v24  ;;  %v1026_v46 = vadd.f32 %v1025_v10, %v1006_v34  ;;  %v4166_v34 = vld [vmem:[%s6690_s5 + $0x28] sm:$0xff] }
 0x1c5   : > { %v4359_v10 = vld [vmem:[%s6688_s3 + $0x8] sm:$0xff] }
 0x1c6   : > { %v1046_v45 = vpop.f32.mrf.mxu0  ;;  %v1065_v6 = vpop.f32.mrf.mxu1 }
 0x1c7   : > { %3737 = vmatmul.msk.bf16.vlgmr.msrb.gmra.mxu0 %vm552_vm7, %v4161_v33  ;;  %v1066_v22 = vadd.f32 %v1065_v6, %v1046_v45  ;;  %v4164_v45 = vld [vmem:[%s6690_s5 + $0x18] sm:$0xff] }
 0x1c8   : > { %v368_v6 = vld [vmem:[%s6688_s3 + $0x38] sm:$0xff] }
 0x1c9   : > { %1262 = vperm.xlu1 %4202, %v4441_v3   ;;  %v1078_v26 = vpack.c.bf16 %v1066_v22, %v1064_v38  ;;  %1294 = vperm.xlu0 %4203, %v368_v6  }
 0x1cb   : > { %v1008_v60 = vpop.f32.mrf.mxu2  ;;  %v1027_v61 = vpop.f32.mrf.mxu3 }
 0x1cc   : > { %v1028_v13 = vadd.f32 %v1027_v61, %v1008_v60  ;;  %v4167_v60 = vld [vmem:[%s6690_s5 + $0x30] sm:$0xff]  ;;  %v4168_v61 = vld [vmem:[%s6690_s5 + $0x38] sm:$0xff] }
 0x1ce   : > { %v1049_v24 = vpop.f32.mrf.mxu0  ;;  %v1068_v25 = vpop.f32.mrf.mxu1  ;;  %v1077_v33 = vpack.c.bf16 %v1028_v13, %v1026_v46 }
 0x1cf   : > { %v1069_v53 = vadd.f32 %v1068_v25, %v1049_v24 }
 0x1d1   : > { %1270 = vperm.xlu1 %4202, %v4432_v0   ;;  %v365_v0 = vld [vmem:[%s6688_s3 + $0x20] sm:$0xff] }
 0x1d2   : > { %3742 = vmatmul.msk.bf16.gmra.mxu1 %vm552_vm7, %v4162_v31  ;;  %1279 = vperm.xlu2 %4201, %v365_v0  }
 0x1d3   : > { %v1011_v32 = vpop.f32.mrf.mxu2  ;;  %v1030_v56 = vpop.f32.mrf.mxu3 }
 0x1d4   : > { %v1031_v39 = vadd.f32 %v1030_v56, %v1011_v32 }
 0x1d6   : > { %v1051_v7 = vpop.f32.mrf.mxu0  ;;  %v1070_v2 = vpop.f32.mrf.mxu1 }
 0x1d7   : > { %v1071_v19 = vadd.f32 %v1070_v2, %v1051_v7  ;;  %3738 = vmatmul.msk.bf16.gmra.mxu0 %vm552_vm7, %v4162_v31 }
 0x1d9   : > { %v1080_v58 = vpack.c.bf16 %v1071_v19, %v1069_v53 }
 0x1da   : > { %1289 = vperm.xlu2 %4201, %v367_v30  }
 0x1db   : > { %1148 = vmatpush.bf16.msra.mxu3 %v1080_v58  ;;  %v1013_v3 = vpop.f32.mrf.mxu2  ;;  %v1032_v29 = vpop.f32.mrf.mxu3 }
 0x1dc   : > { %v1033_v18 = vadd.f32 %v1032_v29, %v1013_v3 }
 0x1de   : > { %v1079_v12 = vpack.c.bf16 %v1033_v18, %v1031_v39 }
 0x1df   : > { %1149 = vmatpush.bf16.msra.mxu3 %v1078_v26 }
 0x1e0   : > { %1119 = vmatpush.bf16.msra.mxu2 %v1079_v12 }
 0x1e2   : > { %3717 = vmatmul.msk.bf16.vlgmr.msra.gmra.mxu3 %vm552_vm7, %v4165_v63  ;;  %3743 = vmatmul.msk.bf16.gmra.mxu1 %vm552_vm7, %v4163_v52 }
 0x1e3   : > { %1266 = vperm.xlu2 %4201, %v4359_v10  }
 0x1e4   : > { %1120 = vmatpush.bf16.msra.mxu2 %v1077_v33 }
 0x1e7   : > { %3713 = vmatmul.msk.bf16.vlgmr.msra.gmra.mxu2 %vm552_vm7, %v4165_v63  ;;  %3739 = vmatmul.msk.bf16.gmra.mxu0 %vm552_vm7, %v4163_v52 }
 0x1eb   : > { %1274 = vperm.xlu2 %4201, %v4360_v35  }
 0x1f2   : > { %3718 = vmatmul.msk.bf16.gmra.mxu3 %vm552_vm7, %v4166_v34  ;;  %3744 = vmatmul.msk.bf16.gmra.mxu1 %vm552_vm7, %v4164_v45 }
 0x1f7   : > { %3714 = vmatmul.msk.bf16.gmra.mxu2 %vm552_vm7, %v4166_v34  ;;  %3740 = vmatmul.msk.bf16.gmra.mxu0 %vm552_vm7, %v4164_v45 }
 0x202   : > { %3719 = vmatmul.msk.bf16.gmra.mxu3 %vm552_vm7, %v4167_v60 }
 0x207   : > { %3715 = vmatmul.msk.bf16.gmra.mxu2 %vm552_vm7, %v4167_v60 }
 0x212   : > { %3720 = vmatmul.msk.bf16.gmra.mxu3 %vm552_vm7, %v4168_v61 }
 0x217   : > { %3716 = vmatmul.msk.bf16.gmra.mxu2 %vm552_vm7, %v4168_v61 }
 0x22c   : > { %v5175_v3 = vpop.permute.xlu2 %1279 }
 0x233   : > { %v5170_v24 = vpop.permute.xlu1 %1284 }
 0x234   : > { %v5180_v0 = vpop.permute.xlu2 %1289 }
 0x23b   : > { %v1263_v56 = vpop.permute.xlu1 %1262 }
 0x23f   : > { %v1241_v25 = vpop.f32.mrf.mxu1 }
 0x244   : > { %v1212_v31 = vpop.f32.mrf.mxu0 }
 0x247   : > { %v1243_v2 = vpop.f32.mrf.mxu1 }
 0x24c   : > { %v1214_v38 = vpop.f32.mrf.mxu0 }
 0x24f   : > { %v1246_v26 = vpop.f32.mrf.mxu1 }
 0x254   : > { %v1217_v46 = vpop.f32.mrf.mxu0 }
 0x257   : > { %v5182_v35 = vpop.f32.mrf.mxu1 }
 0x265   : > { %v1151_v32 = vpop.f32.mrf.mxu3 }
 0x266   : > { %v1242_v7 = vadd.f32 %v1241_v25, %v1151_v32  ;;  %v5186_v32 = vpop.f32.mrf.mxu0 }
 0x268   : > { %v5172_v53 = vadd.f32 %v1263_v56, %v1242_v7 }
 0x26a   : > { %v3746_v19 = vmul.f32 -1.442695, %v5172_v53  ;;  %v1122_v22 = vpop.f32.mrf.mxu2 }
 0x26b   : > { %v1213_v58 = vadd.f32 %v1212_v31, %v1122_v22 }
 0x26c   : > { %4227 = vpow2.f32 %v3746_v19  ;;  %v1267_v19 = vpop.permute.xlu2 %1266 }
 0x26d   : > { %v5177_v29 = vadd.f32 %v1263_v56, %v1213_v58  ;;  %v1153_v39 = vpop.f32.mrf.mxu3  ;;  %v1271_v58 = vpop.permute.xlu1 %1270 }
 0x26e   : > { %v1244_v31 = vadd.f32 %v1243_v2, %v1153_v39 }
 0x26f   : > { %v3745_v18 = vmul.f32 -1.442695, %v5177_v29 }
 0x271   : > { %4229 = vpow2.f32 %v3745_v18 }
 0x272   : > { %v4228_v13 = vpop.eup %4227  ;;  %v1124_v12 = vpop.f32.mrf.mxu2 }
 0x273   : > { %v1362_v63 = vadd.f32 1.0, %v4228_v13  ;;  %v1215_v13 = vadd.f32 %v1214_v38, %v1124_v12  ;;  %v1251_v38 = vpop.f32.mrf.mxu1 }
 0x275   : > { %4231 = vrcp.f32 %v1362_v63  ;;  %v1156_v33 = vpop.f32.mrf.mxu3  ;;  %vm1397_vm8 = vweird.f32 %v1362_v63 }
 0x276   : > { %v1247_v52 = vadd.f32 %v1246_v26, %v1156_v33  ;;  %v1403_v26 = vand.u32 2147483648, %v1362_v63  ;;  %v1401_v33 = vand.u32 2147483647, %v1362_v63 }
 0x277   : > { %v4230_v30 = vpop.eup %4229 }
 0x278   : > { %v1361_v34 = vadd.f32 1.0, %v4230_v30  ;;  %v1404_v44 = vor.u32 1.1754944e-38, %v1403_v26  ;;  %vm1402_vm12 = vcmp.eq.f32.partialorder %v1401_v33, 8.507059e+37 }
 0x27a   : > { %4233 = vrcp.f32 %v1361_v34  ;;  %v1127_v10 = vpop.f32.mrf.mxu2  ;;  %v1388_v39 = vand.u32 2147483648, %v1361_v34  ;;  %vm1382_vm13 = vweird.f32 %v1361_v34 }
 0x27b   : > { %v4232_v45 = vpop.eup %4231  ;;  %v1218_v6 = vadd.f32 %v1217_v46, %v1127_v10  ;;  %v5190_v10 = vadd.f32 %v1267_v19, %v1244_v31 }
 0x27c   : > { %v1393_v60 = vmul.f32 %v4232_v45, %v1362_v63  ;;  %vm1398_vm9 = vweird.f32 %v4232_v45  ;;  %v5200_v63 = vadd.f32 %v1267_v19, %v1215_v13 }
 0x27d   : > { %v5184_v61 = vpop.f32.mrf.mxu3  ;;  %vm5192_vm10 = vmor %vm1397_vm8, %vm1398_vm9 }
 0x27e   : > { %v1394_v25 = vsub.f32 1.0, %v1393_v60  ;;  %v5196_v60 = vadd.f32 %v1271_v58, %v1247_v52  ;;  %v1389_v52 = vor.u32 1.1754944e-38, %v1388_v39  ;;  %v3747_v26 = vmul.f32 -1.442695, %v5200_v63 }
 0x280   : > { %v4234_v56 = vpop.eup %4233  ;;  %v1395_v7 = vmul.f32 %v4232_v45, %v1394_v25  ;;  %v3750_v47 = vmul.f32 -1.442695, %v5196_v60 }
 0x281   : > { %v1378_v22 = vmul.f32 %v4234_v56, %v1361_v34  ;;  %vm1383_vm11 = vweird.f32 %v4234_v56 }
 0x282   : > { %v1396_v18 = vadd.f32 %v4232_v45, %v1395_v7  ;;  %v5188_v46 = vpop.f32.mrf.mxu2  ;;  %v1386_v7 = vand.u32 2147483647, %v1361_v34  ;;  %vm1384_vm14 = vmor %vm1382_vm13, %vm1383_vm11 }
 0x283   : > { %v1379_v30 = vsub.f32 1.0, %v1378_v22  ;;  %v3748_v22 = vmul.f32 -1.442695, %v5190_v10 }
 0x284   : > { %v1400_v25 = vsel %vm5192_vm10, %v4232_v45, %v1396_v18  ;;  %vm1387_vm15 = vcmp.eq.f32.partialorder %v1386_v7, 8.507059e+37  ;;  %v5204_v45 = vadd.f32 %v1271_v58, %v1218_v6  ;;  %v1222_v18 = vpop.f32.mrf.mxu0  ;;  %v1253_v6 = vpop.f32.mrf.mxu1 }
 0x285   : > { %v1380_v59 = vmul.f32 %v4234_v56, %v1379_v30  ;;  %v1161_v12 = vpop.f32.mrf.mxu3  ;;  %v1405_v43 = vsel %vm1402_vm12, %v1404_v44, %v1400_v25  ;;  %4235 = vpow2.f32 %v3748_v22 }
 0x286   : > { %v1618_v13 = vmul.f32 %v1405_v43, %v5172_v53  ;;  %4237 = vpow2.f32 %v3750_v47  ;;  %v3749_v34 = vmul.f32 -1.442695, %v5204_v45 }
 0x287   : > { %v1381_v31 = vadd.f32 %v4234_v56, %v1380_v59  ;;  %4239 = vpow2.f32 %v3747_v26 }
 0x288   : > { %4241 = vpow2.f32 %v3749_v34 }
 0x289   : > { %v1385_v2 = vsel %vm1384_vm14, %v4234_v56, %v1381_v31  ;;  %v1252_v56 = vadd.f32 %v1251_v38, %v1161_v12 }
 0x28a   : > { %v1390_v30 = vsel %vm1387_vm15, %v1389_v52, %v1385_v2  ;;  %v1132_v19 = vpop.f32.mrf.mxu2 }
 0x28b   : > { %v1617_v59 = vmul.f32 %v1390_v30, %v5177_v29  ;;  %v4236_v58 = vpop.eup %4235  ;;  %v5213_v25 = vadd.f32 %v5175_v3, %v1252_v56  ;;  %v1223_v7 = vadd.f32 %v1222_v18, %v1132_v19  ;;  %v1220_v56 = vadd.f32 %v5186_v32, %v5188_v46 }
 0x28c   : > { %v4238_v39 = vpop.eup %4237  ;;  %v1224_v53 = vpop.f32.mrf.mxu0  ;;  %v5215_v47 = vadd.f32 1.0, %v4236_v58 }
 0x28d   : > { %v5209_v44 = vpack.c.bf16 %v1618_v13, %v1617_v59  ;;  %v1163_v33 = vpop.f32.mrf.mxu3  ;;  %v4240_v31 = vpop.eup %4239  ;;  %v3754_v22 = vmul.f32 -1.442695, %v5213_v25  ;;  %v5218_v52 = vadd.f32 1.0, %v4238_v39  ;;  %v5221_v38 = vadd.f32 %v5175_v3, %v1223_v7 }
 0x28e   : > { %v1254_v29 = vadd.f32 %v1253_v6, %v1163_v33  ;;  %v4242_v2 = vpop.eup %4241  ;;  %v5223_v30 = vadd.f32 1.0, %v4240_v31  ;;  %v1256_v19 = vpop.f32.mrf.mxu1  ;;  %v1249_v13 = vadd.f32 %v5182_v35, %v5184_v61  ;;  %v3819_v31 = vld [vmem:[%s6687_s2 + $0x100] sm:$0xf] }
 0x28f   : > { %4243 = vpow2.f32 %v3754_v22  ;;  %v5232_v59 = vadd.f32 1.0, %v4242_v2  ;;  %v1275_v3 = vpop.permute.xlu2 %1274  ;;  %v3753_v34 = vmul.f32 -1.442695, %v5221_v38  ;;  %v4154_v22 = vld [vmem:[%s6687_s2 + $0x104] sm:$0xf0]  ;;  %v1463_v50 = vand.u32 2147483648, %v5218_v52 }
 0x290   : > { %v5226_v18 = vadd.f32 %v5170_v24, %v1254_v29  ;;  %4245 = vrcp.f32 %v5215_v47  ;;  %v5242_v35 = vadd.f32 %v1275_v3, %v1249_v13  ;;  %v5252_v46 = vadd.f32 %v1275_v3, %v1220_v56  ;;  %v4153_v2 = vld [vmem:[%s6687_s2 + $0x104] sm:$0xf] }
 0x291   : > { %4247 = vrcp.f32 %v5218_v52  ;;  %vm1457_vm11 = vweird.f32 %v5218_v52 }
 0x292   : > { %v1134_v43 = vpop.f32.mrf.mxu2  ;;  %4249 = vrcp.f32 %v5223_v30  ;;  %v3756_v6 = vmul.f32 -1.442695, %v5226_v18  ;;  %6871 = vst [vmem:[#allocation75_spill] sm:$0xff] %v5242_v35  ;;  %v3752_v3 = vmul.f32 -1.442695, %v5242_v35 }
 0x293   : > { %v1225_v12 = vadd.f32 %v1224_v53, %v1134_v43  ;;  %4251 = vpow2.f32 %v3753_v34  ;;  %v3751_v40 = vmul.f32 -1.442695, %v5252_v46 }
 0x294   : > { %v1227_v39 = vpop.f32.mrf.mxu0  ;;  %4253 = vpow2.f32 %v3756_v6 }
 0x295   : > { %v1166_v26 = vpop.f32.mrf.mxu3  ;;  %v5236_v33 = vadd.f32 %v5170_v24, %v1225_v12  ;;  %v4244_v7 = vpop.eup %4243  ;;  %4255 = vrcp.f32 %v5232_v59 }
 0x296   : > { %v5244_v61 = vadd.f32 1.0, %v4244_v7  ;;  %v5246_v43 = vpop.eup %4245  ;;  %v1257_v53 = vadd.f32 %v1256_v19, %v1166_v26  ;;  %v3821_v26 = vld [vmem:[%s6687_s2 + $0x108] sm:$0xf0]  ;;  %v1258_v6 = vpop.f32.mrf.mxu1 }
 0x297   : > { %v3755_v24 = vmul.f32 -1.442695, %v5236_v33  ;;  %v5250_v32 = vpop.eup %4247  ;;  %v5272_v13 = vmul.f32 %v5246_v43, %v5215_v47  ;;  %v5296_v1 = vor.u32 %v4153_v2, %v3821_v26 }
 0x298   : > { %4257 = vrcp.f32 %v5244_v61  ;;  %v5268_v19 = vpop.eup %4249  ;;  %v5276_v34 = vadd.f32 %v5180_v0, %v1257_v53  ;;  %v1453_v41 = vmul.f32 %v5250_v32, %v5218_v52  ;;  %v5290_v53 = vor.u32 %v4154_v22, %v3819_v31 }
 0x299   : > { %4259 = vpow2.f32 %v3755_v24  ;;  %v4252_v7 = vpop.eup %4251  ;;  %6873 = vst [vmem:[#allocation77_spill] sm:$0xff] %v5296_v1  ;;  %v5302_v12 = vmul.f32 %v5268_v19, %v5223_v30  ;;  %1794 = vmatpush.bf16.msra.mxu0 %v5296_v1  ;;  %v5323_v22 = vor.u32 1.1754944e-38, %v1463_v50  ;;  %v1521_v51 = vand.u32 2147483647, %v5244_v61 }
 0x29a   : > { %v1137_v58 = vpop.f32.mrf.mxu2  ;;  %6872 = vst [vmem:[#allocation76_spill] sm:$0xff] %v5290_v53  ;;  %v4254_v11 = vpop.eup %4253  ;;  %v5294_v20 = vadd.f32 1.0, %v4252_v7  ;;  %1756 = vmatpush.bf16.msrb.mxu2 %v5290_v53  ;;  %v3758_v26 = vmul.f32 -1.442695, %v5276_v34  ;;  %v4156_v53 = vld [vmem:[%s6687_s2 + $0x114] sm:$0xf0]  ;;  %vm1517_vm0 = vweird.f32 %v5244_v61 }
 0x29b   : > { %v1228_v29 = vadd.f32 %v1227_v39, %v1137_v58  ;;  %v3811_v58 = vld [vmem:[%s6687_s2 + $0xf0] sm:$0xf]  ;;  %v4152_v39 = vld [vmem:[%s6687_s2 + $0xf4] sm:$0xf0]  ;;  %v5298_v14 = vpop.eup %4255  ;;  %v5304_v16 = vadd.f32 1.0, %v4254_v11  ;;  %v5316_v7 = vpop.permute.xlu0 %1294  ;;  %v1454_v11 = vsub.f32 1.0, %v1453_v41 }
 0x29c   : > { %4261 = vrcp.f32 %v5294_v20  ;;  %v5327_v2 = vmul.f32 %v5298_v14, %v5232_v59  ;;  %v3827_v41 = vld [vmem:[%s6687_s2 + $0x110] sm:$0xf]  ;;  %vm1502_vm1 = vweird.f32 %v5294_v20  ;;  %v1508_v15 = vand.u32 2147483648, %v5294_v20  ;;  %v1229_v42 = vpop.f32.mrf.mxu0 }
 0x29d   : > { %v1168_v56 = vpop.f32.mrf.mxu3  ;;  %v5288_v24 = vadd.f32 %v5180_v0, %v1228_v29  ;;  %v5307_v29 = vor.u32 %v4152_v39, %v3811_v58  ;;  %4263 = vrcp.f32 %v5304_v16  ;;  %v5345_v48 = vmul.f32 %v5250_v32, %v1454_v11  ;;  %v4150_v39 = vld [vmem:[%s6687_s2 + $0xe4] sm:$0xf0] }
 0x29e   : > { %v1259_v0 = vadd.f32 %v1258_v6, %v1168_v56  ;;  %v5309_v31 = vpop.eup %4257  ;;  %4265 = vpow2.f32 %v3752_v3  ;;  %v1506_v3 = vand.u32 2147483647, %v5294_v20  ;;  %v5348_v1 = vor.u32 %v4156_v53, %v3827_v41  ;;  %v3813_v53 = vld [vmem:[%s6687_s2 + $0xf8] sm:$0xf0] }
 0x29f   : > { %6874 = vst [vmem:[#allocation78_spill] sm:$0xff] %v5307_v29  ;;  %v1513_v56 = vmul.f32 %v5309_v31, %v5244_v61  ;;  %v3757_v6 = vmul.f32 -1.442695, %v5288_v24  ;;  %v4260_v58 = vpop.eup %4259  ;;  %4267 = vpow2.f32 %v3751_v40  ;;  %1757 = vmatpush.bf16.msrb.mxu2 %v5307_v29  ;;  %v4151_v40 = vld [vmem:[%s6687_s2 + $0xf4] sm:$0xf]  ;;  %vm1518_vm2 = vweird.f32 %v5309_v31 }
 0x2a0   : > { %v5337_v50 = vadd.f32 %v5316_v7, %v1259_v0  ;;  %v5342_v36 = vadd.f32 1.0, %v4260_v58  ;;  %4269 = vpow2.f32 %v3758_v26  ;;  %6875 = vst [vmem:[#allocation79_spill] sm:$0xff] %v5348_v1  ;;  %v3803_v26 = vld [vmem:[%s6687_s2 + $0xe0] sm:$0xf]  ;;  %1782 = vmatpush.bf16.msra.mxu1 %v5348_v1  ;;  %4181 = vmatpush.bf16.msrb.mxu3 %v5348_v1  ;;  %vm5380_vm3 = vcmp.eq.f32.partialorder %v1506_v3, 8.507059e+37  ;;  %vm5431_vm8 = vmor %vm1517_vm0, %vm1518_vm2 }
 0x2a1   : > { %v1514_v17 = vsub.f32 1.0, %v1513_v56  ;;  %4271 = vpow2.f32 %v3757_v6  ;;  %v1523_v6 = vand.u32 2147483648, %v5244_v61  ;;  %v3805_v1 = vld [vmem:[%s6687_s2 + $0xe8] sm:$0xf0]  ;;  %vm5395_vm4 = vcmp.eq.f32.partialorder %v1521_v51, 8.507059e+37 }
 0x2a2   : > { %v5353_v0 = vpop.eup %4261  ;;  %4273 = vrcp.f32 %v5342_v36  ;;  %v1139_v54 = vpop.f32.mrf.mxu2  ;;  %vm1547_vm5 = vweird.f32 %v5304_v16  ;;  %v5400_v5 = vor.u32 %v4151_v40, %v3813_v53  ;;  %v5416_v9 = vor.u32 %v4149_v28, %v3805_v1  ;;  %v3797_v29 = vld [vmem:[%s6687_s2 + $0xd8] sm:$0xf0] }
 0x2a3   : > { %v1515_v58 = vmul.f32 %v5309_v31, %v1514_v17  ;;  %v5365_v11 = vpop.eup %4263  ;;  %v1498_v41 = vmul.f32 %v5353_v0, %v5294_v20  ;;  %v3760_v17 = vmul.f32 -1.442695, %v5337_v50  ;;  %vm1503_vm6 = vweird.f32 %v5353_v0 }
 0x2a4   : > { %v5377_v56 = vpop.eup %4265  ;;  %v1543_v21 = vmul.f32 %v5365_v11, %v5304_v16  ;;  %1795 = vmatpush.bf16.msra.mxu0 %v5400_v5  ;;  %vm1548_vm9 = vweird.f32 %v5365_v11  ;;  %vm1504_vm10 = vmor %vm1502_vm1, %vm1503_vm6  ;;  %vm1532_vm15 = vweird.f32 %v5342_v36  ;;  %vm1442_vm0 = vweird.f32 %v5232_v59 }
 0x2a5   : > { %v5393_v37 = vpop.eup %4267  ;;  %v1499_v4 = vsub.f32 1.0, %v1498_v41  ;;  %4275 = vpow2.f32 %v3760_v17  ;;  %v1516_v51 = vadd.f32 %v5309_v31, %v1515_v58  ;;  %v5410_v41 = vor.u32 %v4150_v39, %v3803_v26  ;;  %vm5465_vm12 = vmor %vm1547_vm5, %vm1548_vm9 }
 0x2a6   : > { %v4270_v23 = vpop.eup %4269  ;;  %v1544_v27 = vsub.f32 1.0, %v1543_v21  ;;  %v1230_v17 = vadd.f32 %v1229_v42, %v1139_v54  ;;  %v1551_v58 = vand.u32 2147483647, %v5304_v16  ;;  %v5425_v21 = vor.u32 %v4148_v55, %v3795_v49 }
 0x2a7   : > { %v4272_v8 = vpop.eup %4271  ;;  %v1500_v40 = vmul.f32 %v5353_v0, %v1499_v4  ;;  %v5413_v53 = vadd.f32 1.0, %v4270_v23  ;;  %1758 = vmatpush.bf16.msrb.mxu2 %v5410_v41  ;;  %v1509_v49 = vor.u32 1.1754944e-38, %v1508_v15  ;;  %v1553_v4 = vand.u32 2147483648, %v5304_v16  ;;  %v4147_v15 = vld [vmem:[%s6687_s2 + $0xd4] sm:$0xf] }
 0x2a8   : > { %v5418_v57 = vpop.eup %4273  ;;  %v1545_v62 = vmul.f32 %v5365_v11, %v1544_v27  ;;  %v5422_v35 = vadd.f32 1.0, %v4272_v8  ;;  %v1520_v27 = vsel %vm5431_vm8, %v5309_v31, %v1516_v51  ;;  %v5453_v61 = vadd.f32 %v5316_v7, %v1230_v17  ;;  %1796 = vmatpush.bf16.msra.mxu0 %v5416_v9  ;;  %v3779_v7 = vld [vmem:[%s6687_s2 + $0xb0] sm:$0xf] }
 0x2a9   : > { %v1501_v1 = vadd.f32 %v5353_v0, %v1500_v40  ;;  %v1528_v8 = vmul.f32 %v5418_v57, %v5342_v36  ;;  %4277 = vrcp.f32 %v5413_v53  ;;  %vm5469_vm13 = vcmp.eq.f32.partialorder %v1551_v58, 8.507059e+37 }
 0x2aa   : > { %v1546_v55 = vadd.f32 %v5365_v11, %v1545_v62  ;;  %4279 = vrcp.f32 %v5422_v35  ;;  %v1524_v62 = vor.u32 1.1754944e-38, %v1523_v6  ;;  %v1538_v39 = vand.u32 2147483648, %v5342_v36 }
 0x2ab   : > { %v4276_v28 = vpop.eup %4275  ;;  %v1505_v54 = vsel %vm1504_vm10, %v5353_v0, %v1501_v1  ;;  %v1529_v42 = vsub.f32 1.0, %v1528_v8  ;;  %1759 = vmatpush.bf16.msrb.mxu2 %v5425_v21  ;;  %vm1533_vm14 = vweird.f32 %v5418_v57  ;;  %v1536_v26 = vand.u32 2147483647, %v5342_v36 }
 0x2ac   : > { %v1510_v20 = vsel %vm5380_vm3, %v1509_v49, %v1505_v54  ;;  %v1550_v16 = vsel %vm5465_vm12, %v5365_v11, %v1546_v55  ;;  %v1525_v6 = vsel %vm5395_vm4, %v1524_v62, %v1520_v27  ;;  %v1554_v51 = vor.u32 1.1754944e-38, %v1553_v4  ;;  %vm5502_vm1 = vmor %vm1532_vm15, %vm1533_vm14 }
 0x2ad   : > { %v1530_v0 = vmul.f32 %v5418_v57, %v1529_v42  ;;  %v5487_v40 = vadd.f32 1.0, %v4276_v28  ;;  %v1625_v11 = vmul.f32 %v1510_v20, %v5221_v38  ;;  %v3759_v23 = vmul.f32 -1.442695, %v5453_v61  ;;  %v3787_v38 = vld [vmem:[%s6687_s2 + $0xc0] sm:$0xf] }
 0x2ae   : > { %v5495_v1 = vor.u32 %v4147_v15, %v3797_v29  ;;  %v6886_v3 = vsub.f32 1.0, %v5327_v2  ;;  %v1555_v36 = vsel %vm5469_vm13, %v1554_v51, %v1550_v16  ;;  %v1539_v49 = vor.u32 1.1754944e-38, %v1538_v39  ;;  %v4146_v2 = vld [vmem:[%s6687_s2 + $0xc4] sm:$0xf0]  ;;  %v4145_v42 = vld [vmem:[%s6687_s2 + $0xc4] sm:$0xf] }
 0x2af   : > { %v5489_v17 = vpop.eup %4277  ;;  %v1531_v58 = vadd.f32 %v5418_v57, %v1530_v0  ;;  %4281 = vrcp.f32 %v5487_v40  ;;  %v1626_v4 = vmul.f32 %v1525_v6, %v5213_v25  ;;  %vm1537_vm2 = vcmp.eq.f32.partialorder %v1536_v26, 8.507059e+37  ;;  %v3789_v15 = vld [vmem:[%s6687_s2 + $0xc8] sm:$0xf0]  ;;  %v4144_v0 = vld [vmem:[%s6687_s2 + $0xb4] sm:$0xf0] }
 0x2b0   : > { %v1440_v8 = vmul.f32 %v5298_v14, %v6886_v3  ;;  %v5513_v55 = vpop.eup %4279  ;;  %v1573_v54 = vmul.f32 %v5489_v17, %v5413_v53  ;;  %1797 = vmatpush.bf16.msra.mxu0 %v5495_v1  ;;  %vm1458_vm3 = vweird.f32 %v5250_v32  ;;  %v6889_v25 = vand.u32 2147483647, %v5218_v52  ;;  %v4143_v26 = vld [vmem:[%s6687_s2 + $0xb4] sm:$0xf]  ;;  %v3781_v6 = vld [vmem:[%s6687_s2 + $0xb8] sm:$0xf0] }
 0x2b1   : > { %v1535_v28 = vsel %vm5502_vm1, %v5418_v57, %v1531_v58  ;;  %v1448_v62 = vand.u32 2147483648, %v5232_v59  ;;  %v1558_v31 = vmul.f32 %v5513_v55, %v5422_v35  ;;  %v5541_v39 = vpack.c.bf16 %v1626_v4, %v1625_v11  ;;  %vm5570_vm6 = vmor %vm1457_vm11, %vm1458_vm3  ;;  %v3771_v52 = vld [vmem:[%s6687_s2 + $0xa0] sm:$0xf]  ;;  %v4155_v57 = vld [vmem:[%s6687_s2 + $0x114] sm:$0xf] }
 0x2b2   : > { %vm5531_vm4 = vcmp.eq.f32.partialorder %v6889_v25, 8.507059e+37  ;;  %v1540_v20 = vsel %vm1537_vm2, %v1539_v49, %v1535_v28  ;;  %v1628_v29 = vmul.f32 %v1555_v36, %v5226_v18  ;;  %4283 = vpow2.f32 %v3759_v23 }
 0x2b3   : > { %v1627_v16 = vmul.f32 %v1540_v20, %v5236_v33  ;;  %v1456_v51 = vadd.f32 %v5250_v32, %v5345_v48  ;;  %vm1443_vm5 = vweird.f32 %v5298_v14  ;;  %v5557_v18 = vor.u32 %v4146_v2, %v3787_v38  ;;  %v3895_v48 = vld [vmem:[%s6687_s2 + $0x70] sm:$0xf] }
 0x2b4   : > { %v5559_v33 = vor.u32 %v4145_v42, %v3789_v15  ;;  %v1441_v11 = vadd.f32 %v5298_v14, %v1440_v8  ;;  %v1574_v23 = vsub.f32 1.0, %v1573_v54  ;;  %v1559_v3 = vsub.f32 1.0, %v1558_v31  ;;  %v4142_v54 = vld [vmem:[%s6687_s2 + $0xa4] sm:$0xf0]  ;;  %v4141_v42 = vld [vmem:[%s6687_s2 + $0xa4] sm:$0xf]  ;;  %vm5614_vm8 = vmor %vm1442_vm0, %vm1443_vm5 }
 0x2b5   : > { %v5562_v58 = vpack.c.bf16 %v1628_v29, %v1627_v16  ;;  %v5564_v36 = vpop.eup %4281  ;;  %v5575_v27 = vadd.f32 1.0, %v5377_v56  ;;  %v5578_v49 = vadd.f32 1.0, %v5393_v37  ;;  %1760 = vmatpush.bf16.msrb.mxu2 %v5557_v18  ;;  %v5582_v8 = vor.u32 %v4144_v0, %v3779_v7 }
 0x2b6   : > { %1798 = vmatpush.bf16.msra.mxu0 %v5559_v33  ;;  %v5584_v38 = vor.u32 %v4143_v26, %v3781_v6  ;;  %v6894_v2 = vsub.f32 1.0, %v5302_v12  ;;  %v1646_v37 = vunpack.c.h.b16 %v5541_v39  ;;  %v1603_v28 = vmul.f32 %v5564_v36, %v5487_v40  ;;  %v3773_v12 = vld [vmem:[%s6687_s2 + $0xa8] sm:$0xf0]  ;;  %v4139_v6 = vld [vmem:[%s6687_s2 + $0x94] sm:$0xf] }
 0x2b7   : > { %v1648_v4 = vunpack.c.h.b16 %v5562_v58  ;;  %v1460_v15 = vsel %vm5570_vm6, %v5250_v32, %v1456_v51  ;;  %v6897_v20 = vand.u32 2147483647, %v5232_v59  ;;  %v1449_v7 = vor.u32 1.1754944e-38, %v1448_v62  ;;  %v3763_v59 = vld [vmem:[%s6687_s2 + $0x90] sm:$0xf] }
 0x2b8   : > { %v5592_v56 = vmul.f32 %v5268_v19, %v6894_v2  ;;  %vm1749_vm10 = vcmask 130048   ;;  %v4284_v29 = vpop.eup %4283  ;;  %v1445_v32 = vsel %vm5614_vm8, %v5298_v14, %v1441_v11  ;;  %v1575_v0 = vmul.f32 %v5489_v17, %v1574_v23  ;;  %v4140_v62 = vld [vmem:[%s6687_s2 + $0x94] sm:$0xf0]  ;;  %v3765_v14 = vld [vmem:[%s6687_s2 + $0x98] sm:$0xf0] }
 0x2b9   : > { %vm5620_vm9 = vcmp.eq.f32.partialorder %v6897_v20, 8.507059e+37  ;;  %v5627_v16 = vpack.c.b16 %v1648_v4, %v1646_v37  ;;  %v1560_v26 = vmul.f32 %v5513_v55, %v1559_v3  ;;  %v1604_v51 = vsub.f32 1.0, %v1603_v28  ;;  %1761 = vmatpush.bf16.msrb.mxu2 %v5582_v8  ;;  %v4136_v2 = vld [vmem:[%s6687_s2 + $0x74] sm:$0xf0]  ;;  %v4135_v37 = vld [vmem:[%s6687_s2 + $0x74] sm:$0xf] }
 0x2ba   : > { %v5643_v11 = vadd.f32 1.0, %v4284_v29  ;;  %1799 = vmatpush.bf16.msra.mxu0 %v5584_v38  ;;  %v5647_v23 = vor.u32 %v4142_v54, %v3771_v52  ;;  %v5649_v3 = vor.u32 %v4141_v42, %v3773_v12  ;;  %v1465_v4 = vsel %vm5531_vm4, %v5323_v22, %v1460_v15  ;;  %v3897_v54 = vld [vmem:[%s6687_s2 + $0x78] sm:$0xf0] }
 0x2bb   : > { %4285 = vrcp.f32 %v5578_v49  ;;  %v1581_v52 = vand.u32 2147483647, %v5413_v53  ;;  %v1583_v28 = vand.u32 2147483648, %v5413_v53  ;;  %3833 = vmatmul.msk.bf16.vlgmr.msra.gmra.mxu1 %vm1749_vm10, %v5627_v16  ;;  %v1450_v42 = vsel %vm5620_vm9, %v1449_v7, %v1445_v32  ;;  %v3829_v12 = vld [vmem:[%s6687_s2 + $0x118] sm:$0xf0] }
 0x2bc   : > { %6900 = vst [vmem:[#allocation80_spill] sm:$0xff] %v5647_v23  ;;  %vm1577_vm11 = vweird.f32 %v5413_v53  ;;  %v1566_v22 = vand.u32 2147483647, %v5422_v35  ;;  %4287 = vrcp.f32 %v5643_v11  ;;  %v1576_v15 = vadd.f32 %v5489_v17, %v1575_v0  ;;  %v3887_v32 = vld [vmem:[%s6687_s2 + $0x60] sm:$0xf] }
 0x2bd   : > { %vm1578_vm12 = vweird.f32 %v5489_v17  ;;  %v1561_v25 = vadd.f32 %v5513_v55, %v1560_v26  ;;  %v1647_v20 = vunpack.c.l.b16 %v5562_v58  ;;  %vm1563_vm13 = vweird.f32 %v5513_v55  ;;  %1762 = vmatpush.bf16.msrb.mxu2 %v5647_v23 }
 0x2be   : > { %v1605_v31 = vmul.f32 %v5564_v36, %v1604_v51  ;;  %1800 = vmatpush.bf16.msra.mxu0 %v5649_v3  ;;  %v5690_v7 = vor.u32 %v4140_v62, %v3763_v59  ;;  %v5692_v29 = vor.u32 %v4139_v6, %v3765_v14  ;;  %v1645_v0 = vunpack.c.l.b16 %v5541_v39  ;;  %v4134_v51 = vld [vmem:[%s6687_s2 + $0x64] sm:$0xf0]  ;;  %v4133_v59 = vld [vmem:[%s6687_s2 + $0x64] sm:$0xf]  ;;  %v3889_v62 = vld [vmem:[%s6687_s2 + $0x68] sm:$0xf0] }
 0x2bf   : > { %v5698_v26 = vor.u32 %v4136_v2, %v3895_v48  ;;  %v5700_v58 = vor.u32 %v4135_v37, %v3897_v54  ;;  %v5711_v6 = vor.u32 %v4155_v57, %v3829_v12  ;;  %v1622_v39 = vmul.f32 %v1465_v4, %v5196_v60  ;;  %vm5719_vm14 = vmor %vm1577_vm11, %vm1578_vm12  ;;  %v3903_v37 = vld [vmem:[%s6687_s2 + $0x80] sm:$0xf]  ;;  %v4138_v60 = vld [vmem:[%s6687_s2 + $0x84] sm:$0xf0] }
 0x2c0   : > { %6901 = vst [vmem:[#allocation81_spill] sm:$0xff] %v5690_v7  ;;  %v1621_v14 = vmul.f32 %v1450_v42, %v5204_v45  ;;  %vm1562_vm15 = vweird.f32 %v5422_v35  ;;  %v1568_v2 = vand.u32 2147483648, %v5422_v35  ;;  %v1580_v53 = vsel %vm5719_vm14, %v5489_v17, %v1576_v15  ;;  %v3879_v12 = vld [vmem:[%s6687_s2 + $0x50] sm:$0xf]  ;;  %v3871_v4 = vld [vmem:[%s6687_s2 + $0x40] sm:$0xf] }
 0x2c1   : > { %6902 = vst [vmem:[#allocation82_spill] sm:$0xff] %v5698_v26  ;;  %v5731_v45 = vpop.eup %4285  ;;  %vm5736_vm0 = vcmp.eq.f32.partialorder %v1581_v52, 8.507059e+37  ;;  %v1584_v54 = vor.u32 1.1754944e-38, %v1583_v28  ;;  %vm5742_vm1 = vmor %vm1562_vm15, %vm1563_vm13  ;;  %v1653_v42 = vpack.c.b16 %v1647_v20, %v1645_v0  ;;  %1820 = vmatpush.bf16.msrb.mxu1 %v5711_v6  ;;  %v1606_v52 = vadd.f32 %v5564_v36, %v1605_v31  ;;  %1763 = vmatpush.bf16.msrb.mxu2 %v5690_v7  ;;  %v4131_v20 = vld [vmem:[%s6687_s2 + $0x54] sm:$0xf] }
 0x2c2   : > { %v5747_v57 = vpop.eup %4287  ;;  %v1565_v17 = vsel %vm5742_vm1, %v5513_v55, %v1561_v25  ;;  %vm1607_vm2 = vweird.f32 %v5487_v40  ;;  %1801 = vmatpush.bf16.msra.mxu0 %v5692_v29  ;;  %v5756_v28 = vor.u32 %v4134_v51, %v3887_v32  ;;  %vm1608_vm3 = vweird.f32 %v5564_v36  ;;  %v4132_v25 = vld [vmem:[%s6687_s2 + $0x54] sm:$0xf0]  ;;  %v3881_v31 = vld [vmem:[%s6687_s2 + $0x58] sm:$0xf0] }
 0x2c3   : > { %v1588_v15 = vmul.f32 %v5747_v57, %v5643_v11  ;;  %v5766_v55 = vor.u32 %v4133_v59, %v3889_v62  ;;  %v5777_v32 = vor.u32 %v4138_v60, %v3903_v37  ;;  %vm1567_vm4 = vcmp.eq.f32.partialorder %v1566_v22, 8.507059e+37  ;;  %vm5790_vm5 = vmor %vm1607_vm2, %vm1608_vm3  ;;  %v4137_v37 = vld [vmem:[%s6687_s2 + $0x84] sm:$0xf] }
 0x2c4   : > { %6909 = vst [vmem:[#allocation83_spill] sm:$0xff] %v5756_v28  ;;  %v1569_v0 = vor.u32 1.1754944e-38, %v1568_v2  ;;  %v1613_v51 = vand.u32 2147483648, %v5487_v40  ;;  %v5780_v59 = vpack.c.bf16 %v1622_v39, %v1621_v14  ;;  %v1585_v62 = vsel %vm5736_vm0, %v1584_v54, %v1580_v53  ;;  %1764 = vmatmul.bf16.vlgmr.msrb.gmra.mxu2 %v1653_v42  ;;  %v4130_v54 = vld [vmem:[%s6687_s2 + $0x44] sm:$0xf0] }
 0x2c5   : > { %1946 = vmatpush.bf16.msra.mxu2 %v5698_v26  ;;  %v1611_v48 = vand.u32 2147483647, %v5487_v40  ;;  %v1589_v35 = vsub.f32 1.0, %v1588_v15  ;;  %v1596_v26 = vand.u32 2147483647, %v5643_v11  ;;  %1802 = vmatmul.bf16.vlgmr.msra.gmra.mxu0 %v1653_v42  ;;  %v1598_v39 = vand.u32 2147483648, %v5643_v11 }
 0x2c6   : > { %1984 = vmatpush.bf16.msrb.mxu0 %v5700_v58  ;;  %v1570_v7 = vsel %vm1567_vm4, %v1569_v0, %v1565_v17  ;;  %v5795_v14 = vor.u32 %v4132_v25, %v3879_v12  ;;  %v5797_v2 = vor.u32 %v4131_v20, %v3881_v31  ;;  %1972 = vmatpush.bf16.msra.mxu3 %v5777_v32  ;;  %v3905_v40 = vld [vmem:[%s6687_s2 + $0x88] sm:$0xf0]  ;;  %vm1593_vm6 = vweird.f32 %v5747_v57  ;;  %v4129_v12 = vld [vmem:[%s6687_s2 + $0x44] sm:$0xf] }
 0x2c7   : > { %v1610_v60 = vsel %vm5790_vm5, %v5564_v36, %v1606_v52  ;;  %v1590_v53 = vmul.f32 %v5747_v57, %v1589_v35  ;;  %v5819_v42 = vor.u32 %v4137_v37, %v3905_v40  ;;  %v6913_v36 = vsub.f32 1.0, %v5272_v13  ;;  %v3873_v15 = vld [vmem:[%s6687_s2 + $0x48] sm:$0xf0] }
 0x2c8   : > { %6912 = vst [vmem:[#allocation84_spill] sm:$0xff] %v5795_v14  ;;  %vm1413_vm8 = vweird.f32 %v5268_v19  ;;  %4289 = vrcp.f32 %v5575_v27  ;;  %v1614_v52 = vor.u32 1.1754944e-38, %v1613_v51  ;;  %v1629_v25 = vmul.f32 %v1570_v7, %v5288_v24  ;;  %v4128_v7 = vld [vmem:[%s6687_s2 + $0x34] sm:$0xf0] }
 0x2c9   : > { %1947 = vmatpush.bf16.msra.mxu2 %v5756_v28  ;;  %v1425_v17 = vmul.f32 %v5246_v43, %v6913_v36  ;;  %vm1612_vm9 = vcmp.eq.f32.partialorder %v1611_v48, 8.507059e+37  ;;  %v1591_v13 = vadd.f32 %v5747_v57, %v1590_v53  ;;  %vm1592_vm11 = vweird.f32 %v5643_v11  ;;  %2010 = vmatpush.bf16.msra.mxu1 %v5819_v42  ;;  %v3855_v36 = vld [vmem:[%s6687_s2 + $0x20] sm:$0xf] }
 0x2ca   : > { %1985 = vmatpush.bf16.msrb.mxu0 %v5766_v55  ;;  %v1411_v20 = vadd.f32 %v5268_v19, %v5592_v56  ;;  %v1630_v31 = vmul.f32 %v1585_v62, %v5276_v34  ;;  %v1615_v0 = vsel %vm1612_vm9, %v1614_v52, %v1610_v60  ;;  %vm1594_vm12 = vmor %vm1592_vm11, %vm1593_vm6  ;;  %v1599_v51 = vor.u32 1.1754944e-38, %v1598_v39  ;;  %v3863_v34 = vld [vmem:[%s6687_s2 + $0x30] sm:$0xf] }
 0x2cb   : > { %v1595_v35 = vsel %vm1594_vm12, %v5747_v57, %v1591_v13  ;;  %vm1597_vm13 = vcmp.eq.f32.partialorder %v1596_v26, 8.507059e+37  ;;  %v5844_v24 = vor.u32 %v4130_v54, %v3871_v4  ;;  %v5846_v11 = vor.u32 %v4129_v12, %v3873_v15  ;;  %3835 = vmatmul.msk.bf16.vlgmr.msrb.gmra.mxu1 %vm1749_vm10, %v5627_v16  ;;  %v4127_v26 = vld [vmem:[%s6687_s2 + $0x34] sm:$0xf]  ;;  %v3865_v57 = vld [vmem:[%s6687_s2 + $0x38] sm:$0xf0] }
 0x2cc   : > { %vm1412_vm14 = vweird.f32 %v5223_v30  ;;  %v1600_v56 = vsel %vm1597_vm13, %v1599_v51, %v1595_v35  ;;  %v1632_v16 = vmul.f32 %v1615_v0, %v5337_v50  ;;  %v1639_v22 = vpack.c.bf16 %v1630_v31, %v1629_v25  ;;  %v4125_v25 = vld [vmem:[%s6687_s2 + $0x24] sm:$0xf]  ;;  %v3857_v13 = vld [vmem:[%s6687_s2 + $0x28] sm:$0xf0]  ;;  %v3839_v4 = vld [vmem:[%s6687_s2] sm:$0xf] }
 0x2cd   : > { %1948 = vmatpush.bf16.msra.mxu2 %v5795_v14  ;;  %6914 = vst [vmem:[#allocation85_spill] sm:$0xff] %v5844_v24  ;;  %vm5865_vm15 = vmor %vm1412_vm14, %vm1413_vm8  ;;  %v1631_v48 = vmul.f32 %v1600_v56, %v5453_v61  ;;  %v1426_v37 = vadd.f32 %v5246_v43, %v1425_v17  ;;  %vm1428_vm0 = vweird.f32 %v5246_v43  ;;  %v1433_v40 = vand.u32 2147483648, %v5215_v47 }
 0x2ce   : > { %1986 = vmatpush.bf16.msrb.mxu0 %v5797_v2  ;;  %v5871_v39 = vpop.eup %4289  ;;  %v1415_v60 = vsel %vm5865_vm15, %v5268_v19, %v1411_v20  ;;  %v6917_v53 = vand.u32 2147483647, %v5215_v47  ;;  %v5887_v61 = vor.u32 %v4128_v7, %v3863_v34  ;;  %v5889_v54 = vor.u32 %v4127_v26, %v3865_v57  ;;  %v4126_v19 = vld [vmem:[%s6687_s2 + $0x24] sm:$0xf0] }
 0x2cf   : > { %v1640_v50 = vpack.c.bf16 %v1632_v16, %v1631_v48  ;;  %vm1427_vm2 = vweird.f32 %v5215_v47  ;;  %v6921_v17 = vand.u32 2147483647, %v5223_v30  ;;  %v6922_v52 = vand.u32 2147483648, %v5223_v30  ;;  %v3847_v16 = vld [vmem:[%s6687_s2 + $0x10] sm:$0xf] }
 0x2d0   : > { %vm5881_vm1 = vcmp.eq.f32.partialorder %v6917_v53, 8.507059e+37  ;;  %6920 = vst [vmem:[#allocation86_spill] sm:$0xff] %v5887_v61  ;;  %v1468_v15 = vmul.f32 %v5731_v45, %v5578_v49  ;;  %vm5912_vm4 = vmor %vm1427_vm2, %vm1428_vm0  ;;  %v1649_v20 = vunpack.c.l.b16 %v1639_v22  ;;  %v1650_v30 = vunpack.c.h.b16 %v1639_v22  ;;  %v4123_v48 = vld [vmem:[%s6687_s2 + $0x14] sm:$0xf]  ;;  %v3849_v22 = vld [vmem:[%s6687_s2 + $0x18] sm:$0xf0] }
 0x2d1   : > { %1949 = vmatpush.bf16.msra.mxu2 %v5844_v24  ;;  %vm1417_vm3 = vcmp.eq.f32.partialorder %v6921_v17, 8.507059e+37  ;;  %v1419_v12 = vor.u32 1.1754944e-38, %v6922_v52  ;;  %v1651_v31 = vunpack.c.l.b16 %v1640_v50  ;;  %v1652_v0 = vunpack.c.h.b16 %v1640_v50  ;;  %v4121_v17 = vld [vmem:[%s6687_s2 + $0x4] sm:$0xf]  ;;  %v3841_v52 = vld [vmem:[%s6687_s2 + $0x8] sm:$0xf0] }
 0x2d2   : > { %1987 = vmatpush.bf16.msrb.mxu0 %v5846_v11  ;;  %v1430_v51 = vsel %vm5912_vm4, %v5246_v43, %v1426_v37  ;;  %v1483_v34 = vmul.f32 %v5871_v39, %v5575_v27  ;;  %v5921_v56 = vor.u32 %v4126_v19, %v3855_v36  ;;  %v1434_v7 = vor.u32 1.1754944e-38, %v1433_v40  ;;  %v4124_v43 = vld [vmem:[%s6687_s2 + $0x14] sm:$0xf0] }
 0x2d3   : > { %v1420_v35 = vsel %vm1417_vm3, %v1419_v12, %v1415_v60  ;;  %v1655_v26 = vpack.c.b16 %v1651_v31, %v1649_v20  ;;  %v1656_v57 = vpack.c.b16 %v1652_v0, %v1650_v30  ;;  %v5925_v62 = vor.u32 %v4125_v25, %v3857_v13 }
 0x2d4   : > { %6925 = vst [vmem:[#allocation87_spill] sm:$0xff] %v5921_v56  ;;  %v1435_v37 = vsel %vm5881_vm1, %v1434_v7, %v1430_v51  ;;  %v1469_v40 = vsub.f32 1.0, %v1468_v15  ;;  %v1619_v60 = vmul.f32 %v1420_v35, %v5200_v63  ;;  %v1484_v53 = vsub.f32 1.0, %v1483_v34  ;;  %v4122_v63 = vld [vmem:[%s6687_s2 + $0x4] sm:$0xf0] }
 0x2d5   : > { %1950 = vmatpush.bf16.msra.mxu2 %v5887_v61  ;;  %3834 = vmatmul.msk.bf16.vlgmr.msrb.gmra.mxu3 %vm1749_vm10, %v1656_v57  ;;  %v5945_v50 = vor.u32 %v4124_v43, %v3847_v16  ;;  %v5947_v36 = vor.u32 %v4123_v48, %v3849_v22  ;;  %v1620_v19 = vmul.f32 %v1435_v37, %v5190_v10  ;;  %vm1473_vm5 = vweird.f32 %v5731_v45 }
 0x2d6   : > { %1988 = vmatpush.bf16.msrb.mxu0 %v5889_v54  ;;  %1769 = vmatmul.bf16.gmra.mxu2 %v1655_v26  ;;  %v1470_v12 = vmul.f32 %v5731_v45, %v1469_v40  ;;  %v1485_v25 = vmul.f32 %v5871_v39, %v1484_v53  ;;  %v5966_v10 = vor.u32 %v4122_v63, %v3839_v4  ;;  %vm1488_vm6 = vweird.f32 %v5871_v39 }
 0x2d7   : > { %1807 = vmatmul.bf16.gmra.mxu0 %v1655_v26  ;;  %6926 = vst [vmem:[#allocation88_spill] sm:$0xff] %v5945_v50  ;;  %v1634_v15 = vpack.c.bf16 %v1620_v19, %v1619_v60  ;;  %v5968_v13 = vor.u32 %v4121_v17, %v3841_v52  ;;  %vm1472_vm8 = vweird.f32 %v5578_v49  ;;  %v1478_v20 = vand.u32 2147483648, %v5578_v49 }
 0x2d8   : > { %6927 = vst [vmem:[#allocation89_spill] sm:$0xff] %v5966_v10  ;;  %v1471_v47 = vadd.f32 %v5731_v45, %v1470_v12  ;;  %v1486_v31 = vadd.f32 %v5871_v39, %v1485_v25  ;;  %v1476_v0 = vand.u32 2147483647, %v5578_v49  ;;  %v1836_v35 = vunpack.c.l.b16 %v5209_v44  ;;  %vm1474_vm9 = vmor %vm1472_vm8, %vm1473_vm5 }
 0x2d9   : > { %1951 = vmatpush.bf16.msra.mxu2 %v5921_v56  ;;  %6928 = vst [vmem:[#allocation90_spill] sm:$0xff] %v5968_v13  ;;  %v1839_v30 = vunpack.c.h.b16 %v1634_v15  ;;  %v1838_v51 = vunpack.c.l.b16 %v1634_v15  ;;  %v1493_v34 = vand.u32 2147483648, %v5575_v27  ;;  %v1837_v7 = vunpack.c.h.b16 %v5209_v44 }
 0x2da   : > { %1989 = vmatpush.bf16.msrb.mxu0 %v5925_v62  ;;  %vm1487_vm11 = vweird.f32 %v5575_v27  ;;  %v1491_v26 = vand.u32 2147483647, %v5575_v27  ;;  %v1479_v49 = vor.u32 1.1754944e-38, %v1478_v20  ;;  %vm1477_vm13 = vcmp.eq.f32.partialorder %v1476_v0, 8.507059e+37 }
 0x2db   : > { %3836 = vmatmul.msk.bf16.gmra.mxu1 %vm1749_vm10, %v1656_v57  ;;  %v1475_v57 = vsel %vm1474_vm9, %v5731_v45, %v1471_v47  ;;  %vm1489_vm12 = vmor %vm1487_vm11, %vm1488_vm6  ;;  %v1845_v16 = vpack.c.b16 %v1839_v30, %v1837_v7  ;;  %v1844_v48 = vpack.c.b16 %v1838_v51, %v1836_v35  ;;  %v1494_v22 = vor.u32 1.1754944e-38, %v1493_v34  ;;  %v6929_v45 = vld [vmem:[#allocation75_spill] sm:$0xff] }
 0x2dc   : > { %v1490_v43 = vsel %vm1489_vm12, %v5871_v39, %v1486_v31  ;;  %v1480_v37 = vsel %vm1477_vm13, %v1479_v49, %v1475_v57  ;;  %vm1492_vm14 = vcmp.eq.f32.partialorder %v1491_v26, 8.507059e+37  ;;  %v1840_v39 = vunpack.c.l.b16 %v5780_v59 }
 0x2dd   : > { %1952 = vmatpush.bf16.msra.mxu2 %v5945_v50  ;;  %v1495_v44 = vsel %vm1492_vm14, %v1494_v22, %v1490_v43  ;;  %v1623_v27 = vmul.f32 %v1480_v37, %v5252_v46  ;;  %v1841_v19 = vunpack.c.h.b16 %v5780_v59  ;;  %v6779_v22 = vmov 2   ;;  %v6022_v50 = vld [vmem:[%s6688_s3 + $0x58] sm:$0xff] }
 0x2de   : > { %1990 = vmatpush.bf16.msrb.mxu0 %v5947_v36  ;;  %v1624_v40 = vmul.f32 %v1495_v44, %v6929_v45  ;;  %4204 = vset.pattern.permute.xlu0 %v6779_v22  ;;  %v4362_v45 = vld [vmem:[%s6688_s3 + $0x8] sm:$0xff] }
 0x2df   : > { %4205 = vset.pattern.permute.xlu1 %v6779_v22  ;;  %4206 = vset.pattern.permute.xlu2 %v6779_v22 }
 0x2e0   : > { %v1636_v60 = vpack.c.bf16 %v1624_v40, %v1623_v27  ;;  %v4361_v27 = vld [vmem:[%s6688_s3] sm:$0xff]  ;;  %2031 = vperm.xlu1 %4205, %v4362_v45  }
 0x2e1   : > { %1953 = vmatpush.bf16.msra.mxu2 %v5966_v10  ;;  %2027 = vperm.xlu0 %4204, %v4361_v27  }
 0x2e2   : > { %1991 = vmatpush.bf16.msrb.mxu0 %v5968_v13  ;;  %v1842_v53 = vunpack.c.l.b16 %v1636_v60  ;;  %v1843_v4 = vunpack.c.h.b16 %v1636_v60  ;;  %v4363_v60 = vld [vmem:[%s6688_s3 + $0x10] sm:$0xff] }
 0x2e3   : > { %2035 = vperm.xlu2 %4206, %v4363_v60   ;;  %v6017_v60 = vld [vmem:[%s6688_s3 + $0x50] sm:$0xff] }
 0x2e4   : > { %v1846_v63 = vpack.c.b16 %v1842_v53, %v1840_v39  ;;  %v1847_v17 = vpack.c.b16 %v1843_v4, %v1841_v19  ;;  %v4364_v19 = vld [vmem:[%s6688_s3 + $0x18] sm:$0xff] }
 0x2e5   : > { %3909 = vmatmul.msk.bf16.vlgmr.msra.gmra.mxu3 %vm1749_vm10, %v1845_v16 }
 0x2e6   : > { %1954 = vmatmul.bf16.vlgmr.msra.gmra.mxu2 %v1844_v48 }
 0x2e7   : > { %1992 = vmatmul.bf16.vlgmr.msrb.gmra.mxu0 %v1844_v48 }
 0x2e8   : > { %2039 = vperm.xlu1 %4205, %v4364_v19  }
 0x2eb   : > { %3911 = vmatmul.msk.bf16.vlgmr.msra.gmra.mxu1 %vm1749_vm10, %v1845_v16 }
 0x2f5   : > { %3910 = vmatmul.msk.bf16.gmra.mxu3 %vm1749_vm10, %v1847_v17 }
 0x2f6   : > { %1959 = vmatmul.bf16.gmra.mxu2 %v1846_v63 }
 0x2f7   : > { %1997 = vmatmul.bf16.gmra.mxu0 %v1846_v63  ;;  %v6930_v63 = vmov 0  }
 0x2f8   : > { %4208 = vset.pattern.permute.xlu0 %v6930_v63  ;;  %4207 = vset.pattern.permute.xlu2 %v6930_v63 }
 0x2f9   : > { %2250 = vperm.xlu0 %4208, %v6022_v50   ;;  %2245 = vperm.xlu2 %4207, %v6017_v60  }
 0x2fb   : > { %3912 = vmatmul.msk.bf16.gmra.mxu1 %vm1749_vm10, %v1847_v17 }
 0x338   : > { %v1784_v46 = vpop.f32.mrf.mxu1 }
 0x340   : > { %v1786_v52 = vpop.f32.mrf.mxu1 }
 0x342   : > { %v1803_v12 = vpop.f32.mrf.mxu0 }
 0x347   : > { %v1765_v15 = vpop.f32.mrf.mxu2 }
 0x348   : > { %v1822_v25 = vpop.f32.mrf.mxu1 }
 0x349   : > { %v1823_v13 = vadd.f32 %v1822_v25, %v1803_v12  ;;  %v6050_v12 = vld [vmem:[%s6688_s3 + $0x48] sm:$0xff]  ;;  %v6936_v25 = vmov 3  }
 0x34a   : > { %v1805_v47 = vpop.f32.mrf.mxu0 }
 0x34f   : > { %v1767_v20 = vpop.f32.mrf.mxu2 }
 0x350   : > { %v1824_v30 = vpop.f32.mrf.mxu1  ;;  %v1787_v19 = vadd.f32 %v1786_v52, %v1767_v20 }
 0x354   : > { %v1808_v31 = vpop.f32.mrf.mxu0 }
 0x358   : > { %v1789_v51 = vpop.f32.mrf.mxu3  ;;  %v1827_v59 = vpop.f32.mrf.mxu1 }
 0x359   : > { %v1770_v0 = vpop.f32.mrf.mxu2  ;;  %v1828_v22 = vadd.f32 %v1827_v59, %v1808_v31 }
 0x35a   : > { %v1790_v27 = vadd.f32 %v1789_v51, %v1770_v0  ;;  %v1825_v0 = vadd.f32 %v1824_v30, %v1805_v47 }
 0x35c   : > { %v1810_v35 = vpop.f32.mrf.mxu0 }
 0x360   : > { %v1791_v7 = vpop.f32.mrf.mxu3  ;;  %v1829_v26 = vpop.f32.mrf.mxu1 }
 0x361   : > { %v1772_v34 = vpop.f32.mrf.mxu2  ;;  %v1830_v10 = vadd.f32 %v1829_v26, %v1810_v35  ;;  %v6931_v35 = vmov 1   ;;  %v1785_v26 = vadd.f32 %v1784_v46, %v1765_v15  ;;  %v6935_v15 = vld [vmem:[#allocation9_spill] sm:$0xff] }
 0x362   : > { %v1792_v56 = vadd.f32 %v1791_v7, %v1772_v34  ;;  %4209 = vset.pattern.permute.xlu1 %v6931_v35  ;;  %4213 = vset.pattern.permute.xlu0 %v6931_v35 }
 0x363   : > { %2270 = vperm.xlu1 %4209, %v6017_v60   ;;  %4210 = vset.pattern.permute.xlu2 %v6931_v35 }
 0x364   : > { %v1993_v57 = vpop.f32.mrf.mxu0  ;;  %2274 = vperm.xlu2 %4210, %v6022_v50  }
 0x365   : > { %v1994_v47 = vadd.f32 %v1993_v57, %v1823_v13  ;;  %v6934_v13 = vld [vmem:[#allocation10_spill] sm:$0xff] }
 0x366   : > { %v6937_v57 = vld [vmem:[#allocation14_spill] sm:$0xff] }
 0x368   : > { %v1974_v16 = vpop.f32.mrf.mxu3  ;;  %v2012_v43 = vpop.f32.mrf.mxu1 }
 0x369   : > { %v1955_v49 = vpop.f32.mrf.mxu2 }
 0x36b   : > { %4211 = vset.pattern.permute.xlu1 %v6930_v63 }
 0x36c   : > { %v1995_v48 = vpop.f32.mrf.mxu0  ;;  %4212 = vset.pattern.permute.xlu2 %v6930_v63  ;;  %v6945_v63 = vld [vmem:[#allocation36_spill] sm:$0xff] }
 0x36d   : > { %v1996_v52 = vadd.f32 %v1995_v48, %v1825_v0  ;;  %2240 = vperm.xlu2 %4212, %v6050_v12   ;;  %v4160_v48 = vld [vmem:[%s6689_s4 + $0x18] sm:$0xff]  ;;  %v6948_v0 = vld [vmem:[#allocation39_spill] sm:$0xff] }
 0x370   : > { %v1976_v44 = vpop.f32.mrf.mxu3  ;;  %v2014_v40 = vpop.f32.mrf.mxu1 }
 0x371   : > { %v1957_v37 = vpop.f32.mrf.mxu2  ;;  %v2015_v30 = vadd.f32 %v2014_v40, %v1996_v52  ;;  %v6943_v40 = vld [vmem:[#allocation32_spill] sm:$0xff]  ;;  %v6954_v52 = vld [vmem:[#allocation51_spill] sm:$0xff] }
 0x372   : > { %v1958_v24 = vadd.f32 %v1957_v37, %v1787_v19  ;;  %v6941_v37 = vld [vmem:[#allocation24_spill] sm:$0xff] }
 0x373   : > { %v6947_v19 = vld [vmem:[#allocation40_spill] sm:$0xff] }
 0x374   : > { %v1998_v53 = vpop.f32.mrf.mxu0 }
 0x375   : > { %v1999_v31 = vadd.f32 %v1998_v53, %v1828_v22  ;;  %v1977_v22 = vadd.f32 %v1976_v44, %v1958_v24  ;;  %v6932_v24 = vld [vmem:[#allocation8_spill] sm:$0xff]  ;;  %4215 = vset.pattern.permute.xlu2 %v6936_v25  ;;  %v6942_v44 = vld [vmem:[#allocation23_spill] sm:$0xff] }
 0x378   : > { %v1979_v39 = vpop.f32.mrf.mxu3  ;;  %v2017_v17 = vpop.f32.mrf.mxu1 }
 0x379   : > { %v1960_v4 = vpop.f32.mrf.mxu2  ;;  %v2018_v34 = vadd.f32 %v2017_v17, %v1999_v31  ;;  %v6946_v17 = vld [vmem:[#allocation35_spill] sm:$0xff]  ;;  %v6949_v31 = vld [vmem:[#allocation44_spill] sm:$0xff] }
 0x37a   : > { %v1961_v61 = vadd.f32 %v1960_v4, %v1790_v27  ;;  %v1956_v4 = vadd.f32 %v1955_v49, %v1785_v26  ;;  %v6938_v49 = vld [vmem:[#allocation11_spill] sm:$0xff]  ;;  %v6953_v26 = vld [vmem:[#allocation52_spill] sm:$0xff] }
 0x37c   : > { %v2000_v45 = vpop.f32.mrf.mxu0  ;;  %v1980_v27 = vadd.f32 %v1979_v39, %v1961_v61  ;;  %v1975_v46 = vadd.f32 %v1974_v16, %v1956_v4  ;;  %v6933_v61 = vld [vmem:[#allocation4_spill] sm:$0xff]  ;;  %v6944_v39 = vld [vmem:[#allocation31_spill] sm:$0xff] }
 0x37d   : > { %v2001_v51 = vadd.f32 %v2000_v45, %v1830_v10  ;;  %v2013_v45 = vadd.f32 %v2012_v43, %v1994_v47  ;;  %v6939_v16 = vld [vmem:[#allocation20_spill] sm:$0xff]  ;;  %v6940_v43 = vld [vmem:[#allocation19_spill] sm:$0xff] }
 0x37e   : > { %v6958_v4 = vld [vmem:[#allocation59_spill] sm:$0xff] }
 0x37f   : > { %v6960_v47 = vld [vmem:[#allocation63_spill] sm:$0xff] }
 0x380   : > { %v2019_v28 = vpop.f32.mrf.mxu1  ;;  %v1981_v20 = vpop.f32.mrf.mxu3 }
 0x381   : > { %v1962_v59 = vpop.f32.mrf.mxu2  ;;  %v2020_v7 = vadd.f32 %v2019_v28, %v2001_v51  ;;  %v2023_v28 = vpack.c.bf16 %v2015_v30, %v2013_v45  ;;  %v6950_v51 = vld [vmem:[#allocation43_spill] sm:$0xff]  ;;  %v6961_v30 = vld [vmem:[#allocation68_spill] sm:$0xff] }
 0x382   : > { %v1963_v14 = vadd.f32 %v1962_v59, %v1792_v56  ;;  %v6031_v56 = vld [vmem:[%s6688_s3 + $0x40] sm:$0xff]  ;;  %v6951_v59 = vld [vmem:[#allocation48_spill] sm:$0xff] }
 0x383   : > { %v2025_v10 = vpack.c.bf16 %v2020_v7, %v2018_v34  ;;  %2262 = vperm.xlu0 %4213, %v6031_v56   ;;  %2235 = vperm.xlu1 %4211, %v6031_v56   ;;  %v6956_v34 = vld [vmem:[#allocation55_spill] sm:$0xff]  ;;  %v6957_v7 = vld [vmem:[#allocation60_spill] sm:$0xff] }
 0x384   : > { %v1982_v23 = vadd.f32 %v1981_v20, %v1963_v14  ;;  %v2022_v14 = vpack.c.bf16 %v1977_v22, %v1975_v46  ;;  %v6955_v20 = vld [vmem:[#allocation56_spill] sm:$0xff] }
 0x385   : > { %2083 = vmatpush.bf16.msrb.mxu3 %v2025_v10  ;;  %v6962_v10 = vld [vmem:[#allocation67_spill] sm:$0xff]  ;;  %v6963_v22 = vld [vmem:[#allocation72_spill] sm:$0xff] }
 0x386   : > { %v2024_v53 = vpack.c.bf16 %v1982_v23, %v1980_v27  ;;  %v4159_v23 = vld [vmem:[%s6689_s4 + $0x10] sm:$0xff] }
 0x387   : > { %v6959_v27 = vld [vmem:[#allocation64_spill] sm:$0xff] }
 0x388   : > { %2064 = vmatpush.bf16.msrb.mxu2 %v2024_v53  ;;  %v6964_v53 = vld [vmem:[#allocation71_spill] sm:$0xff] }
 0x389   : > { %2084 = vmatpush.bf16.msrb.mxu3 %v2023_v28 }
 0x38b   : > { %4217 = vset.pattern.permute.xlu0 %v6936_v25  ;;  %4214 = vset.pattern.permute.xlu1 %v6931_v35  ;;  %v6952_v35 = vld [vmem:[#allocation47_spill] sm:$0xff] }
 0x38c   : > { %2065 = vmatpush.bf16.msrb.mxu2 %v2022_v14  ;;  %3923 = vmatmul.msk.bf16.vlgmr.msrb.gmra.mxu3 %vm552_vm7, %v4159_v23 }
 0x38d   : > { %2366 = vmatpush.bf16.msra.mxu3 %v6932_v24  ;;  %2266 = vperm.xlu1 %4214, %v6050_v12   ;;  %v2028_v24 = vpop.permute.xlu0 %2027 }
 0x38f   : > { %3921 = vmatmul.msk.bf16.vlgmr.msrb.gmra.mxu2 %vm552_vm7, %v4159_v23  ;;  %v2032_v23 = vpop.permute.xlu1 %2031 }
 0x390   : > { %2347 = vmatpush.bf16.msra.mxu2 %v6933_v61  ;;  %v2036_v61 = vpop.permute.xlu2 %2035 }
 0x391   : > { %2367 = vmatpush.bf16.msra.mxu3 %v6934_v13 }
 0x394   : > { %2348 = vmatpush.bf16.msra.mxu2 %v6935_v15 }
 0x395   : > { %2368 = vmatpush.bf16.msra.mxu3 %v6937_v57  ;;  %4216 = vset.pattern.permute.xlu1 %v6936_v25 }
 0x398   : > { %2349 = vmatpush.bf16.msra.mxu2 %v6938_v49 }
 0x399   : > { %2369 = vmatpush.bf16.msra.mxu3 %v6939_v16 }
 0x39c   : > { %2350 = vmatpush.bf16.msra.mxu2 %v6940_v43  ;;  %3924 = vmatmul.msk.bf16.gmra.mxu3 %vm552_vm7, %v4160_v48 }
 0x39d   : > { %2370 = vmatpush.bf16.msra.mxu3 %v6941_v37  ;;  %v6965_v37 = vld [vmem:[#allocation12_spill] sm:$0xff] }
 0x39f   : > { %3922 = vmatmul.msk.bf16.gmra.mxu2 %vm552_vm7, %v4160_v48 }
 0x3a0   : > { %2351 = vmatpush.bf16.msra.mxu2 %v6942_v44 }
 0x3a1   : > { %2371 = vmatpush.bf16.msra.mxu3 %v6943_v40  ;;  %v6966_v40 = vld [vmem:[#allocation13_spill] sm:$0xff] }
 0x3a4   : > { %2352 = vmatpush.bf16.msra.mxu2 %v6944_v39 }
 0x3a5   : > { %2372 = vmatpush.bf16.msra.mxu3 %v6945_v63  ;;  %v6967_v63 = vld [vmem:[#allocation15_spill] sm:$0xff] }
 0x3a8   : > { %2353 = vmatpush.bf16.msra.mxu2 %v6946_v17 }
 0x3a9   : > { %2373 = vmatpush.bf16.msra.mxu3 %v6947_v19  ;;  %v6968_v19 = vld [vmem:[#allocation3_spill] sm:$0xff] }
 0x3ac   : > { %2354 = vmatpush.bf16.msra.mxu2 %v6948_v0 }
 0x3ad   : > { %2442 = vmatpush.bf16.msrb.mxu3 %v6949_v31  ;;  %v6969_v31 = vld [vmem:[#allocation16_spill] sm:$0xff] }
 0x3b0   : > { %2423 = vmatpush.bf16.msrb.mxu2 %v6950_v51 }
 0x3b1   : > { %2443 = vmatpush.bf16.msrb.mxu3 %v6951_v59  ;;  %v2040_v59 = vpop.permute.xlu1 %2039 }
 0x3b4   : > { %2424 = vmatpush.bf16.msrb.mxu2 %v6952_v35  ;;  %v6970_v35 = vld [vmem:[#allocation6_spill] sm:$0xff] }
 0x3b5   : > { %2444 = vmatpush.bf16.msrb.mxu3 %v6953_v26 }
 0x3b8   : > { %2425 = vmatpush.bf16.msrb.mxu2 %v6954_v52  ;;  %v4365_v52 = vld [vmem:[%s4459_s10 + $0x10] sm:$0xff] }
 0x3b9   : > { %2445 = vmatpush.bf16.msrb.mxu3 %v6955_v20 }
 0x3bc   : > { %2426 = vmatpush.bf16.msrb.mxu2 %v6956_v34  ;;  %v4366_v34 = vld [vmem:[%s4459_s10 + $0x18] sm:$0xff] }
 0x3bd   : > { %2446 = vmatpush.bf16.msrb.mxu3 %v6957_v7 }
 0x3c0   : > { %2427 = vmatpush.bf16.msrb.mxu2 %v6958_v4 }
 0x3c1   : > { %2447 = vmatpush.bf16.msrb.mxu3 %v6959_v27  ;;  %v4367_v27 = vld [vmem:[%s4459_s10] sm:$0xff] }
 0x3c4   : > { %2428 = vmatpush.bf16.msrb.mxu2 %v6960_v47 }
 0x3c5   : > { %2448 = vmatpush.bf16.msrb.mxu3 %v6961_v30  ;;  %v4368_v30 = vld [vmem:[%s4459_s10 + $0x20] sm:$0xff] }
 0x3c8   : > { %2429 = vmatpush.bf16.msrb.mxu2 %v6962_v10 }
 0x3c9   : > { %2449 = vmatpush.bf16.msrb.mxu3 %v6963_v22 }
 0x3cc   : > { %2430 = vmatpush.bf16.msrb.mxu2 %v6964_v53 }
 0x40f   : > { %v2086_v45 = vpop.f32.mrf.mxu3 }
 0x410   : > { %v2087_v43 = vadd.f32 %v2086_v45, %v2028_v24  ;;  %v4369_v45 = vld [vmem:[%s4459_s10 + $0x8] sm:$0xff] }
 0x412   : > { %v2067_v46 = vpop.f32.mrf.mxu2  ;;  %v2097_v51 = vmul.f32 %v2087_v43, %v6969_v31 }
 0x413   : > { %v2068_v57 = vadd.f32 %v2067_v46, %v2028_v24 }
 0x414   : > { %v6112_v46 = vadd.f32 %v4369_v45, %v2097_v51 }
 0x415   : > { %v2096_v17 = vmul.f32 %v2068_v57, %v6967_v63 }
 0x417   : > { %v2088_v28 = vpop.f32.mrf.mxu3  ;;  %v6106_v47 = vadd.f32 %v4367_v27, %v2096_v17  ;;  %v6976_v27 = vld [vmem:[#allocation2_spill] sm:$0xff] }
 0x418   : > { %v2089_v25 = vadd.f32 %v2088_v28, %v2032_v23  ;;  %v4370_v28 = vld [vmem:[%s4459_s10 + $0x28] sm:$0xff] }
 0x41a   : > { %v2069_v14 = vpop.f32.mrf.mxu2  ;;  %v2099_v39 = vmul.f32 %v2089_v25, %v6966_v40  ;;  %v6973_v25 = vld [vmem:[#allocation7_spill] sm:$0xff] }
 0x41b   : > { %v2070_v13 = vadd.f32 %v2069_v14, %v2032_v23 }
 0x41c   : > { %v6103_v7 = vadd.f32 %v4366_v34, %v2099_v39 }
 0x41d   : > { %v2098_v44 = vmul.f32 %v2070_v13, %v6965_v37  ;;  %v4372_v37 = vld [vmem:[%s4459_s10 + $0x38] sm:$0xff] }
 0x41f   : > { %v2091_v16 = vpop.f32.mrf.mxu3  ;;  %v6100_v20 = vadd.f32 %v4365_v52, %v2098_v44 }
 0x420   : > { %v2092_v48 = vadd.f32 %v2091_v16, %v2036_v61  ;;  %v4371_v16 = vld [vmem:[%s4459_s10 + $0x30] sm:$0xff] }
 0x421   : > { %v2147_v24 = vadd.f32 %v6100_v20, %v6106_v47 }
 0x422   : > { %v2072_v15 = vpop.f32.mrf.mxu2  ;;  %v2101_v26 = vmul.f32 %v2092_v48, %v6970_v35 }
 0x423   : > { %v2073_v49 = vadd.f32 %v2072_v15, %v2036_v61  ;;  %v6972_v61 = vld [vmem:[#allocation5_spill] sm:$0xff]  ;;  %v2156_v15 = vadd.f32 %v6103_v7, %v6112_v46 }
 0x424   : > { %v6115_v14 = vadd.f32 %v4370_v28, %v2101_v26 }
 0x425   : > { %v2100_v0 = vmul.f32 %v2073_v49, %v6968_v19 }
 0x426   : > { %6971 = vst [vmem:[#allocation75_spill] sm:$0xff] %v6115_v14  ;;  %v2157_v48 = vadd.f32 %v2156_v15, %v6115_v14 }
 0x427   : > { %v6109_v10 = vadd.f32 %v4368_v30, %v2100_v0  ;;  %v2093_v53 = vpop.f32.mrf.mxu3 }
 0x428   : > { %v2094_v23 = vadd.f32 %v2093_v53, %v2040_v59 }
 0x429   : > { %v2148_v49 = vadd.f32 %v2147_v24, %v6109_v10 }
 0x42a   : > { %v2074_v4 = vpop.f32.mrf.mxu2  ;;  %v2103_v57 = vmul.f32 %v2094_v23, %v6973_v25 }
 0x42b   : > { %v2075_v22 = vadd.f32 %v2074_v4, %v2040_v59 }
 0x42c   : > { %v6129_v44 = vadd.f32 %v4372_v37, %v2103_v57 }
 0x42d   : > { %v2102_v13 = vmul.f32 %v2075_v22, %v6972_v61 }
 0x42e   : > { %6975 = vst [vmem:[#allocation4_spill] sm:$0xff] %v6129_v44  ;;  %v2158_v39 = vadd.f32 %v2157_v48, %v6129_v44 }
 0x42f   : > { %v6125_v43 = vadd.f32 %v4371_v16, %v2102_v13 }
 0x430   : > { %v2159_v17 = vrot.slane %v2158_v39, 4 }
 0x431   : > { %6974 = vst [vmem:[#allocation8_spill] sm:$0xff] %v6125_v43  ;;  %v2149_v40 = vadd.f32 %v2148_v49, %v6125_v43 }
 0x432   : > { %v2160_v0 = vadd.f32 %v2159_v17, %v2158_v39 }
 0x433   : > { %v2150_v63 = vrot.slane %v2149_v40, 4 }
 0x434   : > { %v2161_v51 = vrot.slane %v2160_v0, 2 }
 0x435   : > { %v2151_v19 = vadd.f32 %v2150_v63, %v2149_v40 }
 0x436   : > { %v2162_v35 = vadd.f32 %v2161_v51, %v2160_v0 }
 0x437   : > { %v2152_v31 = vrot.slane %v2151_v19, 2 }
 0x438   : > { %v2163_v52 = vrot.slane %v2162_v35, 1 }
 0x439   : > { %v2153_v59 = vadd.f32 %v2152_v31, %v2151_v19 }
 0x43a   : > { %v2164_v4 = vadd.f32 %v2163_v52, %v2162_v35 }
 0x43b   : > { %v2154_v26 = vrot.slane %v2153_v59, 1 }
 0x43c   : > { %v2166_v22 = vmul.f32 %v2164_v4, %v6976_v27 }
 0x43d   : > { %v2155_v34 = vadd.f32 %v2154_v26, %v2153_v59 }
 0x43e   : > { %v6145_v23 = vsub.f32 %v6112_v46, %v2166_v22  ;;  %v6148_v24 = vsub.f32 %v6103_v7, %v2166_v22  ;;  %v6151_v61 = vsub.f32 %v6115_v14, %v2166_v22  ;;  %v2174_v57 = vsub.f32 %v6129_v44, %v2166_v22 }
 0x43f   : > { %v2165_v30 = vmul.f32 %v2155_v34, %v6976_v27 }
 0x440   : > { %v2176_v49 = vmul.f32 %v6145_v23, %v6145_v23  ;;  %v2178_v16 = vmul.f32 %v6148_v24, %v6148_v24  ;;  %v2180_v40 = vmul.f32 %v6151_v61, %v6151_v61  ;;  %v2182_v19 = vmul.f32 %v2174_v57, %v2174_v57 }
 0x441   : > { %v6136_v53 = vsub.f32 %v6106_v47, %v2165_v30  ;;  %v6139_v45 = vsub.f32 %v6100_v20, %v2165_v30  ;;  %v6142_v28 = vsub.f32 %v6109_v10, %v2165_v30  ;;  %v2173_v13 = vsub.f32 %v6125_v43, %v2165_v30 }
 0x442   : > { %v2192_v39 = vadd.f32 %v2178_v16, %v2176_v49 }
 0x443   : > { %v2175_v15 = vmul.f32 %v6136_v53, %v6136_v53  ;;  %v2177_v25 = vmul.f32 %v6139_v45, %v6139_v45  ;;  %v2179_v48 = vmul.f32 %v6142_v28, %v6142_v28  ;;  %v2181_v63 = vmul.f32 %v2173_v13, %v2173_v13 }
 0x444   : > { %v2193_v0 = vadd.f32 %v2192_v39, %v2180_v40  ;;  %v2271_v39 = vpop.permute.xlu1 %2270 }
 0x445   : > { %v2183_v37 = vadd.f32 %v2177_v25, %v2175_v15 }
 0x446   : > { %v2194_v51 = vadd.f32 %v2193_v0, %v2182_v19 }
 0x447   : > { %v2184_v17 = vadd.f32 %v2183_v37, %v2179_v48  ;;  %v2246_v48 = vpop.permute.xlu2 %2245 }
 0x448   : > { %v2195_v35 = vrot.slane %v2194_v51, 4 }
 0x449   : > { %v2185_v31 = vadd.f32 %v2184_v17, %v2181_v63 }
 0x44a   : > { %v2196_v52 = vadd.f32 %v2195_v35, %v2194_v51 }
 0x44b   : > { %v2186_v59 = vrot.slane %v2185_v31, 4 }
 0x44c   : > { %v2197_v4 = vrot.slane %v2196_v52, 2 }
 0x44d   : > { %v2187_v26 = vadd.f32 %v2186_v59, %v2185_v31 }
 0x44e   : > { %v2198_v22 = vadd.f32 %v2197_v4, %v2196_v52 }
 0x44f   : > { %v2188_v34 = vrot.slane %v2187_v26, 2  ;;  %v2275_v31 = vpop.permute.xlu2 %2274 }
 0x450   : > { %v2199_v15 = vrot.slane %v2198_v22, 1 }
 0x451   : > { %v2189_v30 = vadd.f32 %v2188_v34, %v2187_v26  ;;  %v2251_v26 = vpop.permute.xlu0 %2250 }
 0x452   : > { %v2200_v14 = vadd.f32 %v2199_v15, %v2198_v22 }
 0x453   : > { %v2190_v44 = vrot.slane %v2189_v30, 1 }
 0x454   : > { %v2202_v16 = vmul.f32 %v2200_v14, %v6976_v27 }
 0x455   : > { %v2191_v25 = vadd.f32 %v2190_v44, %v2189_v30  ;;  %v2236_v44 = vpop.permute.xlu1 %2235 }
 0x456   : > { %v2204_v40 = vadd.f32 1e-05, %v2202_v16 }
 0x457   : > { %v2201_v49 = vmul.f32 %v2191_v25, %v6976_v27  ;;  %v2241_v16 = vpop.permute.xlu2 %2240 }
 0x458   : > { %vm2221_vm3 = vweird.f32 %v2204_v40 }
 0x459   : > { %v2203_v37 = vadd.f32 1e-05, %v2201_v49 }
 0x45b   : > { %4291 = vrsqrt.f32 %v2203_v37  ;;  %vm2211_vm1 = vweird.f32 %v2203_v37 }
 0x45c   : > { %4293 = vrsqrt.f32 %v2204_v40 }
 0x461   : > { %v4292_v63 = vpop.eup %4291 }
 0x462   : > { %v4294_v17 = vpop.eup %4293  ;;  %v2206_v19 = vmul.f32 %v4292_v63, %v2203_v37  ;;  %vm2212_vm15 = vweird.f32 %v4292_v63 }
 0x463   : > { %v2216_v0 = vmul.f32 %v4294_v17, %v2204_v40  ;;  %vm2222_vm0 = vweird.f32 %v4294_v17  ;;  %vm2213_vm2 = vmor %vm2211_vm1, %vm2212_vm15 }
 0x464   : > { %v2207_v51 = vmul.f32 %v4292_v63, %v2206_v19  ;;  %vm2223_vm4 = vmor %vm2221_vm3, %vm2222_vm0 }
 0x465   : > { %v2217_v59 = vmul.f32 %v4294_v17, %v2216_v0 }
 0x466   : > { %v2208_v35 = vmul.f32 0.5, %v2207_v51 }
 0x467   : > { %v2218_v52 = vmul.f32 0.5, %v2217_v59 }
 0x468   : > { %v2209_v34 = vsub.f32 1.5, %v2208_v35 }
 0x469   : > { %v2219_v14 = vsub.f32 1.5, %v2218_v52 }
 0x46a   : > { %v2210_v27 = vmul.f32 %v4292_v63, %v2209_v34 }
 0x46b   : > { %v2220_v4 = vmul.f32 %v4294_v17, %v2219_v14  ;;  %v2267_v14 = vpop.permute.xlu1 %2266 }
 0x46c   : > { %v2214_v30 = vsel %vm2213_vm2, %v4292_v63, %v2210_v27 }
 0x46d   : > { %v2224_v22 = vsel %vm2223_vm4, %v4294_v17, %v2220_v4  ;;  %v2229_v15 = vmul.f32 %v2214_v30, %v6142_v28  ;;  %v2225_v25 = vmul.f32 %v2214_v30, %v6136_v53  ;;  %v2231_v49 = vmul.f32 %v2214_v30, %v2173_v13  ;;  %v2263_v53 = vpop.permute.xlu0 %2262 }
 0x46e   : > { %v2230_v19 = vmul.f32 %v2224_v22, %v6151_v61  ;;  %v2226_v0 = vmul.f32 %v2224_v22, %v6145_v23  ;;  %v2232_v51 = vmul.f32 %v2224_v22, %v2174_v57  ;;  %v2227_v59 = vmul.f32 %v2214_v30, %v6139_v45  ;;  %v4169_v30 = vld [vmem:[%s6689_s4 + $0x20] sm:$0xff] }
 0x46f   : > { %v2257_v37 = vmul.f32 %v2246_v48, %v2229_v15  ;;  %v2253_v35 = vmul.f32 %v2236_v44, %v2225_v25  ;;  %v2259_v52 = vmul.f32 %v2251_v26, %v2231_v49  ;;  %v2228_v40 = vmul.f32 %v2224_v22, %v6148_v24  ;;  %v6980_v22 = vld [vmem:[#allocation17_spill] sm:$0xff]  ;;  %v6981_v15 = vld [vmem:[#allocation18_spill] sm:$0xff] }
 0x470   : > { %v2258_v63 = vmul.f32 %v2246_v48, %v2230_v19  ;;  %v2254_v17 = vmul.f32 %v2236_v44, %v2226_v0  ;;  %v2260_v34 = vmul.f32 %v2251_v26, %v2232_v51  ;;  %v2255_v28 = vmul.f32 %v2241_v16, %v2227_v59  ;;  %v6982_v25 = vld [vmem:[#allocation21_spill] sm:$0xff]  ;;  %v6983_v49 = vld [vmem:[#allocation22_spill] sm:$0xff]  ;;  %v6986_v0 = vld [vmem:[#allocation27_spill] sm:$0xff] }
 0x471   : > { %v6175_v13 = vadd.f32 %v2271_v39, %v2257_v37  ;;  %v6177_v27 = vadd.f32 %v2275_v31, %v2259_v52  ;;  %v2256_v61 = vmul.f32 %v2241_v16, %v2228_v40  ;;  %v6187_v24 = vadd.f32 %v2263_v53, %v2253_v35  ;;  %v6984_v16 = vld [vmem:[#allocation25_spill] sm:$0xff]  ;;  %v6985_v19 = vld [vmem:[#allocation26_spill] sm:$0xff]  ;;  %v6987_v51 = vld [vmem:[#allocation28_spill] sm:$0xff] }
 0x472   : > { %v6179_v23 = vadd.f32 %v2271_v39, %v2258_v63  ;;  %v6181_v57 = vadd.f32 %v2275_v31, %v2260_v34  ;;  %v6185_v4 = vadd.f32 %v2267_v14, %v2255_v28  ;;  %v6193_v26 = vadd.f32 %v2263_v53, %v2254_v17  ;;  %v4170_v59 = vld [vmem:[%s6689_s4 + $0x28] sm:$0xff]  ;;  %v6988_v37 = vld [vmem:[#allocation29_spill] sm:$0xff]  ;;  %v6989_v35 = vld [vmem:[#allocation30_spill] sm:$0xff] }
 0x473   : > { %6977 = vst [vmem:[#allocation10_spill] sm:$0xff] %v6177_v27  ;;  %v2287_v45 = vpack.c.bf16 %v6177_v27, %v6175_v13  ;;  %v6191_v44 = vadd.f32 %v2267_v14, %v2256_v61  ;;  %v6990_v52 = vld [vmem:[#allocation33_spill] sm:$0xff]  ;;  %v6991_v40 = vld [vmem:[#allocation34_spill] sm:$0xff] }
 0x474   : > { %6978 = vst [vmem:[#allocation9_spill] sm:$0xff] %v6179_v23  ;;  %v2288_v48 = vpack.c.bf16 %v6181_v57, %v6179_v23  ;;  %v2285_v39 = vpack.c.bf16 %v6185_v4, %v6187_v24  ;;  %v6992_v63 = vld [vmem:[#allocation37_spill] sm:$0xff]  ;;  %v6993_v17 = vld [vmem:[#allocation38_spill] sm:$0xff] }
 0x475   : > { %6979 = vst [vmem:[#allocation14_spill] sm:$0xff] %v6181_v57  ;;  %2311 = vmatpush.bf16.msra.mxu0 %v2287_v45  ;;  %v2286_v31 = vpack.c.bf16 %v6191_v44, %v6193_v26  ;;  %v6994_v34 = vld [vmem:[#allocation41_spill] sm:$0xff]  ;;  %v6996_v14 = vld [vmem:[#allocation42_spill] sm:$0xff] }
 0x476   : > { %2330 = vmatpush.bf16.msrb.mxu1 %v2288_v48  ;;  %v6995_v28 = vld [vmem:[#allocation45_spill] sm:$0xff]  ;;  %v6997_v53 = vld [vmem:[#allocation46_spill] sm:$0xff] }
 0x477   : > { %v6998_v61 = vld [vmem:[#allocation49_spill] sm:$0xff]  ;;  %v6999_v45 = vld [vmem:[#allocation50_spill] sm:$0xff] }
 0x478   : > { %v7000_v48 = vld [vmem:[#allocation53_spill] sm:$0xff] }
 0x479   : > { %2312 = vmatpush.bf16.msra.mxu0 %v2285_v39  ;;  %v7001_v39 = vld [vmem:[#allocation54_spill] sm:$0xff] }
 0x47a   : > { %2331 = vmatpush.bf16.msrb.mxu1 %v2286_v31  ;;  %v7002_v31 = vld [vmem:[#allocation57_spill] sm:$0xff] }
 0x47c   : > { %3965 = vmatmul.msk.bf16.vlgmr.msra.gmra.mxu0 %vm552_vm7, %v4169_v30 }
 0x47d   : > { %2385 = vmatpush.bf16.msrb.mxu0 %v6980_v22  ;;  %3967 = vmatmul.msk.bf16.vlgmr.msrb.gmra.mxu1 %vm552_vm7, %v4169_v30  ;;  %v7003_v30 = vld [vmem:[#allocation58_spill] sm:$0xff]  ;;  %v7004_v22 = vld [vmem:[#allocation61_spill] sm:$0xff] }
 0x47e   : > { %2404 = vmatpush.bf16.msra.mxu1 %v6981_v15  ;;  %v7005_v15 = vld [vmem:[#allocation62_spill] sm:$0xff] }
 0x481   : > { %2386 = vmatpush.bf16.msrb.mxu0 %v6982_v25  ;;  %v7006_v25 = vld [vmem:[#allocation65_spill] sm:$0xff] }
 0x482   : > { %2405 = vmatpush.bf16.msra.mxu1 %v6983_v49  ;;  %v7007_v49 = vld [vmem:[#allocation66_spill] sm:$0xff] }
 0x485   : > { %2387 = vmatpush.bf16.msrb.mxu0 %v6984_v16  ;;  %v7008_v16 = vld [vmem:[#allocation69_spill] sm:$0xff] }
 0x486   : > { %2406 = vmatpush.bf16.msra.mxu1 %v6985_v19  ;;  %v7009_v19 = vld [vmem:[#allocation70_spill] sm:$0xff] }
 0x489   : > { %2388 = vmatpush.bf16.msrb.mxu0 %v6986_v0  ;;  %v7010_v0 = vld [vmem:[#allocation73_spill] sm:$0xff] }
 0x48a   : > { %2407 = vmatpush.bf16.msra.mxu1 %v6987_v51  ;;  %v7011_v51 = vld [vmem:[#allocation74_spill] sm:$0xff] }
 0x48c   : > { %3966 = vmatmul.msk.bf16.gmra.mxu0 %vm552_vm7, %v4170_v59 }
 0x48d   : > { %2389 = vmatpush.bf16.msrb.mxu0 %v6988_v37  ;;  %3968 = vmatmul.msk.bf16.gmra.mxu1 %vm552_vm7, %v4170_v59 }
 0x48e   : > { %2408 = vmatpush.bf16.msra.mxu1 %v6989_v35 }
 0x491   : > { %2390 = vmatpush.bf16.msrb.mxu0 %v6990_v52 }
 0x492   : > { %2409 = vmatpush.bf16.msra.mxu1 %v6991_v40 }
 0x495   : > { %2391 = vmatpush.bf16.msrb.mxu0 %v6992_v63 }
 0x496   : > { %2410 = vmatpush.bf16.msra.mxu1 %v6993_v17 }
 0x499   : > { %2392 = vmatpush.bf16.msrb.mxu0 %v6994_v34 }
 0x49a   : > { %2411 = vmatpush.bf16.msra.mxu1 %v6996_v14 }
 0x49d   : > { %2461 = vmatpush.bf16.msra.mxu0 %v6995_v28 }
 0x49e   : > { %2480 = vmatpush.bf16.msrb.mxu1 %v6997_v53 }
 0x4a1   : > { %2462 = vmatpush.bf16.msra.mxu0 %v6998_v61 }
 0x4a2   : > { %2481 = vmatpush.bf16.msrb.mxu1 %v6999_v45 }
 0x4a5   : > { %2463 = vmatpush.bf16.msra.mxu0 %v7000_v48 }
 0x4a6   : > { %2482 = vmatpush.bf16.msrb.mxu1 %v7001_v39 }
 0x4a9   : > { %2464 = vmatpush.bf16.msra.mxu0 %v7002_v31 }
 0x4aa   : > { %2483 = vmatpush.bf16.msrb.mxu1 %v7003_v30 }
 0x4ad   : > { %2465 = vmatpush.bf16.msra.mxu0 %v7004_v22 }
 0x4ae   : > { %2484 = vmatpush.bf16.msrb.mxu1 %v7005_v15 }
 0x4b1   : > { %2466 = vmatpush.bf16.msra.mxu0 %v7006_v25 }
 0x4b2   : > { %2485 = vmatpush.bf16.msrb.mxu1 %v7007_v49 }
 0x4b5   : > { %2467 = vmatpush.bf16.msra.mxu0 %v7008_v16 }
 0x4b6   : > { %2486 = vmatpush.bf16.msrb.mxu1 %v7009_v19 }
 0x4b9   : > { %2468 = vmatpush.bf16.msra.mxu0 %v7010_v0 }
 0x4ba   : > { %2487 = vmatpush.bf16.msrb.mxu1 %v7011_v51 }
 0x4f9   : > { %v2314_v59 = vpop.f32.mrf.mxu0 }
 0x4fa   : > { %v2333_v37 = vpop.f32.mrf.mxu1 }
 0x501   : > { %v2316_v35 = vpop.f32.mrf.mxu0 }
 0x502   : > { %v2343_v52 = vpack.c.bf16 %v2316_v35, %v2314_v59  ;;  %v2335_v40 = vpop.f32.mrf.mxu1 }
 0x503   : > { %v2344_v63 = vpack.c.bf16 %v2335_v40, %v2333_v37 }
 0x504   : > { %2355 = vmatmul.bf16.vlgmr.msra.gmra.mxu2 %v2343_v52  ;;  %2393 = vmatmul.bf16.vlgmr.msrb.gmra.mxu0 %v2343_v52 }
 0x505   : > { %2374 = vmatmul.bf16.vlgmr.msra.gmra.mxu3 %v2344_v63  ;;  %2412 = vmatmul.bf16.vlgmr.msra.gmra.mxu1 %v2344_v63 }
 0x509   : > { %v2319_v17 = vpop.f32.mrf.mxu0 }
 0x50a   : > { %v2338_v34 = vpop.f32.mrf.mxu1 }
 0x511   : > { %v2321_v28 = vpop.f32.mrf.mxu0 }
 0x512   : > { %v2345_v14 = vpack.c.bf16 %v2321_v28, %v2319_v17  ;;  %v2340_v53 = vpop.f32.mrf.mxu1 }
 0x513   : > { %v2346_v61 = vpack.c.bf16 %v2340_v53, %v2338_v34 }
 0x514   : > { %2360 = vmatmul.bf16.gmra.mxu2 %v2345_v14  ;;  %2398 = vmatmul.bf16.gmra.mxu0 %v2345_v14 }
 0x515   : > { %2379 = vmatmul.bf16.gmra.mxu3 %v2346_v61  ;;  %2417 = vmatmul.bf16.gmra.mxu1 %v2346_v61 }
 0x524   : > { %2431 = vmatmul.bf16.vlgmr.msrb.gmra.mxu2 %v2343_v52  ;;  %2469 = vmatmul.bf16.vlgmr.msra.gmra.mxu0 %v2343_v52 }
 0x525   : > { %2450 = vmatmul.bf16.vlgmr.msrb.gmra.mxu3 %v2344_v63  ;;  %2488 = vmatmul.bf16.vlgmr.msrb.gmra.mxu1 %v2344_v63 }
 0x534   : > { %2436 = vmatmul.bf16.gmra.mxu2 %v2345_v14  ;;  %2474 = vmatmul.bf16.gmra.mxu0 %v2345_v14 }
 0x535   : > { %2455 = vmatmul.bf16.gmra.mxu3 %v2346_v61  ;;  %2493 = vmatmul.bf16.gmra.mxu1 %v2346_v61 }
 0x581   : > { %v2394_v45 = vpop.f32.mrf.mxu0 }
 0x582   : > { %v2413_v48 = vpop.f32.mrf.mxu1 }
 0x583   : > { %v2414_v63 = vadd.f32 %v2413_v48, %v2394_v45  ;;  %v4173_v45 = vld [vmem:[%s6690_s5 + $0x40] sm:$0xff] }
 0x587   : > { %v2356_v39 = vpop.f32.mrf.mxu2 }
 0x588   : > { %v2375_v31 = vpop.f32.mrf.mxu3 }
 0x589   : > { %v2396_v30 = vpop.f32.mrf.mxu0  ;;  %v2376_v27 = vadd.f32 %v2375_v31, %v2356_v39 }
 0x58a   : > { %v2415_v22 = vpop.f32.mrf.mxu1 }
 0x58b   : > { %v2416_v52 = vadd.f32 %v2415_v22, %v2396_v30 }
 0x58d   : > { %v2500_v28 = vpack.c.bf16 %v2416_v52, %v2414_v63 }
 0x58f   : > { %v2358_v15 = vpop.f32.mrf.mxu2 }
 0x590   : > { %v2377_v25 = vpop.f32.mrf.mxu3 }
 0x591   : > { %v2399_v49 = vpop.f32.mrf.mxu0  ;;  %v2378_v23 = vadd.f32 %v2377_v25, %v2358_v15  ;;  %v4174_v15 = vld [vmem:[%s6690_s5 + $0x48] sm:$0xff] }
 0x592   : > { %v2418_v16 = vpop.f32.mrf.mxu1 }
 0x593   : > { %v2419_v37 = vadd.f32 %v2418_v16, %v2399_v49  ;;  %v2499_v49 = vpack.c.bf16 %v2378_v23, %v2376_v27 }
 0x597   : > { %v2361_v19 = vpop.f32.mrf.mxu2 }
 0x598   : > { %v2380_v0 = vpop.f32.mrf.mxu3 }
 0x599   : > { %v2401_v51 = vpop.f32.mrf.mxu0  ;;  %v2381_v14 = vadd.f32 %v2380_v0, %v2361_v19  ;;  %v7012_v19 = vld [vmem:[#allocation77_spill] sm:$0xff] }
 0x59a   : > { %v2420_v59 = vpop.f32.mrf.mxu1 }
 0x59b   : > { %v2421_v35 = vadd.f32 %v2420_v59, %v2401_v51 }
 0x59d   : > { %v2502_v40 = vpack.c.bf16 %v2421_v35, %v2419_v37 }
 0x59f   : > { %v2363_v17 = vpop.f32.mrf.mxu2  ;;  %2664 = vmatpush.bf16.msra.mxu1 %v2502_v40 }
 0x5a0   : > { %v2382_v34 = vpop.f32.mrf.mxu3 }
 0x5a1   : > { %v2470_v53 = vpop.f32.mrf.mxu0  ;;  %v2383_v61 = vadd.f32 %v2382_v34, %v2363_v17 }
 0x5a2   : > { %v2489_v57 = vpop.f32.mrf.mxu1 }
 0x5a3   : > { %v2501_v43 = vpack.c.bf16 %v2383_v61, %v2381_v14  ;;  %2665 = vmatpush.bf16.msra.mxu1 %v2500_v28  ;;  %v7013_v28 = vld [vmem:[#allocation79_spill] sm:$0xff]  ;;  %v7015_v61 = vld [vmem:[#allocation76_spill] sm:$0xff] }
 0x5a5   : > { %2635 = vmatpush.bf16.msrb.mxu0 %v2501_v43 }
 0x5a6   : > { %4013 = vmatmul.msk.bf16.vlgmr.msra.gmra.mxu1 %vm552_vm7, %v4173_v45 }
 0x5a7   : > { %3155 = vmatpush.bf16.msrb.mxu1 %v5711_v6  ;;  %v2432_v16 = vpop.f32.mrf.mxu2  ;;  %v3930_v6 = vld [vmem:[%s6688_s3 + $0x68] sm:$0xff] }
 0x5a8   : > { %v2451_v30 = vpop.f32.mrf.mxu3  ;;  %2710 = vperm.xlu1 %4216, %v3930_v6  }
 0x5a9   : > { %v2472_v22 = vpop.f32.mrf.mxu0  ;;  %2636 = vmatpush.bf16.msrb.mxu0 %v2499_v49  ;;  %v2452_v14 = vadd.f32 %v2451_v30, %v2432_v16  ;;  %v7027_v49 = vld [vmem:[#allocation89_spill] sm:$0xff] }
 0x5aa   : > { %v2491_v48 = vpop.f32.mrf.mxu1 }
 0x5ab   : > { %3255 = vmatpush.bf16.msra.mxu1 %v5819_v42 }
 0x5ac   : > { %4009 = vmatmul.msk.bf16.vlgmr.msrb.gmra.mxu0 %vm552_vm7, %v4173_v45 }
 0x5ad   : > { %3129 = vmatpush.bf16.msra.mxu0 %v7012_v19 }
 0x5af   : > { %v2434_v43 = vpop.f32.mrf.mxu2 }
 0x5b0   : > { %v2453_v27 = vpop.f32.mrf.mxu3  ;;  %2688 = vperm.xlu1 %4216, %v6031_v56  }
 0x5b1   : > { %3130 = vmatpush.bf16.msra.mxu0 %v5400_v5  ;;  %v2475_v23 = vpop.f32.mrf.mxu0  ;;  %v2454_v17 = vadd.f32 %v2453_v27, %v2434_v43 }
 0x5b2   : > { %v2494_v39 = vpop.f32.mrf.mxu1 }
 0x5b3   : > { %v2495_v5 = vadd.f32 %v2494_v39, %v2475_v23 }
 0x5b5   : > { %3131 = vmatpush.bf16.msra.mxu0 %v5416_v9  ;;  %v2492_v9 = vadd.f32 %v2491_v48, %v2472_v22 }
 0x5b6   : > { %4014 = vmatmul.msk.bf16.gmra.mxu1 %vm552_vm7, %v4174_v15 }
 0x5b7   : > { %v2437_v31 = vpop.f32.mrf.mxu2 }
 0x5b8   : > { %v2456_v25 = vpop.f32.mrf.mxu3  ;;  %2696 = vperm.xlu1 %4216, %v6017_v60  }
 0x5b9   : > { %3132 = vmatpush.bf16.msra.mxu0 %v5495_v1  ;;  %v2477_v42 = vpop.f32.mrf.mxu0  ;;  %v2490_v1 = vadd.f32 %v2489_v57, %v2470_v53  ;;  %v2457_v40 = vadd.f32 %v2456_v25, %v2437_v31  ;;  %v3929_v57 = vld [vmem:[%s6688_s3 + $0x60] sm:$0xff]  ;;  %v2503_v53 = vpack.c.bf16 %v2454_v17, %v2452_v14 }
 0x5ba   : > { %v2496_v0 = vpop.f32.mrf.mxu1  ;;  %2705 = vperm.xlu2 %4215, %v3929_v57  }
 0x5bb   : > { %v2497_v51 = vadd.f32 %v2496_v0, %v2477_v42  ;;  %v2504_v52 = vpack.c.bf16 %v2492_v9, %v2490_v1 }
 0x5bc   : > { %4010 = vmatmul.msk.bf16.gmra.mxu0 %vm552_vm7, %v4174_v15 }
 0x5bd   : > { %3133 = vmatpush.bf16.msra.mxu0 %v5559_v33  ;;  %v2506_v59 = vpack.c.bf16 %v2497_v51, %v2495_v5  ;;  %v4177_v33 = vld [vmem:[%s6690_s5 + $0x60] sm:$0xff] }
 0x5bf   : > { %2574 = vmatpush.bf16.msra.mxu3 %v2506_v59  ;;  %v2439_v37 = vpop.f32.mrf.mxu2 }
 0x5c0   : > { %v2458_v35 = vpop.f32.mrf.mxu3 }
 0x5c1   : > { %3134 = vmatpush.bf16.msra.mxu0 %v5584_v38  ;;  %v2459_v63 = vadd.f32 %v2458_v35, %v2439_v37  ;;  %v7014_v38 = vmov 2  }
 0x5c2   : > { %4219 = vset.pattern.permute.xlu1 %v7014_v38 }
 0x5c3   : > { %v2505_v34 = vpack.c.bf16 %v2459_v63, %v2457_v40  ;;  %2575 = vmatpush.bf16.msra.mxu3 %v2504_v52  ;;  %3276 = vperm.xlu1 %4219, %v6050_v12  }
 0x5c5   : > { %3135 = vmatpush.bf16.msra.mxu0 %v5649_v3  ;;  %2545 = vmatpush.bf16.msra.mxu2 %v2505_v34  ;;  %v4175_v3 = vld [vmem:[%s6690_s5 + $0x50] sm:$0xff] }
 0x5c6   : > { %3989 = vmatmul.msk.bf16.vlgmr.msra.gmra.mxu3 %vm552_vm7, %v4177_v33  ;;  %4015 = vmatmul.msk.bf16.gmra.mxu1 %vm552_vm7, %v4175_v3 }
 0x5c7   : > { %3117 = vmatpush.bf16.msrb.mxu3 %v7013_v28 }
 0x5c9   : > { %3136 = vmatpush.bf16.msra.mxu0 %v5692_v29  ;;  %2546 = vmatpush.bf16.msra.mxu2 %v2503_v53  ;;  %v3931_v29 = vld [vmem:[%s6688_s3 + $0x70] sm:$0xff] }
 0x5ca   : > { %2715 = vperm.xlu2 %4215, %v3931_v29  }
 0x5cb   : > { %3217 = vmatpush.bf16.msra.mxu3 %v5777_v32  ;;  %3284 = vperm.xlu1 %4219, %v6022_v50   ;;  %v4178_v32 = vld [vmem:[%s6690_s5 + $0x68] sm:$0xff] }
 0x5cc   : > { %3985 = vmatmul.msk.bf16.vlgmr.msra.gmra.mxu2 %vm552_vm7, %v4177_v33  ;;  %4011 = vmatmul.msk.bf16.gmra.mxu0 %vm552_vm7, %v4175_v3 }
 0x5cd   : > { %3229 = vmatpush.bf16.msrb.mxu0 %v5700_v58  ;;  %3091 = vmatpush.bf16.msrb.mxu2 %v7015_v61  ;;  %v7016_v58 = vld [vmem:[#allocation78_spill] sm:$0xff] }
 0x5d1   : > { %3230 = vmatpush.bf16.msrb.mxu0 %v5766_v55  ;;  %3092 = vmatpush.bf16.msrb.mxu2 %v7016_v58  ;;  %v4176_v55 = vld [vmem:[%s6690_s5 + $0x58] sm:$0xff] }
 0x5d2   : > { %2692 = vperm.xlu2 %4215, %v6050_v12   ;;  %v7024_v12 = vld [vmem:[#allocation86_spill] sm:$0xff] }
 0x5d5   : > { %3231 = vmatpush.bf16.msrb.mxu0 %v5797_v2  ;;  %3093 = vmatpush.bf16.msrb.mxu2 %v5410_v41  ;;  %v3932_v41 = vld [vmem:[%s6688_s3 + $0x78] sm:$0xff]  ;;  %v7018_v2 = vld [vmem:[#allocation90_spill] sm:$0xff] }
 0x5d6   : > { %3990 = vmatmul.msk.bf16.gmra.mxu3 %vm552_vm7, %v4178_v32  ;;  %4016 = vmatmul.msk.bf16.gmra.mxu1 %vm552_vm7, %v4176_v55 }
 0x5d7   : > { %2720 = vperm.xlu0 %4217, %v3932_v41  }
 0x5d9   : > { %3232 = vmatpush.bf16.msrb.mxu0 %v5846_v11  ;;  %3094 = vmatpush.bf16.msrb.mxu2 %v5425_v21  ;;  %v4179_v21 = vld [vmem:[%s6690_s5 + $0x70] sm:$0xff]  ;;  %v7019_v11 = vld [vmem:[#allocation81_spill] sm:$0xff] }
 0x5da   : > { %2700 = vperm.xlu2 %4215, %v6022_v50   ;;  %v4180_v50 = vld [vmem:[%s6690_s5 + $0x78] sm:$0xff] }
 0x5dc   : > { %3986 = vmatmul.msk.bf16.gmra.mxu2 %vm552_vm7, %v4178_v32  ;;  %4012 = vmatmul.msk.bf16.gmra.mxu0 %vm552_vm7, %v4176_v55 }
 0x5dd   : > { %3233 = vmatpush.bf16.msrb.mxu0 %v5889_v54  ;;  %3095 = vmatpush.bf16.msrb.mxu2 %v5557_v18  ;;  %v7017_v18 = vld [vmem:[#allocation80_spill] sm:$0xff]  ;;  %v7020_v54 = vld [vmem:[#allocation82_spill] sm:$0xff] }
 0x5df   : > { %4218 = vset.pattern.permute.xlu0 %v7014_v38 }
 0x5e0   : > { %3272 = vperm.xlu0 %4218, %v6031_v56   ;;  %v7025_v56 = vld [vmem:[#allocation87_spill] sm:$0xff] }
 0x5e1   : > { %3234 = vmatpush.bf16.msrb.mxu0 %v5925_v62  ;;  %3096 = vmatpush.bf16.msrb.mxu2 %v5582_v8  ;;  %v7021_v8 = vld [vmem:[#allocation83_spill] sm:$0xff]  ;;  %v7022_v62 = vld [vmem:[#allocation84_spill] sm:$0xff] }
 0x5e2   : > { %4220 = vset.pattern.permute.xlu2 %v7014_v38 }
 0x5e3   : > { %3280 = vperm.xlu2 %4220, %v6017_v60   ;;  %v7026_v60 = vld [vmem:[#allocation88_spill] sm:$0xff] }
 0x5e5   : > { %3235 = vmatpush.bf16.msrb.mxu0 %v5947_v36  ;;  %3097 = vmatpush.bf16.msrb.mxu2 %v7017_v18  ;;  %v7023_v36 = vld [vmem:[#allocation85_spill] sm:$0xff] }
 0x5e6   : > { %3991 = vmatmul.msk.bf16.gmra.mxu3 %vm552_vm7, %v4179_v21 }
 0x5e9   : > { %3236 = vmatpush.bf16.msrb.mxu0 %v7018_v2  ;;  %3098 = vmatpush.bf16.msrb.mxu2 %v7019_v11 }
 0x5ec   : > { %3987 = vmatmul.msk.bf16.gmra.mxu2 %vm552_vm7, %v4179_v21 }
 0x5ed   : > { %3191 = vmatpush.bf16.msra.mxu2 %v7020_v54 }
 0x5f1   : > { %3192 = vmatpush.bf16.msra.mxu2 %v7021_v8 }
 0x5f5   : > { %3193 = vmatpush.bf16.msra.mxu2 %v7022_v62 }
 0x5f6   : > { %3992 = vmatmul.msk.bf16.gmra.mxu3 %vm552_vm7, %v4180_v50 }
 0x5f9   : > { %3194 = vmatpush.bf16.msra.mxu2 %v7023_v36 }
 0x5fc   : > { %3988 = vmatmul.msk.bf16.gmra.mxu2 %vm552_vm7, %v4180_v50 }
 0x5fd   : > { %3195 = vmatpush.bf16.msra.mxu2 %v7024_v12 }
 0x601   : > { %3196 = vmatpush.bf16.msra.mxu2 %v7025_v56 }
 0x605   : > { %3197 = vmatpush.bf16.msra.mxu2 %v7026_v60 }
 0x609   : > { %3198 = vmatpush.bf16.msra.mxu2 %v7027_v49 }
 0x614   : > { %v6342_v30 = vpop.permute.xlu2 %2705 }
 0x61a   : > { %v6340_v16 = vpop.permute.xlu1 %2710 }
 0x622   : > { %v2689_v48 = vpop.permute.xlu1 %2688 }
 0x623   : > { %v2667_v22 = vpop.f32.mrf.mxu1 }
 0x624   : > { %v6344_v6 = vpop.permute.xlu2 %2715 }
 0x629   : > { %v2638_v27 = vpop.f32.mrf.mxu0 }
 0x62a   : > { %v2697_v53 = vpop.permute.xlu1 %2696 }
 0x62b   : > { %v2669_v42 = vpop.f32.mrf.mxu1 }
 0x62c   : > { %v2693_v5 = vpop.permute.xlu2 %2692 }
 0x631   : > { %v2640_v1 = vpop.f32.mrf.mxu0 }
 0x633   : > { %v2672_v14 = vpop.f32.mrf.mxu1 }
 0x639   : > { %v2643_v58 = vpop.f32.mrf.mxu0 }
 0x649   : > { %v2577_v45 = vpop.f32.mrf.mxu3 }
 0x64a   : > { %v2668_v19 = vadd.f32 %v2667_v22, %v2577_v45 }
 0x64c   : > { %v6346_v43 = vadd.f32 %v2689_v48, %v2668_v19 }
 0x64e   : > { %v4018_v23 = vmul.f32 -1.442695, %v6346_v43 }
 0x64f   : > { %v2548_v39 = vpop.f32.mrf.mxu2 }
 0x650   : > { %4295 = vpow2.f32 %v4018_v23  ;;  %v2639_v31 = vadd.f32 %v2638_v27, %v2548_v39  ;;  %v2674_v27 = vpop.f32.mrf.mxu1 }
 0x651   : > { %v2579_v0 = vpop.f32.mrf.mxu3 }
 0x652   : > { %v6349_v15 = vadd.f32 %v2689_v48, %v2639_v31  ;;  %v2670_v9 = vadd.f32 %v2669_v42, %v2579_v0 }
 0x654   : > { %v4017_v25 = vmul.f32 -1.442695, %v6349_v15  ;;  %v6352_v35 = vadd.f32 %v2693_v5, %v2670_v9  ;;  %v2701_v9 = vpop.permute.xlu2 %2700 }
 0x656   : > { %v4296_v51 = vpop.eup %4295  ;;  %4297 = vpow2.f32 %v4017_v25  ;;  %v4020_v40 = vmul.f32 -1.442695, %v6352_v35 }
 0x657   : > { %v2788_v59 = vadd.f32 1.0, %v4296_v51  ;;  %v2550_v37 = vpop.f32.mrf.mxu2  ;;  %v2645_v51 = vpop.f32.mrf.mxu0 }
 0x658   : > { %v2641_v52 = vadd.f32 %v2640_v1, %v2550_v37 }
 0x659   : > { %4299 = vrcp.f32 %v2788_v59  ;;  %v2582_v57 = vpop.f32.mrf.mxu3  ;;  %vm2823_vm5 = vweird.f32 %v2788_v59  ;;  %v2829_v54 = vand.u32 2147483648, %v2788_v59  ;;  %v2827_v62 = vand.u32 2147483647, %v2788_v59 }
 0x65a   : > { %v6355_v63 = vadd.f32 %v2693_v5, %v2641_v52  ;;  %4301 = vpow2.f32 %v4020_v40  ;;  %v2673_v3 = vadd.f32 %v2672_v14, %v2582_v57 }
 0x65b   : > { %v2830_v45 = vor.u32 1.1754944e-38, %v2829_v54  ;;  %vm2828_vm9 = vcmp.eq.f32.partialorder %v2827_v62, 8.507059e+37 }
 0x65c   : > { %v4298_v33 = vpop.eup %4297  ;;  %v4019_v17 = vmul.f32 -1.442695, %v6355_v63  ;;  %v6360_v55 = vadd.f32 %v2697_v53, %v2673_v3 }
 0x65d   : > { %v2787_v34 = vadd.f32 1.0, %v4298_v33 }
 0x65e   : > { %4303 = vpow2.f32 %v4019_v17  ;;  %v4022_v56 = vmul.f32 -1.442695, %v6360_v55 }
 0x65f   : > { %v4300_v28 = vpop.eup %4299  ;;  %4305 = vrcp.f32 %v2787_v34  ;;  %v2553_v41 = vpop.f32.mrf.mxu2  ;;  %v2812_v48 = vand.u32 2147483647, %v2787_v34  ;;  %v2814_v19 = vand.u32 2147483648, %v2787_v34  ;;  %vm2808_vm12 = vweird.f32 %v2787_v34 }
 0x660   : > { %v2819_v38 = vmul.f32 %v4300_v28, %v2788_v59  ;;  %v4302_v61 = vpop.eup %4301  ;;  %vm2824_vm6 = vweird.f32 %v4300_v28  ;;  %v2644_v2 = vadd.f32 %v2643_v58, %v2553_v41 }
 0x661   : > { %v6358_v32 = vadd.f32 1.0, %v4302_v61  ;;  %vm6365_vm8 = vmor %vm2823_vm5, %vm2824_vm6  ;;  %v2584_v42 = vpop.f32.mrf.mxu3  ;;  %vm2813_vm14 = vcmp.eq.f32.partialorder %v2812_v48, 8.507059e+37  ;;  %v2815_v59 = vor.u32 1.1754944e-38, %v2814_v19 }
 0x662   : > { %v2820_v29 = vsub.f32 1.0, %v2819_v38  ;;  %v6370_v60 = vadd.f32 %v2697_v53, %v2644_v2  ;;  %v2675_v1 = vadd.f32 %v2674_v27, %v2584_v42 }
 0x663   : > { %4307 = vrcp.f32 %v6358_v32  ;;  %v2859_v17 = vand.u32 2147483648, %v6358_v32  ;;  %vm2853_vm0 = vweird.f32 %v6358_v32 }
 0x664   : > { %v4304_v21 = vpop.eup %4303  ;;  %v2821_v18 = vmul.f32 %v4300_v28, %v2820_v29  ;;  %v4021_v39 = vmul.f32 -1.442695, %v6370_v60  ;;  %v6380_v38 = vadd.f32 %v2701_v9, %v2675_v1 }
 0x665   : > { %v4306_v11 = vpop.eup %4305  ;;  %v6363_v36 = vadd.f32 1.0, %v4304_v21  ;;  %v2677_v21 = vpop.f32.mrf.mxu1  ;;  %v2860_v12 = vor.u32 1.1754944e-38, %v2859_v17 }
 0x666   : > { %v2822_v8 = vadd.f32 %v4300_v28, %v2821_v18  ;;  %v2804_v50 = vmul.f32 %v4306_v11, %v2787_v34  ;;  %vm2809_vm11 = vweird.f32 %v4306_v11  ;;  %v4024_v41 = vmul.f32 -1.442695, %v6380_v38 }
 0x667   : > { %4309 = vrcp.f32 %v6363_v36  ;;  %vm2810_vm13 = vmor %vm2808_vm12, %vm2809_vm11  ;;  %v2555_v57 = vpop.f32.mrf.mxu2  ;;  %v2844_v54 = vand.u32 2147483648, %v6363_v36  ;;  %vm2838_vm4 = vweird.f32 %v6363_v36 }
 0x668   : > { %v2826_v49 = vsel %vm6365_vm8, %v4300_v28, %v2822_v8  ;;  %v2805_v22 = vsub.f32 1.0, %v2804_v50  ;;  %4311 = vpow2.f32 %v4022_v56  ;;  %v2646_v29 = vadd.f32 %v2645_v51, %v2555_v57 }
 0x669   : > { %v4308_v31 = vpop.eup %4307  ;;  %v2831_v25 = vsel %vm2828_vm9, %v2830_v45, %v2826_v49  ;;  %4313 = vpow2.f32 %v4021_v39  ;;  %v2842_v8 = vand.u32 2147483647, %v6363_v36  ;;  %v2648_v45 = vpop.f32.mrf.mxu0 }
 0x66a   : > { %v2806_v23 = vmul.f32 %v4306_v11, %v2805_v22  ;;  %v2849_v5 = vmul.f32 %v4308_v31, %v6358_v32  ;;  %v3044_v52 = vmul.f32 %v2831_v25, %v6346_v43  ;;  %vm2854_vm15 = vweird.f32 %v4308_v31 }
 0x66b   : > { %v2857_v43 = vand.u32 2147483647, %v6358_v32  ;;  %vm2855_vm1 = vmor %vm2853_vm0, %vm2854_vm15  ;;  %v2587_v32 = vpop.f32.mrf.mxu3  ;;  %v2845_v22 = vor.u32 1.1754944e-38, %v2844_v54  ;;  %vm2843_vm6 = vcmp.eq.f32.partialorder %v2842_v8, 8.507059e+37  ;;  %v6396_v19 = vadd.f32 %v2701_v9, %v2646_v29 }
 0x66c   : > { %v2807_v0 = vadd.f32 %v4306_v11, %v2806_v23  ;;  %v2850_v33 = vsub.f32 1.0, %v2849_v5  ;;  %v2678_v27 = vadd.f32 %v2677_v21, %v2587_v32 }
 0x66d   : > { %v4310_v37 = vpop.eup %4309  ;;  %vm2858_vm3 = vcmp.eq.f32.partialorder %v2857_v43, 8.507059e+37  ;;  %v4023_v9 = vmul.f32 -1.442695, %v6396_v19  ;;  %v2679_v17 = vpop.f32.mrf.mxu1 }
 0x66e   : > { %v2811_v40 = vsel %vm2810_vm13, %v4306_v11, %v2807_v0  ;;  %v4312_v28 = vpop.eup %4311  ;;  %v2834_v34 = vmul.f32 %v4310_v37, %v6363_v36  ;;  %v2851_v3 = vmul.f32 %v4308_v31, %v2850_v33  ;;  %vm2839_vm2 = vweird.f32 %v4310_v37 }
 0x66f   : > { %v2816_v14 = vsel %vm2813_vm14, %v2815_v59, %v2811_v40  ;;  %v6383_v61 = vadd.f32 1.0, %v4312_v28  ;;  %v4314_v18 = vpop.eup %4313  ;;  %vm2840_vm5 = vmor %vm2838_vm4, %vm2839_vm2  ;;  %v2558_v5 = vpop.f32.mrf.mxu2  ;;  %v6405_v1 = vadd.f32 %v6342_v30, %v2678_v27 }
 0x670   : > { %v3043_v53 = vmul.f32 %v2816_v14, %v6349_v15  ;;  %v2835_v58 = vsub.f32 1.0, %v2834_v34  ;;  %v2852_v11 = vadd.f32 %v4308_v31, %v2851_v3  ;;  %v6392_v62 = vadd.f32 1.0, %v4314_v18 }
 0x671   : > { %4315 = vrcp.f32 %v6383_v61  ;;  %vm2883_vm8 = vweird.f32 %v6383_v61  ;;  %v2887_v43 = vand.u32 2147483647, %v6383_v61  ;;  %v2650_v8 = vpop.f32.mrf.mxu0 }
 0x672   : > { %v3059_v2 = vpack.c.bf16 %v3044_v52, %v3043_v53  ;;  %v2836_v15 = vmul.f32 %v4310_v37, %v2835_v58  ;;  %v2856_v50 = vsel %vm2855_vm1, %v4308_v31, %v2852_v11  ;;  %4317 = vpow2.f32 %v4024_v41 }
 0x673   : > { %v2861_v49 = vsel %vm2858_vm3, %v2860_v12, %v2856_v50  ;;  %4319 = vrcp.f32 %v6392_v62  ;;  %v2889_v31 = vand.u32 2147483648, %v6383_v61  ;;  %v2872_v11 = vand.u32 2147483647, %v6392_v62 }
 0x674   : > { %v2837_v56 = vadd.f32 %v4310_v37, %v2836_v15  ;;  %v3171_v25 = vunpack.c.l.b16 %v3059_v2  ;;  %v3046_v36 = vmul.f32 %v2861_v49, %v6352_v35  ;;  %v3172_v59 = vunpack.c.h.b16 %v3059_v2  ;;  %v2589_v35 = vpop.f32.mrf.mxu3 }
 0x675   : > { %4321 = vpow2.f32 %v4023_v9  ;;  %v2680_v34 = vadd.f32 %v2679_v17, %v2589_v35  ;;  %v2890_v58 = vor.u32 1.1754944e-38, %v2889_v31  ;;  %v2874_v54 = vand.u32 2147483648, %v6392_v62 }
 0x676   : > { %v2841_v48 = vsel %vm2840_vm5, %v4310_v37, %v2837_v56  ;;  %v2649_v37 = vadd.f32 %v2648_v45, %v2558_v5  ;;  %vm2888_vm13 = vcmp.eq.f32.partialorder %v2887_v43, 8.507059e+37  ;;  %vm2868_vm14 = vweird.f32 %v6392_v62 }
 0x677   : > { %v4316_v23 = vpop.eup %4315  ;;  %v2846_v39 = vsel %vm2843_vm6, %v2845_v22, %v2841_v48  ;;  %v6433_v12 = vadd.f32 %v6340_v16, %v2680_v34  ;;  %v2875_v31 = vor.u32 1.1754944e-38, %v2874_v54  ;;  %vm2873_vm0 = vcmp.eq.f32.partialorder %v2872_v11, 8.507059e+37 }
 0x678   : > { %v3045_v42 = vmul.f32 %v2846_v39, %v6355_v63  ;;  %v2879_v0 = vmul.f32 %v4316_v23, %v6383_v61  ;;  %v4318_v51 = vpop.eup %4317  ;;  %vm2884_vm9 = vweird.f32 %v4316_v23  ;;  %v4026_v63 = vmul.f32 -1.442695, %v6405_v1  ;;  %v2560_v61 = vpop.f32.mrf.mxu2 }
 0x679   : > { %v6407_v33 = vadd.f32 1.0, %v4318_v51  ;;  %v4320_v28 = vpop.eup %4319  ;;  %v6411_v14 = vadd.f32 %v6342_v30, %v2649_v37  ;;  %vm6423_vm11 = vmor %vm2883_vm8, %vm2884_vm9  ;;  %v2651_v49 = vadd.f32 %v2650_v8, %v2560_v61  ;;  %v4028_v27 = vmul.f32 -1.442695, %v6433_v12 }
 0x67a   : > { %v3060_v52 = vpack.c.bf16 %v3046_v36, %v3045_v42  ;;  %v2880_v40 = vsub.f32 1.0, %v2879_v0  ;;  %v2864_v29 = vmul.f32 %v4320_v28, %v6392_v62  ;;  %vm2869_vm12 = vweird.f32 %v4320_v28  ;;  %v2682_v42 = vpop.f32.mrf.mxu1 }
 0x67b   : > { %4323 = vrcp.f32 %v6407_v33  ;;  %v4025_v15 = vmul.f32 -1.442695, %v6411_v14  ;;  %v4322_v56 = vpop.eup %4321  ;;  %vm2870_vm15 = vmor %vm2868_vm14, %vm2869_vm12  ;;  %vm2913_vm2 = vweird.f32 %v6407_v33 }
 0x67c   : > { %v3173_v57 = vunpack.c.l.b16 %v3060_v52  ;;  %v3174_v53 = vunpack.c.h.b16 %v3060_v52  ;;  %v2881_v3 = vmul.f32 %v4316_v23, %v2880_v40  ;;  %v2865_v2 = vsub.f32 1.0, %v2864_v29  ;;  %v2592_v39 = vpop.f32.mrf.mxu3 }
 0x67d   : > { %4325 = vpow2.f32 %v4026_v63  ;;  %v6436_v48 = vadd.f32 1.0, %v4322_v56 }
 0x67e   : > { %v6416_v41 = vpack.c.b16 %v3173_v57, %v3171_v25  ;;  %v6418_v21 = vpack.c.b16 %v3174_v53, %v3172_v59  ;;  %v2882_v18 = vadd.f32 %v4316_v23, %v2881_v3  ;;  %v2866_v50 = vmul.f32 %v4320_v28, %v2865_v2 }
 0x67f   : > { %4327 = vpow2.f32 %v4025_v15  ;;  %v6442_v25 = vadd.f32 %v6340_v16, %v2651_v49  ;;  %v2683_v59 = vadd.f32 %v2682_v42, %v2592_v39  ;;  %v2917_v57 = vand.u32 2147483647, %v6407_v33 }
 0x680   : > { %v2886_v32 = vsel %vm6423_vm11, %v4316_v23, %v2882_v18  ;;  %v2867_v45 = vadd.f32 %v4320_v28, %v2866_v50  ;;  %4329 = vrcp.f32 %v6436_v48  ;;  %v2919_v53 = vand.u32 2147483648, %v6407_v33 }
 0x681   : > { %v2891_v22 = vsel %vm2888_vm13, %v2890_v58, %v2886_v32  ;;  %v6439_v23 = vpop.eup %4323  ;;  %4331 = vpow2.f32 %v4028_v27  ;;  %v4027_v40 = vmul.f32 -1.442695, %v6442_v25  ;;  %v2902_v18 = vand.u32 2147483647, %v6436_v48 }
 0x682   : > { %v2871_v36 = vsel %vm2870_vm15, %v4320_v28, %v2867_v45  ;;  %v2909_v62 = vmul.f32 %v6439_v23, %v6407_v33  ;;  %v3048_v5 = vmul.f32 %v2891_v22, %v6360_v55  ;;  %v2563_v28 = vpop.f32.mrf.mxu2  ;;  %v2653_v55 = vpop.f32.mrf.mxu0  ;;  %vm2914_vm1 = vweird.f32 %v6439_v23 }
 0x683   : > { %v4326_v0 = vpop.eup %4325  ;;  %v2876_v51 = vsel %vm2873_vm0, %v2875_v31, %v2871_v36  ;;  %v2654_v3 = vadd.f32 %v2653_v55, %v2563_v28  ;;  %v2904_v2 = vand.u32 2147483648, %v6436_v48  ;;  %vm6475_vm3 = vmor %vm2913_vm2, %vm2914_vm1  ;;  %vm6479_vm4 = vcmp.eq.f32.partialorder %v2917_v57, 8.507059e+37  ;;  %v2684_v36 = vpop.f32.mrf.mxu1 }
 0x684   : > { %v3047_v9 = vmul.f32 %v2876_v51, %v6370_v60  ;;  %v2910_v37 = vsub.f32 1.0, %v2909_v62  ;;  %v6449_v52 = vadd.f32 1.0, %v4326_v0  ;;  %v6459_v60 = vadd.f32 %v6344_v6, %v2683_v59  ;;  %v2594_v45 = vpop.f32.mrf.mxu3 }
 0x685   : > { %v4328_v16 = vpop.eup %4327  ;;  %v2920_v50 = vor.u32 1.1754944e-38, %v2919_v53  ;;  %v6484_v61 = vadd.f32 %v6344_v6, %v2654_v3  ;;  %vm2898_vm6 = vweird.f32 %v6436_v48  ;;  %vm6492_vm8 = vcmp.eq.f32.partialorder %v2902_v18, 8.507059e+37 }
 0x686   : > { %v6452_v17 = vpack.c.bf16 %v3048_v5, %v3047_v9  ;;  %v2911_v35 = vmul.f32 %v6439_v23, %v2910_v37  ;;  %4333 = vrcp.f32 %v6449_v52  ;;  %v6456_v63 = vadd.f32 1.0, %v4328_v16  ;;  %v4330_v34 = vpop.eup %4329  ;;  %v2721_v16 = vpop.permute.xlu0 %2720 }
 0x687   : > { %4335 = vpow2.f32 %v4027_v40  ;;  %v2894_v43 = vmul.f32 %v4330_v34, %v6436_v48  ;;  %v4332_v58 = vpop.eup %4331  ;;  %v4030_v54 = vmul.f32 -1.442695, %v6459_v60  ;;  %vm2899_vm5 = vweird.f32 %v4330_v34 }
 0x688   : > { %v2912_v29 = vadd.f32 %v6439_v23, %v2911_v35  ;;  %4337 = vrcp.f32 %v6456_v63  ;;  %v6470_v11 = vadd.f32 1.0, %v4332_v58  ;;  %v2905_v39 = vor.u32 1.1754944e-38, %v2904_v2  ;;  %vm2900_vm11 = vmor %vm2898_vm6, %vm2899_vm5 }
 0x689   : > { %v2895_v30 = vsub.f32 1.0, %v2894_v43  ;;  %vm2943_vm9 = vweird.f32 %v6449_v52  ;;  %v2949_v48 = vand.u32 2147483648, %v6449_v52  ;;  %v4029_v0 = vmul.f32 -1.442695, %v6484_v61 }
 0x68a   : > { %v2916_v56 = vsel %vm6475_vm3, %v6439_v23, %v2912_v29  ;;  %4339 = vrcp.f32 %v6470_v11  ;;  %v2685_v5 = vadd.f32 %v2684_v36, %v2594_v45  ;;  %v3176_v51 = vunpack.c.h.b16 %v6452_v17 }
 0x68b   : > { %v2896_v49 = vmul.f32 %v4330_v34, %v2895_v30  ;;  %4341 = vpow2.f32 %v4030_v54  ;;  %v2921_v42 = vsel %vm6479_vm4, %v2920_v50, %v2916_v56  ;;  %v2947_v9 = vand.u32 2147483647, %v6449_v52 }
 0x68c   : > { %v6473_v15 = vpop.eup %4333  ;;  %v2932_v35 = vand.u32 2147483647, %v6456_v63  ;;  %v2934_v28 = vand.u32 2147483648, %v6456_v63  ;;  %v3050_v55 = vmul.f32 %v2921_v42, %v6380_v38  ;;  %v2950_v29 = vor.u32 1.1754944e-38, %v2949_v48 }
 0x68d   : > { %v4336_v33 = vpop.eup %4335  ;;  %v2939_v22 = vmul.f32 %v6473_v15, %v6449_v52  ;;  %v2897_v6 = vadd.f32 %v4330_v34, %v2896_v49  ;;  %vm2928_vm12 = vweird.f32 %v6456_v63  ;;  %v6517_v43 = vadd.f32 %v2721_v16, %v2685_v5  ;;  %v2655_v49 = vpop.f32.mrf.mxu0 }
 0x68e   : > { %v6498_v23 = vadd.f32 1.0, %v4336_v33  ;;  %v4338_v62 = vpop.eup %4337  ;;  %vm6519_vm13 = vcmp.eq.f32.partialorder %v2947_v9, 8.507059e+37  ;;  %vm2944_vm15 = vweird.f32 %v6473_v15  ;;  %vm6525_vm0 = vcmp.eq.f32.partialorder %v2932_v35, 8.507059e+37 }
 0x68f   : > { %v2940_v31 = vsub.f32 1.0, %v2939_v22  ;;  %v2901_v59 = vsel %vm2900_vm11, %v4330_v34, %v2897_v6  ;;  %v2924_v37 = vmul.f32 %v4338_v62, %v6456_v63  ;;  %vm2929_vm14 = vweird.f32 %v4338_v62  ;;  %vm6548_vm4 = vmor %vm2943_vm9, %vm2944_vm15 }
 0x690   : > { %v2906_v40 = vsel %vm6492_vm8, %v2905_v39, %v2901_v59  ;;  %4343 = vrcp.f32 %v6498_v23  ;;  %v4340_v3 = vpop.eup %4339  ;;  %v2935_v8 = vor.u32 1.1754944e-38, %v2934_v28  ;;  %vm2973_vm1 = vweird.f32 %v6470_v11  ;;  %vm6534_vm2 = vmor %vm2928_vm12, %vm2929_vm14 }
 0x691   : > { %v3049_v57 = vmul.f32 %v2906_v40, %v6396_v19  ;;  %v2941_v34 = vmul.f32 %v6473_v15, %v2940_v31  ;;  %v2925_v53 = vsub.f32 1.0, %v2924_v37  ;;  %4345 = vpow2.f32 %v4029_v0  ;;  %v4342_v58 = vpop.eup %4341  ;;  %v2565_v19 = vpop.f32.mrf.mxu2 }
 0x692   : > { %v2969_v38 = vmul.f32 %v4340_v3, %v6470_v11  ;;  %v2977_v56 = vand.u32 2147483647, %v6470_v11  ;;  %v6538_v39 = vadd.f32 1.0, %v4342_v58  ;;  %v4032_v6 = vmul.f32 -1.442695, %v6517_v43 }
 0x693   : > { %v3062_v18 = vpack.c.bf16 %v3050_v55, %v3049_v57  ;;  %v2926_v30 = vmul.f32 %v4338_v62, %v2925_v53  ;;  %v2942_v32 = vadd.f32 %v6473_v15, %v2941_v34  ;;  %v2656_v31 = vadd.f32 %v2655_v49, %v2565_v19 }
 0x694   : > { %v2970_v33 = vsub.f32 1.0, %v2969_v38  ;;  %vm2974_vm3 = vweird.f32 %v4340_v3  ;;  %v2979_v5 = vand.u32 2147483648, %v6470_v11  ;;  %v2962_v59 = vand.u32 2147483647, %v6498_v23 }
 0x695   : > { %v2927_v50 = vadd.f32 %v4338_v62, %v2926_v30  ;;  %v3178_v45 = vunpack.c.h.b16 %v3062_v18  ;;  %v2964_v9 = vand.u32 2147483648, %v6498_v23  ;;  %4347 = vpow2.f32 %v4032_v6  ;;  %vm6564_vm5 = vmor %vm2973_vm1, %vm2974_vm3 }
 0x696   : > { %v4344_v22 = vpop.eup %4343  ;;  %v2971_v42 = vmul.f32 %v4340_v3, %v2970_v33  ;;  %4349 = vrcp.f32 %v6538_v39  ;;  %v6569_v55 = vadd.f32 %v2721_v16, %v2656_v31  ;;  %v3177_v53 = vunpack.c.l.b16 %v3062_v18 }
 0x697   : > { %v2931_v36 = vsel %vm6534_vm2, %v4338_v62, %v2927_v50  ;;  %v2954_v48 = vmul.f32 %v4344_v22, %v6498_v23  ;;  %v4346_v0 = vpop.eup %4345  ;;  %v2946_v62 = vsel %vm6548_vm4, %v6473_v15, %v2942_v32  ;;  %v6571_v57 = vpack.c.b16 %v3178_v45, %v3176_v51 }
 0x698   : > { %v2972_v37 = vadd.f32 %v4340_v3, %v2971_v42  ;;  %v6558_v35 = vadd.f32 1.0, %v4346_v0  ;;  %v2936_v52 = vsel %vm6525_vm0, %v2935_v8, %v2931_v36  ;;  %vm2959_vm6 = vweird.f32 %v4344_v22 }
 0x699   : > { %v2955_v40 = vsub.f32 1.0, %v2954_v48  ;;  %v2951_v58 = vsel %vm6519_vm13, %v2950_v29, %v2946_v62  ;;  %vm2978_vm8 = vcmp.eq.f32.partialorder %v2977_v56, 8.507059e+37  ;;  %v2980_v11 = vor.u32 1.1754944e-38, %v2979_v5 }
 0x69a   : > { %v2976_v15 = vsel %vm6564_vm5, %v4340_v3, %v2972_v37  ;;  %4351 = vrcp.f32 %v6558_v35  ;;  %v3051_v30 = vmul.f32 %v2936_v52, %v6411_v14  ;;  %vm2958_vm9 = vweird.f32 %v6498_v23 }
 0x69b   : > { %v2956_v34 = vmul.f32 %v4344_v22, %v2955_v40  ;;  %v3175_v51 = vunpack.c.l.b16 %v6452_v17  ;;  %v4348_v16 = vpop.eup %4347  ;;  %v2981_v19 = vsel %vm2978_vm8, %v2980_v11, %v2976_v15  ;;  %vm2960_vm11 = vmor %vm2958_vm9, %vm2959_vm6  ;;  %vm2963_vm12 = vcmp.eq.f32.partialorder %v2962_v59, 8.507059e+37 }
 0x69c   : > { %v2965_v3 = vor.u32 1.1754944e-38, %v2964_v9  ;;  %v4031_v18 = vmul.f32 -1.442695, %v6569_v55  ;;  %v3052_v29 = vmul.f32 %v2951_v58, %v6405_v1  ;;  %v6583_v54 = vadd.f32 1.0, %v4348_v16  ;;  %v6587_v14 = vpop.eup %4349 }
 0x69d   : > { %v2957_v38 = vadd.f32 %v4344_v22, %v2956_v34  ;;  %v6585_v8 = vpack.c.b16 %v3177_v53, %v3175_v51  ;;  %v3054_v17 = vmul.f32 %v2981_v19, %v6433_v12  ;;  %v2999_v49 = vmul.f32 %v6587_v14, %v6538_v39 }
 0x69e   : > { %v3063_v23 = vpack.c.bf16 %v3052_v29, %v3051_v30  ;;  %4353 = vrcp.f32 %v6583_v54  ;;  %v2992_v40 = vand.u32 2147483647, %v6558_v35  ;;  %v2994_v52 = vand.u32 2147483648, %v6558_v35 }
 0x69f   : > { %v2961_v2 = vsel %vm2960_vm11, %v4344_v22, %v2957_v38  ;;  %4355 = vpow2.f32 %v4031_v18  ;;  %vm3004_vm14 = vweird.f32 %v6587_v14  ;;  %vm2988_vm15 = vweird.f32 %v6558_v35 }
 0x6a0   : > { %v2966_v32 = vsel %vm2963_vm12, %v2965_v3, %v2961_v2  ;;  %v4352_v33 = vpop.eup %4351  ;;  %v3071_v22 = vunpack.c.l.b16 %v3063_v23  ;;  %v3072_v45 = vunpack.c.h.b16 %v3063_v23  ;;  %vm3003_vm0 = vweird.f32 %v6538_v39 }
 0x6a1   : > { %v3053_v50 = vmul.f32 %v2966_v32, %v6442_v25  ;;  %v2984_v1 = vmul.f32 %v4352_v33, %v6558_v35  ;;  %v3000_v25 = vsub.f32 1.0, %v2999_v49  ;;  %vm2989_vm13 = vweird.f32 %v4352_v33  ;;  %vm6613_vm3 = vmor %vm3003_vm0, %vm3004_vm14 }
 0x6a2   : > { %v3007_v34 = vand.u32 2147483647, %v6538_v39  ;;  %v3009_v53 = vand.u32 2147483648, %v6538_v39  ;;  %vm6607_vm1 = vmor %vm2988_vm15, %vm2989_vm13  ;;  %vm2993_vm4 = vcmp.eq.f32.partialorder %v2992_v40, 8.507059e+37  ;;  %v2995_v35 = vor.u32 1.1754944e-38, %v2994_v52 }
 0x6a3   : > { %v3064_v56 = vpack.c.bf16 %v3054_v17, %v3053_v50  ;;  %v2985_v31 = vsub.f32 1.0, %v2984_v1  ;;  %v3001_v9 = vmul.f32 %v6587_v14, %v3000_v25  ;;  %v3039_v16 = vand.u32 2147483648, %v6583_v54 }
 0x6a4   : > { %v4354_v36 = vpop.eup %4353  ;;  %vm3033_vm5 = vweird.f32 %v6583_v54  ;;  %v3037_v19 = vand.u32 2147483647, %v6583_v54  ;;  %vm3008_vm6 = vcmp.eq.f32.partialorder %v3007_v34, 8.507059e+37  ;;  %v3010_v18 = vor.u32 1.1754944e-38, %v3009_v53 }
 0x6a5   : > { %v3073_v27 = vunpack.c.l.b16 %v3064_v56  ;;  %v3074_v6 = vunpack.c.h.b16 %v3064_v56  ;;  %v4356_v48 = vpop.eup %4355  ;;  %v3029_v0 = vmul.f32 %v4354_v36, %v6583_v54  ;;  %v2986_v5 = vmul.f32 %v4352_v33, %v2985_v31 }
 0x6a6   : > { %v2801_v63 = vadd.f32 1.0, %v4356_v48  ;;  %v3002_v28 = vadd.f32 %v6587_v14, %v3001_v9  ;;  %vm3034_vm2 = vweird.f32 %v4354_v36  ;;  %vm3038_vm11 = vcmp.eq.f32.partialorder %v3037_v19, 8.507059e+37 }
 0x6a7   : > { %v3079_v42 = vpack.c.b16 %v3073_v27, %v3071_v22  ;;  %v3080_v12 = vpack.c.b16 %v3074_v6, %v3072_v45  ;;  %v3030_v59 = vsub.f32 1.0, %v3029_v0  ;;  %v2987_v62 = vadd.f32 %v4352_v33, %v2986_v5  ;;  %vm3035_vm8 = vmor %vm3033_vm5, %vm3034_vm2 }
 0x6a8   : > { %4357 = vrcp.f32 %v2801_v63  ;;  %v3006_v39 = vsel %vm6613_vm3, %v6587_v14, %v3002_v28  ;;  %v3024_v2 = vand.u32 2147483648, %v2801_v63  ;;  %v3022_v17 = vand.u32 2147483647, %v2801_v63 }
 0x6a9   : > { %3099 = vmatmul.bf16.vlgmr.msrb.gmra.mxu2 %v3079_v42  ;;  %4033 = vmatmul.msk.bf16.vlgmr.msrb.gmra.mxu3 %vm1749_vm10, %v3080_v12  ;;  %v3031_v37 = vmul.f32 %v4354_v36, %v3030_v59  ;;  %v2991_v11 = vsel %vm6607_vm1, %v4352_v33, %v2987_v62  ;;  %v3011_v50 = vsel %vm3008_vm6, %v3010_v18, %v3006_v39  ;;  %v3040_v33 = vor.u32 1.1754944e-38, %v3039_v16 }
 0x6aa   : > { %3137 = vmatmul.bf16.vlgmr.msra.gmra.mxu0 %v3079_v42  ;;  %4035 = vmatmul.msk.bf16.vlgmr.msrb.gmra.mxu1 %vm1749_vm10, %v3080_v12  ;;  %v2996_v29 = vsel %vm2993_vm4, %v2995_v35, %v2991_v11  ;;  %vm3018_vm12 = vweird.f32 %v2801_v63  ;;  %v3025_v54 = vor.u32 1.1754944e-38, %v3024_v2  ;;  %v3056_v49 = vmul.f32 %v3011_v50, %v6459_v60 }
 0x6ab   : > { %v3032_v30 = vadd.f32 %v4354_v36, %v3031_v37  ;;  %v3055_v56 = vmul.f32 %v2996_v29, %v6484_v61  ;;  %vm3023_vm14 = vcmp.eq.f32.partialorder %v3022_v17, 8.507059e+37 }
 0x6ad   : > { %v3036_v32 = vsel %vm3035_vm8, %v4354_v36, %v3032_v30  ;;  %v3065_v27 = vpack.c.bf16 %v3056_v49, %v3055_v56 }
 0x6ae   : > { %v4358_v15 = vpop.eup %4357  ;;  %v3041_v1 = vsel %vm3038_vm11, %v3040_v33, %v3036_v32 }
 0x6af   : > { %v3014_v38 = vmul.f32 %v4358_v15, %v2801_v63  ;;  %vm3019_vm9 = vweird.f32 %v4358_v15  ;;  %v3058_v6 = vmul.f32 %v3041_v1, %v6517_v43  ;;  %v3076_v42 = vunpack.c.h.b16 %v3065_v27 }
 0x6b0   : > { %vm3020_vm13 = vmor %vm3018_vm12, %vm3019_vm9  ;;  %v3075_v61 = vunpack.c.l.b16 %v3065_v27 }
 0x6b1   : > { %v3015_v3 = vsub.f32 1.0, %v3014_v38 }
 0x6b3   : > { %v3016_v23 = vmul.f32 %v4358_v15, %v3015_v3 }
 0x6b5   : > { %v3017_v14 = vadd.f32 %v4358_v15, %v3016_v23 }
 0x6b7   : > { %v3021_v22 = vsel %vm3020_vm13, %v4358_v15, %v3017_v14 }
 0x6b8   : > { %v3026_v45 = vsel %vm3023_vm14, %v3025_v54, %v3021_v22 }
 0x6b9   : > { %v3057_v31 = vmul.f32 %v3026_v45, %v6569_v55 }
 0x6bb   : > { %v3066_v36 = vpack.c.bf16 %v3058_v6, %v3057_v31 }
 0x6bd   : > { %v3078_v12 = vunpack.c.h.b16 %v3066_v36  ;;  %v3077_v48 = vunpack.c.l.b16 %v3066_v36 }
 0x6bf   : > { %v3081_v25 = vpack.c.b16 %v3077_v48, %v3075_v61  ;;  %v3082_v0 = vpack.c.b16 %v3078_v12, %v3076_v42 }
 0x6c1   : > { %3104 = vmatmul.bf16.gmra.mxu2 %v3081_v25  ;;  %4034 = vmatmul.msk.bf16.gmra.mxu3 %vm1749_vm10, %v3082_v0 }
 0x6c2   : > { %3142 = vmatmul.bf16.gmra.mxu0 %v3081_v25  ;;  %4036 = vmatmul.msk.bf16.gmra.mxu1 %vm1749_vm10, %v3082_v0 }
 0x6d1   : > { %3199 = vmatmul.bf16.vlgmr.msra.gmra.mxu2 %v6416_v41  ;;  %4037 = vmatmul.msk.bf16.vlgmr.msra.gmra.mxu3 %vm1749_vm10, %v6418_v21 }
 0x6d2   : > { %3237 = vmatmul.bf16.vlgmr.msrb.gmra.mxu0 %v6416_v41  ;;  %4039 = vmatmul.msk.bf16.vlgmr.msra.gmra.mxu1 %vm1749_vm10, %v6418_v21 }
 0x6e1   : > { %3204 = vmatmul.bf16.gmra.mxu2 %v6585_v8  ;;  %4038 = vmatmul.msk.bf16.gmra.mxu3 %vm1749_vm10, %v6571_v57 }
 0x6e2   : > { %3242 = vmatmul.bf16.gmra.mxu0 %v6585_v8  ;;  %4040 = vmatmul.msk.bf16.gmra.mxu1 %vm1749_vm10, %v6571_v57 }
 0x727   : > { %v3138_v60 = vpop.f32.mrf.mxu0  ;;  %v3157_v43 = vpop.f32.mrf.mxu1 }
 0x728   : > { %v3158_v23 = vadd.f32 %v3157_v43, %v3138_v60 }
 0x72c   : > { %v3100_v55 = vpop.f32.mrf.mxu2  ;;  %v3119_v63 = vpop.f32.mrf.mxu3 }
 0x72d   : > { %v3120_v36 = vadd.f32 %v3119_v63, %v3100_v55  ;;  %v4172_v63 = vld [vmem:[%s6689_s4 + $0x38] sm:$0xff] }
 0x72f   : > { %v3140_v5 = vpop.f32.mrf.mxu0  ;;  %v3159_v59 = vpop.f32.mrf.mxu1 }
 0x730   : > { %v3160_v18 = vadd.f32 %v3159_v59, %v3140_v5 }
 0x734   : > { %v3102_v41 = vpop.f32.mrf.mxu2  ;;  %v3121_v9 = vpop.f32.mrf.mxu3 }
 0x735   : > { %v3122_v49 = vadd.f32 %v3121_v9, %v3102_v41  ;;  %v4171_v41 = vld [vmem:[%s6689_s4 + $0x30] sm:$0xff] }
 0x73f   : > { %v3143_v62 = vpop.f32.mrf.mxu0  ;;  %v3162_v21 = vpop.f32.mrf.mxu1 }
 0x740   : > { %v3163_v39 = vadd.f32 %v3162_v21, %v3143_v62  ;;  %v3273_v62 = vpop.permute.xlu0 %3272 }
 0x744   : > { %v3105_v37 = vpop.f32.mrf.mxu2  ;;  %v3124_v40 = vpop.f32.mrf.mxu3 }
 0x745   : > { %v3125_v33 = vadd.f32 %v3124_v40, %v3105_v37 }
 0x747   : > { %v3145_v52 = vpop.f32.mrf.mxu0  ;;  %v3164_v28 = vpop.f32.mrf.mxu1 }
 0x748   : > { %v3165_v29 = vadd.f32 %v3164_v28, %v3145_v52  ;;  %v3277_v28 = vpop.permute.xlu1 %3276 }
 0x74c   : > { %v3107_v15 = vpop.f32.mrf.mxu2  ;;  %v3126_v34 = vpop.f32.mrf.mxu3 }
 0x74d   : > { %v3127_v22 = vadd.f32 %v3126_v34, %v3107_v15 }
 0x74f   : > { %v3238_v8 = vpop.f32.mrf.mxu0  ;;  %v3257_v53 = vpop.f32.mrf.mxu1 }
 0x750   : > { %v3239_v14 = vadd.f32 %v3238_v8, %v3158_v23  ;;  %v3281_v8 = vpop.permute.xlu2 %3280  ;;  %v7054_v23 = vld [vmem:[#allocation9_spill] sm:$0xff] }
 0x752   : > { %v3258_v61 = vadd.f32 %v3257_v53, %v3239_v14  ;;  %v7057_v14 = vld [vmem:[#allocation4_spill] sm:$0xff] }
 0x754   : > { %v3200_v58 = vpop.f32.mrf.mxu2  ;;  %v3219_v57 = vpop.f32.mrf.mxu3 }
 0x755   : > { %v3201_v25 = vadd.f32 %v3200_v58, %v3120_v36 }
 0x757   : > { %v3240_v11 = vpop.f32.mrf.mxu0  ;;  %v3259_v30 = vpop.f32.mrf.mxu1  ;;  %v3220_v9 = vadd.f32 %v3219_v57, %v3201_v25 }
 0x758   : > { %v3241_v17 = vadd.f32 %v3240_v11, %v3160_v18  ;;  %v7052_v18 = vld [vmem:[#allocation10_spill] sm:$0xff] }
 0x75a   : > { %v3260_v27 = vadd.f32 %v3259_v30, %v3241_v17  ;;  %v7055_v17 = vld [vmem:[#allocation75_spill] sm:$0xff] }
 0x75c   : > { %v3202_v38 = vpop.f32.mrf.mxu2  ;;  %v3221_v51 = vpop.f32.mrf.mxu3  ;;  %v3268_v43 = vpack.c.bf16 %v3260_v27, %v3258_v61 }
 0x75d   : > { %v3203_v42 = vadd.f32 %v3202_v38, %v3122_v49 }
 0x75f   : > { %v3243_v35 = vpop.f32.mrf.mxu0  ;;  %v3262_v16 = vpop.f32.mrf.mxu1  ;;  %v3222_v5 = vadd.f32 %v3221_v51, %v3203_v42 }
 0x760   : > { %v3244_v2 = vadd.f32 %v3243_v35, %v3163_v39 }
 0x761   : > { %v3267_v55 = vpack.c.bf16 %v3222_v5, %v3220_v9 }
 0x762   : > { %v3263_v1 = vadd.f32 %v3262_v16, %v3244_v2 }
 0x764   : > { %v3205_v19 = vpop.f32.mrf.mxu2  ;;  %v3224_v3 = vpop.f32.mrf.mxu3 }
 0x765   : > { %v3206_v45 = vadd.f32 %v3205_v19, %v3125_v33 }
 0x767   : > { %v3245_v32 = vpop.f32.mrf.mxu0  ;;  %v3264_v56 = vpop.f32.mrf.mxu1  ;;  %v3225_v0 = vadd.f32 %v3224_v3, %v3206_v45 }
 0x768   : > { %v3246_v50 = vadd.f32 %v3245_v32, %v3165_v29  ;;  %v7053_v32 = vld [vmem:[#allocation8_spill] sm:$0xff] }
 0x76a   : > { %v3265_v54 = vadd.f32 %v3264_v56, %v3246_v50 }
 0x76c   : > { %v3270_v6 = vpack.c.bf16 %v3265_v54, %v3263_v1  ;;  %v3207_v31 = vpop.f32.mrf.mxu2  ;;  %v3226_v48 = vpop.f32.mrf.mxu3 }
 0x76d   : > { %v3208_v12 = vadd.f32 %v3207_v31, %v3127_v22 }
 0x76e   : > { %3328 = vmatpush.bf16.msrb.mxu3 %v3270_v6 }
 0x76f   : > { %v3227_v60 = vadd.f32 %v3226_v48, %v3208_v12 }
 0x771   : > { %v3269_v59 = vpack.c.bf16 %v3227_v60, %v3225_v0 }
 0x772   : > { %3329 = vmatpush.bf16.msrb.mxu3 %v3268_v43 }
 0x773   : > { %3309 = vmatpush.bf16.msra.mxu0 %v3269_v59  ;;  %4182 = vmatpush.bf16.msrb.mxu2 %v3269_v59 }
 0x775   : > { %4051 = vmatmul.msk.bf16.vlgmr.msrb.gmra.mxu3 %vm552_vm7, %v4171_v41 }
 0x777   : > { %3310 = vmatpush.bf16.msra.mxu0 %v3267_v55  ;;  %4183 = vmatpush.bf16.msrb.mxu2 %v3267_v55 }
 0x77a   : > { %4049 = vmatmul.msk.bf16.vlgmr.msra.gmra.mxu0 %vm552_vm7, %v4171_v41  ;;  %4050 = vmatmul.msk.bf16.vlgmr.msrb.gmra.mxu2 %vm552_vm7, %v4172_v63 }
 0x785   : > { %4052 = vmatmul.msk.bf16.gmra.mxu3 %vm552_vm7, %v4172_v63 }
 0x7f7   : > { %v3312_v21 = vpop.f32.mrf.mxu0 }
 0x7f8   : > { %v3313_v37 = vadd.f32 %v3312_v21, %v3273_v62  ;;  %v3331_v40 = vpop.f32.mrf.mxu3 }
 0x7f9   : > { %v3332_v52 = vadd.f32 %v3331_v40, %v3273_v62 }
 0x7fa   : > { %v3341_v15 = vmul.f32 %v3313_v37, %v6187_v24 }
 0x7fb   : > { %v3342_v34 = vmul.f32 %v3332_v52, %v6193_v26 }
 0x7fc   : > { %v3349_v53 = vadd.f32 %v3341_v15, %v6106_v47 }
 0x7fd   : > { %v3350_v58 = vadd.f32 %v3342_v34, %v6112_v46  ;;  %v3317_v57 = vpop.f32.mrf.mxu2  ;;  %v3285_v46 = vpop.permute.xlu1 %3284 }
 0x7fe   : > { %3357 = vst [vmem:[%s6657_s15] sm:$0xff] %v3349_v53  ;;  %v3318_v24 = vadd.f32 %v3317_v57, %v3281_v8 }
 0x7ff   : > { %3358 = vst [vmem:[%s6657_s15 + $0x8] sm:$0xff] %v3350_v58  ;;  %v3314_v11 = vpop.f32.mrf.mxu0 }
 0x800   : > { %v3345_v30 = vmul.f32 %v3318_v24, %v6175_v13  ;;  %v3315_v38 = vadd.f32 %v3314_v11, %v3277_v28  ;;  %v3333_v51 = vpop.f32.mrf.mxu3 }
 0x801   : > { %v3334_v35 = vadd.f32 %v3333_v51, %v3277_v28 }
 0x802   : > { %v3353_v26 = vadd.f32 %v3345_v30, %v6109_v10  ;;  %v3343_v16 = vmul.f32 %v3315_v38, %v6185_v4 }
 0x803   : > { %v3344_v47 = vmul.f32 %v3334_v35, %v6191_v44 }
 0x804   : > { %3361 = vst [vmem:[%s6657_s15 + $0x20] sm:$0xff] %v3353_v26  ;;  %v3351_v39 = vadd.f32 %v3343_v16, %v6100_v20 }
 0x805   : > { %v3352_v19 = vadd.f32 %v3344_v47, %v6103_v7  ;;  %v3319_v3 = vpop.f32.mrf.mxu2  ;;  %v7056_v7 = vld [vmem:[#allocation14_spill] sm:$0xff] }
 0x806   : > { %3359 = vst [vmem:[%s6657_s15 + $0x10] sm:$0xff] %v3351_v39  ;;  %v3320_v13 = vadd.f32 %v3319_v3, %v3285_v46 }
 0x807   : > { %3360 = vst [vmem:[%s6657_s15 + $0x18] sm:$0xff] %v3352_v19 }
 0x808   : > { %v3347_v29 = vmul.f32 %v3320_v13, %v7052_v18  ;;  %v3336_v10 = vpop.f32.mrf.mxu3 }
 0x809   : > { %v3337_v2 = vadd.f32 %v3336_v10, %v3281_v8 }
 0x80a   : > { %v3355_v4 = vadd.f32 %v3347_v29, %v7053_v32 }
 0x80b   : > { %v3346_v44 = vmul.f32 %v3337_v2, %v7054_v23 }
 0x80c   : > { %3363 = vst [vmem:[%s6657_s15 + $0x30] sm:$0xff] %v3355_v4 }
 0x80d   : > { %v3354_v50 = vadd.f32 %v3346_v44, %v7055_v17 }
 0x80f   : > { %3362 = vst [vmem:[%s6657_s15 + $0x28] sm:$0xff] %v3354_v50 }
 0x810   : > { %v3338_v20 = vpop.f32.mrf.mxu3 }
 0x811   : > { %v3339_v33 = vadd.f32 %v3338_v20, %v3285_v46 }
 0x813   : > { %v3348_v56 = vmul.f32 %v3339_v33, %v7056_v7 }
 0x815   : > { %v3356_v1 = vadd.f32 %v3348_v56, %v7057_v14 }
 0x817   : > { %3364 = vst [vmem:[%s6657_s15 + $0x38] sm:$0xff] %v3356_v1 }
 0x818 PF: > { %s16_s21 = sadd.s32 1, %s4379_s21  }
 0x819   : > { %p13_p4 = scmp.ge.s32.totalorder %s16_s21, 4  }
 0x81b   :  { %15 = sbr.rel (!%p13_p4) target bundleno = 1 (0x1), region = 77 }

</bundles_post_ra>
